<compile_context>
chip_gen: v6e
topology: v6e:2x2x1
jax: 0.10.0
libtpu: 0.0.40
codegen_flags: <defaults>
</compile_context>

<pallas_src>
import functools

import jax
import jax.numpy as jnp
from jax.experimental import pallas as pl
from jax.experimental.pallas import tpu as pltpu

MXU_DTYPE = jnp.bfloat16  # matmul operand dtype (accumulation is always f32)


def _round_up(x, m):
    return (x + m - 1) // m * m


# ----------------------------------------------------------------------------
# Pallas kernel 1: tiled matmul + bias (used for every conv-as-matmul)
# ----------------------------------------------------------------------------
def _matmul_bias_kernel(x_ref, w_ref, b_ref, o_ref, acc_ref):
    @pl.when(pl.program_id(2) == 0)
    def _():
        acc_ref[...] = jnp.zeros_like(acc_ref)

    acc_ref[...] += jnp.dot(x_ref[...], w_ref[...],
                            preferred_element_type=jnp.float32)

    @pl.when(pl.program_id(2) == pl.num_programs(2) - 1)
    def _():
        o_ref[...] = acc_ref[...] + b_ref[...]


def matmul_bias(x, w, bias, *, tm=512, tn=512, tk=512):
    """out = x @ w + bias.  x:(M,K) w:(K,N) bias:(N,) -> (M,N) float32.

    Operands are zero-padded so K and N are multiples of 128 (lane-dense
    loads/stores, full MXU columns) and M is a multiple of the M-tile.
    """
    M, K = x.shape
    K2, N = w.shape
    assert K == K2

    K_p = _round_up(K, 128)
    N_p = _round_up(N, 128)
    tm = min(tm, _round_up(M, 8))
    M_p = _round_up(M, tm)
    tn = min(tn, N_p)
    tk = min(tk, K_p)

    x_p = jnp.pad(x.astype(MXU_DTYPE), ((0, M_p - M), (0, K_p - K)))
    w_p = jnp.pad(w.astype(MXU_DTYPE), ((0, K_p - K), (0, N_p - N)))
    b_p = jnp.pad(bias.astype(jnp.float32).reshape(1, N), ((0, 0), (0, N_p - N)))

    out = pl.pallas_call(
        _matmul_bias_kernel,
        out_shape=jax.ShapeDtypeStruct((M_p, N_p), jnp.float32),
        grid_spec=pltpu.PrefetchScalarGridSpec(
            num_scalar_prefetch=0,
            grid=(M_p // tm, N_p // tn, K_p // tk),
            in_specs=[
                pl.BlockSpec((tm, tk), lambda i, j, k: (i, k)),
                pl.BlockSpec((tk, tn), lambda i, j, k: (k, j)),
                pl.BlockSpec((1, tn), lambda i, j, k: (0, j)),
            ],
            out_specs=pl.BlockSpec((tm, tn), lambda i, j, k: (i, j)),
            scratch_shapes=[pltpu.VMEM((tm, tn), jnp.float32)],
        ),
        compiler_params=pltpu.CompilerParams(
            dimension_semantics=("parallel", "parallel", "arbitrary")),
    )(x_p, w_p, b_p)
    return out[:M, :N]


# ----------------------------------------------------------------------------
# Pallas kernel 2: channel attention, one grid step per batch element
#   (all heads processed together; temperature scalars come from SMEM)
# ----------------------------------------------------------------------------
def _attn_kernel(t_ref, q_ref, k_ref, v_ref, o_ref, *, heads):
    q = q_ref[...]                      # (heads, cph, hw) f32
    k = k_ref[...]
    v = v_ref[...]

    # F.normalize(dim=-1): x / max(||x||, 1e-12)  ==  x * rsqrt(max(||x||^2, 1e-24))
    eps2 = jnp.float32(1e-24)
    qn = q * jax.lax.rsqrt(jnp.maximum(jnp.sum(q * q, axis=-1, keepdims=True), eps2))
    kn = k * jax.lax.rsqrt(jnp.maximum(jnp.sum(k * k, axis=-1, keepdims=True), eps2))

    # per-head (cph x cph) channel-attention logits
    s = jnp.einsum('hce,hde->hcd', qn, kn, preferred_element_type=jnp.float32)

    # per-head temperature read from SMEM scalars (no VMEM DMA of a scalar)
    hidx = jax.lax.broadcasted_iota(jnp.int32, s.shape, 0)
    temp = jnp.full(s.shape, t_ref[0], dtype=jnp.float32)
    for hh in range(1, heads):
        temp = jnp.where(hidx == hh, t_ref[hh], temp)
    s = s * temp

    s = s - jnp.max(s, axis=-1, keepdims=True)
    p = jnp.exp(s)
    p = p * pl.reciprocal(jnp.sum(p, axis=-1, keepdims=True), approx=True)

    o_ref[...] = jnp.einsum('hcd,hde->hce', p, v,
                            preferred_element_type=jnp.float32)


def attention(q, k, v, temperature):
    """q,k,v: (b, heads, cph, hw) f32; temperature: (heads, 1, 1) f32."""
    b, heads, cph, hw = q.shape
    # TODO(synk): for very large hw (v7x 64 MiB VMEM) tile hw with an
    # "arbitrary" grid axis: accumulate q@k^T over hw tiles, softmax once,
    # then stream attn@v over the same tiles.
    blk = pl.BlockSpec((pl.Squeezed(), heads, cph, hw),
                       lambda bi, t: (bi, 0, 0, 0))
    return pl.pallas_call(
        functools.partial(_attn_kernel, heads=heads),
        out_shape=jax.ShapeDtypeStruct((b, heads, cph, hw), jnp.float32),
        grid_spec=pltpu.PrefetchScalarGridSpec(
            num_scalar_prefetch=1,
            grid=(b,),
            in_specs=[blk, blk, blk],
            out_specs=blk,
        ),
        compiler_params=pltpu.CompilerParams(dimension_semantics=("parallel",)),
    )(temperature.astype(jnp.float32).reshape(heads),
      q.astype(jnp.float32), k.astype(jnp.float32), v.astype(jnp.float32))


# ----------------------------------------------------------------------------
# DeformConv2d forward (kernel_size=3, padding=1, stride=1, modulation=False)
#   p_conv and the ks-stride "deform" conv run as tiled Pallas matmuls; the
#   bilinear-sampling gather stays in XLA, in channel-last layout so the
#   weighted sum reshapes directly into the final matmul operand.
#   Returns (b, h*w, outc) channels-last.
# ----------------------------------------------------------------------------
def deform_conv2d(x, p_conv_w, p_conv_b, conv_w, ks=3, pad=1, stride=1):
    b, c, h, w = x.shape
    N = ks * ks
    outc = conv_w.shape[0]

    x_nhwc = x.transpose(0, 2, 3, 1)                       # (b, h, w, c)
    x_pad = jnp.pad(x_nhwc, ((0, 0), (pad, pad), (pad, pad), (0, 0)))
    h_pad, w_pad = h + 2 * pad, w + 2 * pad

    # --- p_conv: 3x3 conv, pad=1, stride=1 -> offsets, via im2col matmul -----
    # Patches are built directly in the (pixel, tap, channel) layout the
    # matmul consumes (single materialization, no transposes).
    # TODO(synk): fold the 3x3 window extraction into the matmul BlockSpec
    # (overlapping row tiles on x_pad) to avoid the 9x read for large images.
    patches = jnp.stack(
        [x_pad[:, r:r + h, s:s + w, :] for r in range(ks) for s in range(ks)],
        axis=3)                                            # (b, h, w, N, c)
    patches = patches.reshape(b * h * w, N * c)
    wp = p_conv_w.reshape(2 * N, c, N).transpose(0, 2, 1).reshape(2 * N, N * c)
    offset = matmul_bias(patches, wp.T, p_conv_b)
    offset = offset.reshape(b, h, w, 2 * N)                # [x-offsets | y-offsets]

    # --- sampling positions p = p_0 + p_n + offset ---------------------------
    rr = (jnp.arange(ks) - (ks - 1) // 2).astype(jnp.float32)   # [-1, 0, 1]
    p_n_x = jnp.repeat(rr, ks)                                  # meshgrid 'ij' flat
    p_n_y = jnp.tile(rr, ks)
    i0 = jnp.arange(1, h * stride + 1, stride).astype(jnp.float32)
    j0 = jnp.arange(1, w * stride + 1, stride).astype(jnp.float32)

    p_x = i0[None, :, None, None] + p_n_x[None, None, None, :] + offset[..., :N]
    p_y = j0[None, None, :, None] + p_n_y[None, None, None, :] + offset[..., N:]

    q_lt_x = jnp.clip(jnp.floor(p_x), 0, h_pad - 1)
    q_lt_y = jnp.clip(jnp.floor(p_y), 0, w_pad - 1)
    q_rb_x = jnp.clip(jnp.floor(p_x) + 1, 0, h_pad - 1)
    q_rb_y = jnp.clip(jnp.floor(p_y) + 1, 0, w_pad - 1)
    p_x_c = jnp.clip(p_x, 0, h_pad - 1)
    p_y_c = jnp.clip(p_y, 0, w_pad - 1)

    g_lt = (1 + (q_lt_x - p_x_c)) * (1 + (q_lt_y - p_y_c))
    g_rb = (1 - (q_rb_x - p_x_c)) * (1 - (q_rb_y - p_y_c))
    g_lb = (1 + (q_lt_x - p_x_c)) * (1 - (q_rb_y - p_y_c))
    g_rt = (1 - (q_rb_x - p_x_c)) * (1 + (q_lt_y - p_y_c))

    # --- bilinear gather in channel-last layout ------------------------------
    # TODO(synk): data-dependent gather kept in XLA; no clean Pallas-TPU gather.
    x_flat = x_pad.reshape(b, h_pad * w_pad, c)

    def gather(qx, qy):
        idx = (qx.astype(jnp.int32) * w_pad + qy.astype(jnp.int32))  # (b,h,w,N)
        idx = jnp.broadcast_to(idx.reshape(b, h * w * N, 1), (b, h * w * N, c))
        return jnp.take_along_axis(x_flat, idx, axis=1)              # (b,hwN,c)

    x_q_lt = gather(q_lt_x, q_lt_y)
    x_q_rb = gather(q_rb_x, q_rb_y)
    x_q_lb = gather(q_lt_x, q_rb_y)
    x_q_rt = gather(q_rb_x, q_lt_y)

    gg = lambda a: a.reshape(b, h * w * N, 1)
    x_off = (gg(g_lt) * x_q_lt + gg(g_rb) * x_q_rb
             + gg(g_lb) * x_q_lb + gg(g_rt) * x_q_rt)                # (b,hwN,c)

    # --- final conv (kernel=ks, stride=ks on ks*ks-expanded map) == matmul ---
    xo = x_off.reshape(b * h * w, N * c)                  # pure reshape, no copy
    wd = conv_w.reshape(outc, c, N).transpose(0, 2, 1).reshape(outc, N * c)
    out = matmul_bias(xo, wd.T, jnp.zeros((outc,), jnp.float32))     # bias=None
    return out.reshape(b, h * w, outc)                    # channels-last


# ----------------------------------------------------------------------------
# DMSA forward
# ----------------------------------------------------------------------------
def dmsa_forward(x, params, num_heads):
    b, c, h, w = x.shape
    cph = c // num_heads
    hw = h * w

    # q = DeformConv2d(dim, dim)(x)            -> (b, hw, c) channels-last
    q_ = deform_conv2d(x, params["p_conv_w"], params["p_conv_b"],
                       params["dconv_w"])

    # qkv 1x1 conv: the q chunk is discarded by the module, so only the
    # k,v rows of the weight/bias are ever multiplied.
    x_flat = x.transpose(0, 2, 3, 1).reshape(b * hw, c)
    kv_w = params["qkv_w"][c:].reshape(2 * c, c).T          # (c, 2c)
    kv_b = params["qkv_b"][c:]
    kv = matmul_bias(x_flat, kv_w, kv_b).reshape(b, hw, 2 * c)
    k_ = kv[..., :c]
    v_ = kv[..., c:]

    def to_heads(t):                         # (b, hw, c) -> (b, heads, cph, hw)
        return t.reshape(b, hw, num_heads, cph).transpose(0, 2, 3, 1)

    out_h = attention(to_heads(q_), to_heads(k_), to_heads(v_),
                      params["temperature"])                # (b, heads, cph, hw)

    # 'b head c (h w) -> b (head c) h w', then project_out 1x1 conv
    out_flat = out_h.transpose(0, 3, 1, 2).reshape(b * hw, c)
    out = matmul_bias(out_flat, params["proj_w"].reshape(c, c).T,
                      params["proj_b"])
    return out.reshape(b, h, w, c).transpose(0, 3, 1, 2)    # NCHW


# ----------------------------------------------------------------------------
# Deterministic parameter init (shapes from DMSA/DeformConv2d __init__)
# ----------------------------------------------------------------------------
def init_params(key, dim, num_heads):
    ks = 3
    k = jax.random.split(key, 8)
    return {
        "temperature": jnp.ones((num_heads, 1, 1), jnp.float32),
        "qkv_w": 0.1 * jax.random.normal(k[0], (3 * dim, dim, 1, 1), jnp.float32),
        "qkv_b": 0.1 * jax.random.normal(k[1], (3 * dim,), jnp.float32),
        # p_conv: weight is constant-0 in __init__; bias is the default (random) one
        "p_conv_w": jnp.zeros((2 * ks * ks, dim, ks, ks), jnp.float32),
        "p_conv_b": 0.5 * jax.random.normal(k[2], (2 * ks * ks,), jnp.float32),
        "dconv_w": 0.1 * jax.random.normal(k[3], (dim, dim, ks, ks), jnp.float32),
        "proj_w": 0.1 * jax.random.normal(k[4], (dim, dim, 1, 1), jnp.float32),
        "proj_b": 0.1 * jax.random.normal(k[5], (dim,), jnp.float32),
    }


if __name__ == "__main__":
    dim, num_heads = 4, 2
    b, h, w = 2, 16, 16

    key = jax.random.PRNGKey(0)
    kx, kp = jax.random.split(key)
    params = init_params(kp, dim, num_heads)
    x = jax.random.normal(kx, (b, dim, h, w), jnp.float32)   # NCHW, as PyTorch

    fwd = jax.jit(functools.partial(dmsa_forward, num_heads=num_heads))
    out = jax.block_until_ready(fwd(x, params))
    assert out.shape == (b, dim, h, w), out.shape
    print("KERNEL_OK")
</pallas_src>

<mosaic_0001>
module attributes {stable_mosaic.version = 11 : i64} {
  func.func @_matmul_bias_kernel(%arg0: i32, %arg1: i32, %arg2: i32, %arg3: memref<512x128xbf16, #tpu.memory_space<vmem>>, %arg4: memref<128x128xbf16, #tpu.memory_space<vmem>>, %arg5: memref<1x128xf32, #tpu.memory_space<vmem>>, %arg6: memref<512x128xf32, #tpu.memory_space<vmem>>, %arg7: memref<512x128xf32, #tpu.memory_space<vmem>>) attributes {dimension_semantics = [#tpu.dimension_semantics<parallel>, #tpu.dimension_semantics<parallel>, #tpu.dimension_semantics<arbitrary>], iteration_bounds = array<i64: 1, 1, 1>, scalar_prefetch = 0 : i64, scratch_operands = 1 : i64, tpu.core_type = #tpu.core_type<tc>, window_params = [{transform_indices = @transform_0, window_bounds = array<i64: 512, 128>}, {transform_indices = @transform_1, window_bounds = array<i64: 128, 128>}, {transform_indices = @transform_2, window_bounds = array<i64: 1, 128>}, {transform_indices = @transform_3, window_bounds = array<i64: 512, 128>}]} {
    %c0_i32 = arith.constant 0 : i32
    %0 = arith.cmpi eq, %arg2, %c0_i32 : i32
    %1 = arith.extui %0 : i1 to i32
    %c0_i32_0 = arith.constant 0 : i32
    %2 = arith.cmpi ne, %1, %c0_i32_0 : i32
    scf.if %2 {
      %cst_10 = arith.constant 0.000000e+00 : f32
      %12 = vector.broadcast %cst_10 : f32 to vector<512x128xf32>
      %c0_11 = arith.constant 0 : index
      %c0_12 = arith.constant 0 : index
      %13 = vector.load %arg7[%c0_11, %c0_12] : memref<512x128xf32, #tpu.memory_space<vmem>>, vector<512x128xf32>
      tpu.vector_store %arg7[%c0_11, %c0_12], %12 {strides = array<i32>} : memref<512x128xf32, #tpu.memory_space<vmem>>, vector<512x128xf32>,
    } else {
    }
    %c0 = arith.constant 0 : index
    %c0_1 = arith.constant 0 : index
    %3 = vector.load %arg7[%c0, %c0_1] : memref<512x128xf32, #tpu.memory_space<vmem>>, vector<512x128xf32>
    %c0_2 = arith.constant 0 : index
    %c0_3 = arith.constant 0 : index
    %4 = vector.load %arg3[%c0_2, %c0_3] : memref<512x128xbf16, #tpu.memory_space<vmem>>, vector<512x128xbf16>
    %c0_4 = arith.constant 0 : index
    %c0_5 = arith.constant 0 : index
    %5 = vector.load %arg4[%c0_4, %c0_5] : memref<128x128xbf16, #tpu.memory_space<vmem>>, vector<128x128xbf16>
    %cst = arith.constant dense<0.000000e+00> : vector<512x128xf32>
    %6 = tpu.matmul %4, %5, %cst {dimension_numbers = #tpu.dot_dimension_numbers<[1], [0], [0], [1], [0, 0, 1, 1], [], []>} : vector<512x128xbf16>, vector<128x128xbf16>, vector<512x128xf32> -> vector<512x128xf32>
    %7 = arith.addf %3, %6 : vector<512x128xf32>
    %c0_6 = arith.constant 0 : index
    %c0_7 = arith.constant 0 : index
    %8 = vector.load %arg7[%c0_6, %c0_7] : memref<512x128xf32, #tpu.memory_space<vmem>>, vector<512x128xf32>
    tpu.vector_store %arg7[%c0_6, %c0_7], %7 {strides = array<i32>} : memref<512x128xf32, #tpu.memory_space<vmem>>, vector<512x128xf32>,
    %c0_i32_8 = arith.constant 0 : i32
    %9 = arith.cmpi eq, %arg2, %c0_i32_8 : i32
    %10 = arith.extui %9 : i1 to i32
    %c0_i32_9 = arith.constant 0 : i32
    %11 = arith.cmpi ne, %10, %c0_i32_9 : i32
    scf.if %11 {
      %c0_10 = arith.constant 0 : index
      %c0_11 = arith.constant 0 : index
      %12 = vector.load %arg7[%c0_10, %c0_11] : memref<512x128xf32, #tpu.memory_space<vmem>>, vector<512x128xf32>
      %c0_12 = arith.constant 0 : index
      %c0_13 = arith.constant 0 : index
      %13 = vector.load %arg5[%c0_12, %c0_13] : memref<1x128xf32, #tpu.memory_space<vmem>>, vector<1x128xf32>
      %14 = vector.broadcast %13 : vector<1x128xf32> to vector<512x128xf32>
      %15 = arith.addf %12, %14 : vector<512x128xf32>
      %c0_14 = arith.constant 0 : index
      %c0_15 = arith.constant 0 : index
      %16 = vector.load %arg6[%c0_14, %c0_15] : memref<512x128xf32, #tpu.memory_space<vmem>>, vector<512x128xf32>
      tpu.vector_store %arg6[%c0_14, %c0_15], %15 {strides = array<i32>} : memref<512x128xf32, #tpu.memory_space<vmem>>, vector<512x128xf32>,
    } else {
    }
    return
  }
  func.func @transform_0(%arg0: i32, %arg1: i32, %arg2: i32) -> (i32, i32) {
    %c0_i32 = arith.constant 0 : i32
    return %arg0, %arg2 : i32, i32
  }
  func.func @transform_1(%arg0: i32, %arg1: i32, %arg2: i32) -> (i32, i32) {
    %c0_i32 = arith.constant 0 : i32
    return %arg2, %arg1 : i32, i32
  }
  func.func @transform_2(%arg0: i32, %arg1: i32, %arg2: i32) -> (i32, i32) {
    %c0_i32 = arith.constant 0 : i32
    %c0_i32_0 = arith.constant 0 : i32
    return %c0_i32, %arg1 : i32, i32
  }
  func.func @transform_3(%arg0: i32, %arg1: i32, %arg2: i32) -> (i32, i32) {
    %c0_i32 = arith.constant 0 : i32
    return %arg0, %arg1 : i32, i32
  }
}

module attributes {stable_mosaic.version = 11 : i64} {
  func.func @_attn_kernel(%arg0: i32, %arg1: memref<2xf32, #tpu.memory_space<smem>>, %arg2: memref<1x2x2x256xf32, #tpu.memory_space<vmem>>, %arg3: memref<1x2x2x256xf32, #tpu.memory_space<vmem>>, %arg4: memref<1x2x2x256xf32, #tpu.memory_space<vmem>>, %arg5: memref<1x2x2x256xf32, #tpu.memory_space<vmem>>) attributes {dimension_semantics = [#tpu.dimension_semantics<parallel>], iteration_bounds = array<i64: 2>, scalar_prefetch = 1 : i64, scratch_operands = 0 : i64, tpu.core_type = #tpu.core_type<tc>, window_params = [{transform_indices = @transform_0, window_bounds = array<i64: 1, 2, 2, 256>}, {transform_indices = @transform_1, window_bounds = array<i64: 1, 2, 2, 256>}, {transform_indices = @transform_2, window_bounds = array<i64: 1, 2, 2, 256>}, {transform_indices = @transform_3, window_bounds = array<i64: 1, 2, 2, 256>}]} {
    %c0 = arith.constant 0 : index
    %c0_0 = arith.constant 0 : index
    %c0_1 = arith.constant 0 : index
    %c0_2 = arith.constant 0 : index
    %0 = vector.load %arg2[%c0, %c0_0, %c0_1, %c0_2] : memref<1x2x2x256xf32, #tpu.memory_space<vmem>>, vector<1x2x2x256xf32>
    %1 = vector.shape_cast %0 : vector<1x2x2x256xf32> to vector<2x2x256xf32>
    %c0_3 = arith.constant 0 : index
    %c0_4 = arith.constant 0 : index
    %c0_5 = arith.constant 0 : index
    %c0_6 = arith.constant 0 : index
    %2 = vector.load %arg3[%c0_3, %c0_4, %c0_5, %c0_6] : memref<1x2x2x256xf32, #tpu.memory_space<vmem>>, vector<1x2x2x256xf32>
    %3 = vector.shape_cast %2 : vector<1x2x2x256xf32> to vector<2x2x256xf32>
    %c0_7 = arith.constant 0 : index
    %c0_8 = arith.constant 0 : index
    %c0_9 = arith.constant 0 : index
    %c0_10 = arith.constant 0 : index
    %4 = vector.load %arg4[%c0_7, %c0_8, %c0_9, %c0_10] : memref<1x2x2x256xf32, #tpu.memory_space<vmem>>, vector<1x2x2x256xf32>
    %5 = vector.shape_cast %4 : vector<1x2x2x256xf32> to vector<2x2x256xf32>
    %6 = arith.mulf %1, %1 : vector<2x2x256xf32>
    %cst = arith.constant dense<0.000000e+00> : vector<2x2xf32>
    %7 = vector.multi_reduction <add>, %6, %cst [2] : vector<2x2x256xf32> to vector<2x2xf32>
    %8 = vector.shape_cast %7 : vector<2x2xf32> to vector<2x2x1xf32>
    %cst_11 = arith.constant 1.000000e-24 : f32
    %9 = vector.broadcast %cst_11 : f32 to vector<2x2x1xf32>
    %10 = arith.maximumf %8, %9 : vector<2x2x1xf32>
    %11 = math.rsqrt %10 : vector<2x2x1xf32>
    %12 = vector.broadcast %11 : vector<2x2x1xf32> to vector<2x2x256xf32>
    %13 = arith.mulf %1, %12 : vector<2x2x256xf32>
    %14 = arith.mulf %3, %3 : vector<2x2x256xf32>
    %cst_12 = arith.constant dense<0.000000e+00> : vector<2x2xf32>
    %15 = vector.multi_reduction <add>, %14, %cst_12 [2] : vector<2x2x256xf32> to vector<2x2xf32>
    %16 = vector.shape_cast %15 : vector<2x2xf32> to vector<2x2x1xf32>
    %cst_13 = arith.constant 1.000000e-24 : f32
    %17 = vector.broadcast %cst_13 : f32 to vector<2x2x1xf32>
    %18 = arith.maximumf %16, %17 : vector<2x2x1xf32>
    %19 = math.rsqrt %18 : vector<2x2x1xf32>
    %20 = vector.broadcast %19 : vector<2x2x1xf32> to vector<2x2x256xf32>
    %21 = arith.mulf %3, %20 : vector<2x2x256xf32>
    "tpu.trace_start"() <{level = 10 : i32, message = "hce,hde->hcd"}> : () -> ()
    %cst_14 = arith.constant dense<0.000000e+00> : vector<2x2x2xf32>
    %22 = tpu.matmul %13, %21, %cst_14 {dimension_numbers = #tpu.dot_dimension_numbers<[2], [2], [1], [1], [0, 0, 0, 1, 1, 1], [0], [0]>} : vector<2x2x256xf32>, vector<2x2x256xf32>, vector<2x2x2xf32> -> vector<2x2x2xf32>
    "tpu.trace_stop"() : () -> ()
    %23 = tpu.iota {dimensions = array<i32: 0>} : vector<2x2x2xi32>
    %c0_15 = arith.constant 0 : index
    %24 = memref.load %arg1[%c0_15] : memref<2xf32, #tpu.memory_space<smem>>
    %25 = vector.broadcast %24 : f32 to vector<2x2x2xf32>
    %c1_i32 = arith.constant 1 : i32
    %26 = vector.broadcast %c1_i32 : i32 to vector<2x2x2xi32>
    %27 = arith.cmpi eq, %23, %26 : vector<2x2x2xi32>
    %c1 = arith.constant 1 : index
    %28 = memref.load %arg1[%c1] : memref<2xf32, #tpu.memory_space<smem>>
    %29 = vector.broadcast %28 : f32 to vector<2x2x2xf32>
    %30 = arith.select %27, %29, %25 : vector<2x2x2xi1>, vector<2x2x2xf32>
    %31 = arith.mulf %22, %30 : vector<2x2x2xf32>
    %cst_16 = arith.constant dense<0xFF800000> : vector<2x2xf32>
    %32 = vector.multi_reduction <maximumf>, %31, %cst_16 [2] : vector<2x2x2xf32> to vector<2x2xf32>
    %33 = vector.shape_cast %32 : vector<2x2xf32> to vector<2x2x1xf32>
    %34 = vector.broadcast %33 : vector<2x2x1xf32> to vector<2x2x2xf32>
    %35 = arith.subf %31, %34 : vector<2x2x2xf32>
    %36 = math.exp %35 : vector<2x2x2xf32>
    %cst_17 = arith.constant dense<0.000000e+00> : vector<2x2xf32>
    %37 = vector.multi_reduction <add>, %36, %cst_17 [2] : vector<2x2x2xf32> to vector<2x2xf32>
    %38 = vector.shape_cast %37 : vector<2x2xf32> to vector<2x2x1xf32>
    %39 = tpu.reciprocal %38 {approx = true} : vector<2x2x1xf32> -> vector<2x2x1xf32>
    %40 = vector.broadcast %39 : vector<2x2x1xf32> to vector<2x2x2xf32>
    %41 = arith.mulf %36, %40 : vector<2x2x2xf32>
    "tpu.trace_start"() <{level = 10 : i32, message = "hcd,hde->hce"}> : () -> ()
    %cst_18 = arith.constant dense<0.000000e+00> : vector<2x2x256xf32>
    %42 = tpu.matmul %41, %5, %cst_18 {dimension_numbers = #tpu.dot_dimension_numbers<[2], [1], [1], [2], [0, 0, 0, 1, 1, 2], [0], [0]>} : vector<2x2x2xf32>, vector<2x2x256xf32>, vector<2x2x256xf32> -> vector<2x2x256xf32>
    "tpu.trace_stop"() : () -> ()
    %c0_19 = arith.constant 0 : index
    %c0_20 = arith.constant 0 : index
    %c0_21 = arith.constant 0 : index
    %c0_22 = arith.constant 0 : index
    %43 = vector.load %arg5[%c0_19, %c0_20, %c0_21, %c0_22] : memref<1x2x2x256xf32, #tpu.memory_space<vmem>>, vector<1x2x2x256xf32>
    %44 = vector.shape_cast %43 : vector<1x2x2x256xf32> to vector<2x2x256xf32>
    %45 = vector.shape_cast %42 : vector<2x2x256xf32> to vector<1x2x2x256xf32>
    tpu.vector_store %arg5[%c0_19, %c0_20, %c0_21, %c0_22], %45 {strides = array<i32>} : memref<1x2x2x256xf32, #tpu.memory_space<vmem>>, vector<1x2x2x256xf32>,
    return
  }
  func.func @transform_0(%arg0: i32, %arg1: memref<2xf32, #tpu.memory_space<smem>>) -> (i32, i32, i32, i32) {
    %c0_i32 = arith.constant 0 : i32
    %c0_i32_0 = arith.constant 0 : i32
    %c0_i32_1 = arith.constant 0 : i32
    %c0_i32_2 = arith.constant 0 : i32
    return %arg0, %c0_i32, %c0_i32_0, %c0_i32_1 : i32, i32, i32, i32
  }
  func.func @transform_1(%arg0: i32, %arg1: memref<2xf32, #tpu.memory_space<smem>>) -> (i32, i32, i32, i32) {
    %c0_i32 = arith.constant 0 : i32
    %c0_i32_0 = arith.constant 0 : i32
    %c0_i32_1 = arith.constant 0 : i32
    %c0_i32_2 = arith.constant 0 : i32
    return %arg0, %c0_i32, %c0_i32_0, %c0_i32_1 : i32, i32, i32, i32
  }
  func.func @transform_2(%arg0: i32, %arg1: memref<2xf32, #tpu.memory_space<smem>>) -> (i32, i32, i32, i32) {
    %c0_i32 = arith.constant 0 : i32
    %c0_i32_0 = arith.constant 0 : i32
    %c0_i32_1 = arith.constant 0 : i32
    %c0_i32_2 = arith.constant 0 : i32
    return %arg0, %c0_i32, %c0_i32_0, %c0_i32_1 : i32, i32, i32, i32
  }
  func.func @transform_3(%arg0: i32, %arg1: memref<2xf32, #tpu.memory_space<smem>>) -> (i32, i32, i32, i32) {
    %c0_i32 = arith.constant 0 : i32
    %c0_i32_0 = arith.constant 0 : i32
    %c0_i32_1 = arith.constant 0 : i32
    %c0_i32_2 = arith.constant 0 : i32
    return %arg0, %c0_i32, %c0_i32_0, %c0_i32_1 : i32, i32, i32, i32
  }
}

</mosaic_0001>

<bundles_post_ra>
// kernel: tile.8
= control target key start
LH: loop header
LB: loop body
LE: loop exit
PB: predicated region body
PF: predicated region fallthrough
CT: control target
= control target key end

     0   :  { %s22_s0 = inlined_call_operand.vmem [shape: f32[3], index: 0, kind: input, shape index: {}]   ;;  %s23_s1 = inlined_call_operand.vmem [shape: f32[3,3], index: 1, kind: output, shape index: {}]  }
   0x1   :  { %v4_v0 = vld [vmem:[%s22_s0] ss:$0 sm:$0xff] }
   0x2   :  { %5 = vst [vmem:[%s23_s1] sm:$0xf] %v4_v0 }

// kernel: mul.33
= control target key start
LH: loop header
LB: loop body
LE: loop exit
PB: predicated region body
PF: predicated region fallthrough
CT: control target
= control target key end

     0   :  { %vm6_vm0 = vcmask 1041409   ;;  %vm10_vm1 = vcmask 1042434   ;;  %vm14_vm2 = vcmask 1043459   ;;  %vm48_vm3 = vcmask 7168   ;;  %s3686_s11 = smov 127   ;;  %s3687_s28 = smov 125   ;;  %s6023_s0 = inlined_call_operand.vmem [shape: f32[2,16,16,9], index: 0, kind: input, shape index: {}]   ;;  %s6024_s1 = inlined_call_operand.hbm [shape: f32[2,2304], index: 1, kind: output, shape index: {}]  }
   0x1   :  { %v2996_v0 = vld [vmem:[%s6023_s0 + $0x47] sm:$0x1]   ;;  %v3012_v11 = vld [vmem:[%s6023_s0 + $0x55] sm:$0x1]   ;;  %vm131_vm4 = vcmask 23552   ;;  %vm90_vm5 = vcmask 15360  }
   0x2   :  { %v2997_v1 = vld [vmem:[%s6023_s0 + $0x146] sm:$0x2]   ;;  %v3013_v14 = vld [vmem:[%s6023_s0 + $0x154] sm:$0x2]   ;;  %v3004_v26 = vld [vmem:[%s6023_s0 + $0xe] sm:$0x1]  }
   0x3   :  { %v2998_v2 = vld [vmem:[%s6023_s0 + $0xc5] sm:$0x4]   ;;  %v25_v4 = vsel %vm6_vm0, %v2997_v1, %v2996_v0  ;;  %v3014_v15 = vld [vmem:[%s6023_s0 + $0xd3] sm:$0x4]   ;;  %v108_v18 = vsel %vm6_vm0, %v3013_v14, %v3012_v11  ;;  %v3005_v29 = vld [vmem:[%s6023_s0 + $0x10d] sm:$0x2]  }
   0x4   :  { %v2999_v3 = vld [vmem:[%s6023_s0 + $0x1c4] sm:$0x8]   ;;  %v29_v8 = vsel %vm10_vm1, %v2998_v2, %v25_v4  ;;  %v3015_v16 = vld [vmem:[%s6023_s0 + $0x1d2] sm:$0x8]   ;;  %v112_v23 = vsel %vm10_vm1, %v3014_v15, %v108_v18  ;;  %v3006_v30 = vld [vmem:[%s6023_s0 + $0x8c] sm:$0x4]   ;;  %v67_v33 = vsel %vm6_vm0, %v3005_v29, %v3004_v26 }
   0x5   :  { %v3000_v5 = vld [vmem:[%s6023_s0 + $0x47] sm:$0x1]   ;;  %v33_v12 = vsel %vm14_vm2, %v2999_v3, %v29_v8  ;;  %v3016_v19 = vld [vmem:[%s6023_s0 + $0x55] sm:$0x1]   ;;  %v116_v27 = vsel %vm14_vm2, %v3015_v16, %v112_v23  ;;  %v3007_v31 = vld [vmem:[%s6023_s0 + $0x18b] sm:$0x8]   ;;  %v71_v38 = vsel %vm10_vm1, %v3006_v30, %v67_v33 }
   0x6   :  { %v3001_v6 = vld [vmem:[%s6023_s0 + $0x146] sm:$0x2]   ;;  %v3017_v20 = vld [vmem:[%s6023_s0 + $0x154] sm:$0x2]   ;;  %v3008_v34 = vld [vmem:[%s6023_s0 + $0xe] sm:$0x1]   ;;  %v75_v42 = vsel %vm14_vm2, %v3007_v31, %v71_v38 }
   0x7   :  { %v3002_v7 = vld [vmem:[%s6023_s0 + $0xc5] sm:$0x4]   ;;  %v39_v9 = vsel %vm6_vm0, %v3001_v6, %v3000_v5  ;;  %v3018_v21 = vld [vmem:[%s6023_s0 + $0xd3] sm:$0x4]   ;;  %v122_v24 = vsel %vm6_vm0, %v3017_v20, %v3016_v19  ;;  %v3009_v35 = vld [vmem:[%s6023_s0 + $0x10d] sm:$0x2]  }
   0x8   :  { %v3003_v10 = vld [vmem:[%s6023_s0 + $0x1c4] sm:$0x8]   ;;  %v43_v13 = vsel %vm10_vm1, %v3002_v7, %v39_v9  ;;  %v3019_v25 = vld [vmem:[%s6023_s0 + $0x1d2] sm:$0x8]   ;;  %v126_v28 = vsel %vm10_vm1, %v3018_v21, %v122_v24  ;;  %v3010_v36 = vld [vmem:[%s6023_s0 + $0x8c] sm:$0x4]   ;;  %v81_v39 = vsel %vm6_vm0, %v3009_v35, %v3008_v34 }
   0x9   :  { %v47_v17 = vsel %vm14_vm2, %v3003_v10, %v43_v13  ;;  %v130_v32 = vsel %vm14_vm2, %v3019_v25, %v126_v28  ;;  %v3011_v40 = vld [vmem:[%s6023_s0 + $0x18b] sm:$0x8]   ;;  %v3020_v41 = vld [vmem:[%s6023_s0 + $0x1c] sm:$0x1]   ;;  %v85_v43 = vsel %vm10_vm1, %v3010_v36, %v81_v39  ;;  %vm173_vm6 = vcmask 31744   ;;  %s3688_s16 = smov 126  }
   0xa   :  { %v49_v22 = vsel %vm48_vm3, %v47_v17, %v33_v12  ;;  %v132_v37 = vsel %vm131_vm4, %v130_v32, %v116_v27  ;;  %v3021_v44 = vld [vmem:[%s6023_s0 + $0x11b] sm:$0x2]   ;;  %v89_v47 = vsel %vm14_vm2, %v3011_v40, %v85_v43  ;;  %v3028_v56 = vld [vmem:[%s6023_s0 + $0xe3] sm:$0x1]   ;;  %vm177_vm7 = vcmask 39936   ;;  %s3689_s2 = smov 124  }
   0xb   :  { %50 = vrot.lane.b32.xlu0 %v49_v22, %s3686_s11  ;;  %133 = vrot.lane.b32.xlu1 %v132_v37, %s3687_s28  ;;  %v3022_v45 = vld [vmem:[%s6023_s0 + $0x9a] sm:$0x4]   ;;  %v150_v48 = vsel %vm6_vm0, %v3021_v44, %v3020_v41  ;;  %v91_v52 = vsel %vm90_vm5, %v89_v47, %v75_v42  ;;  %v3029_v59 = vld [vmem:[%s6023_s0 + $0x1e2] sm:$0x2]   ;;  %vm135_vm8 = vcmask 48128   ;;  %vm94_vm9 = vcmask 56320  }
   0xc   :  { %v3023_v46 = vld [vmem:[%s6023_s0 + $0x199] sm:$0x8]   ;;  %v154_v53 = vsel %vm10_vm1, %v3022_v45, %v150_v48  ;;  %v3030_v60 = vld [vmem:[%s6023_s0 + $0x61] sm:$0x4]   ;;  %v192_v62 = vsel %vm6_vm0, %v3029_v59, %v3028_v56  ;;  %v3036_v9 = vld [vmem:[%s6023_s0 + $0xaa] sm:$0x1]  }
   0xd   :  { %v3024_v49 = vld [vmem:[%s6023_s0 + $0x1c] sm:$0x1]   ;;  %v158_v57 = vsel %vm14_vm2, %v3023_v46, %v154_v53  ;;  %v3031_v63 = vld [vmem:[%s6023_s0 + $0x160] sm:$0x8]   ;;  %v196_v3 = vsel %vm10_vm1, %v3030_v60, %v192_v62  ;;  %v3037_v10 = vld [vmem:[%s6023_s0 + $0x1a9] sm:$0x2]  }
   0xe   :  { %v3025_v50 = vld [vmem:[%s6023_s0 + $0x11b] sm:$0x2]   ;;  %v3032_v0 = vld [vmem:[%s6023_s0 + $0x63] sm:$0x1]   ;;  %v200_v7 = vsel %vm14_vm2, %v3031_v63, %v196_v3  ;;  %v3038_v11 = vld [vmem:[%s6023_s0 + $0x28] sm:$0x4]   ;;  %v234_v13 = vsel %vm6_vm0, %v3037_v10, %v3036_v9 }
   0xf   :  { %v3026_v51 = vld [vmem:[%s6023_s0 + $0x9a] sm:$0x4]   ;;  %v164_v54 = vsel %vm6_vm0, %v3025_v50, %v3024_v49  ;;  %92 = vrot.lane.b32.xlu0 %v91_v52, %s3688_s16  ;;  %v3033_v1 = vld [vmem:[%s6023_s0 + $0x162] sm:$0x2]   ;;  %v3039_v14 = vld [vmem:[%s6023_s0 + $0x127] sm:$0x8]   ;;  %v238_v18 = vsel %vm10_vm1, %v3038_v11, %v234_v13 }
  0x10   :  { %v3027_v55 = vld [vmem:[%s6023_s0 + $0x199] sm:$0x8]   ;;  %v168_v58 = vsel %vm10_vm1, %v3026_v51, %v164_v54  ;;  %v206_v4 = vsel %vm6_vm0, %v3033_v1, %v3032_v0  ;;  %v3034_v5 = vld [vmem:[%s6023_s0 + $0xe1] sm:$0x4]   ;;  %v3040_v15 = vld [vmem:[%s6023_s0 + $0x2a] sm:$0x1]   ;;  %v242_v22 = vsel %vm14_vm2, %v3039_v14, %v238_v18 }
  0x11   :  { %v172_v61 = vsel %vm14_vm2, %v3027_v55, %v168_v58  ;;  %v3035_v6 = vld [vmem:[%s6023_s0 + $0x1e0] sm:$0x8]   ;;  %v210_v8 = vsel %vm10_vm1, %v3034_v5, %v206_v4  ;;  %v3041_v16 = vld [vmem:[%s6023_s0 + $0x129] sm:$0x2]   ;;  %s3690_s19 = smov 123   ;;  %vm52_vm10 = vcmask 64512  }
  0x12   :  { %v174_v2 = vsel %vm173_vm6, %v172_v61, %v158_v57  ;;  %v214_v12 = vsel %vm14_vm2, %v3035_v6, %v210_v8  ;;  %v248_v19 = vsel %vm6_vm0, %v3041_v16, %v3040_v15  ;;  %v3042_v20 = vld [vmem:[%s6023_s0 + $0xa8] sm:$0x4]   ;;  %v3044_v24 = vld [vmem:[%s6023_s0 + $0x71] sm:$0x1]   ;;  %s3691_s7 = smov 122   ;;  %s3692_s26 = smov 121  }
  0x13   :  { %175 = vrot.lane.b32.xlu1 %v174_v2, %s3689_s2  ;;  %v216_v17 = vsel %vm177_vm7, %v214_v12, %v200_v7  ;;  %v3043_v21 = vld [vmem:[%s6023_s0 + $0x1a7] sm:$0x8]   ;;  %v252_v23 = vsel %vm10_vm1, %v3042_v20, %v248_v19  ;;  %v3045_v25 = vld [vmem:[%s6023_s0 + $0x170] sm:$0x2]   ;;  %v3052_v39 = vld [vmem:[%s6023_s0 + $0x38] sm:$0x1]  }
  0x14   :  { %217 = vrot.lane.b32.xlu0 %v216_v17, %s3690_s19  ;;  %v3046_v26 = vld [vmem:[%s6023_s0 + $0xef] sm:$0x4]   ;;  %v256_v27 = vsel %vm14_vm2, %v3043_v21, %v252_v23  ;;  %v276_v28 = vsel %vm6_vm0, %v3045_v25, %v3044_v24  ;;  %v3053_v40 = vld [vmem:[%s6023_s0 + $0x137] sm:$0x2]   ;;  %v3060_v52 = vld [vmem:[%s6023_s0 + $0x7f] sm:$0x1]  }
  0x15   :  { %v3047_v29 = vld [vmem:[%s6023_s0 + $0x1ee] sm:$0x8]   ;;  %v258_v32 = vsel %vm135_vm8, %v256_v27, %v242_v22  ;;  %v280_v33 = vsel %vm10_vm1, %v3046_v26, %v276_v28  ;;  %v3054_v41 = vld [vmem:[%s6023_s0 + $0xb6] sm:$0x4]   ;;  %v318_v43 = vsel %vm6_vm0, %v3053_v40, %v3052_v39  ;;  %v3061_v55 = vld [vmem:[%s6023_s0 + $0x17e] sm:$0x2]  }
  0x16   :  { %v3048_v30 = vld [vmem:[%s6023_s0 + $0xf1] sm:$0x1]   ;;  %v284_v37 = vsel %vm14_vm2, %v3047_v29, %v280_v33  ;;  %v3055_v44 = vld [vmem:[%s6023_s0 + $0x1b5] sm:$0x8]   ;;  %v322_v48 = vsel %vm10_vm1, %v3054_v41, %v318_v43  ;;  %v3062_v56 = vld [vmem:[%s6023_s0 + $0xfd] sm:$0x4]   ;;  %v360_v59 = vsel %vm6_vm0, %v3061_v55, %v3060_v52 }
  0x17   :  { %v3049_v31 = vld [vmem:[%s6023_s0 + $0x1f0] sm:$0x2]   ;;  %259 = vrot.lane.b32.xlu1 %v258_v32, %s3691_s7  ;;  %v3056_v45 = vld [vmem:[%s6023_s0 + $0xb8] sm:$0x1]   ;;  %v326_v53 = vsel %vm14_vm2, %v3055_v44, %v322_v48  ;;  %v3063_v57 = vld [vmem:[%s6023_s0 + $0x1fc] sm:$0x8]   ;;  %v364_v63 = vsel %vm10_vm1, %v3062_v56, %v360_v59 }
  0x18   :  { %v290_v34 = vsel %vm6_vm0, %v3049_v31, %v3048_v30  ;;  %v3050_v35 = vld [vmem:[%s6023_s0 + $0x6f] sm:$0x4]   ;;  %v3057_v46 = vld [vmem:[%s6023_s0 + $0x1b7] sm:$0x2]   ;;  %v3064_v60 = vld [vmem:[%s6023_s0 + $0x46] sm:$0x1]   ;;  %v368_v4 = vsel %vm14_vm2, %v3063_v57, %v364_v63 }
  0x19   :  { %v3051_v36 = vld [vmem:[%s6023_s0 + $0x16e] sm:$0x8]   ;;  %v294_v38 = vsel %vm10_vm1, %v3050_v35, %v290_v34  ;;  %v332_v49 = vsel %vm6_vm0, %v3057_v46, %v3056_v45  ;;  %v3058_v50 = vld [vmem:[%s6023_s0 + $0x36] sm:$0x4]   ;;  %v3065_v61 = vld [vmem:[%s6023_s0 + $0x145] sm:$0x2]  }
  0x1a   :  { %v298_v42 = vsel %vm14_vm2, %v3051_v36, %v294_v38  ;;  %v3059_v51 = vld [vmem:[%s6023_s0 + $0x135] sm:$0x8]   ;;  %v336_v54 = vsel %vm10_vm1, %v3058_v50, %v332_v49  ;;  %v381_v0 = vsel %vm6_vm0, %v3065_v61, %v3064_v60  ;;  %v3066_v1 = vld [vmem:[%s6023_s0 + $0xc4] sm:$0x4]   ;;  %v3068_v3 = vld [vmem:[%s6023_s0 + $0xd] sm:$0x1]  }
  0x1b   :  { %v300_v47 = vsel %vm94_vm9, %v298_v42, %v284_v37  ;;  %v340_v58 = vsel %vm14_vm2, %v3059_v51, %v336_v54  ;;  %v3067_v2 = vld [vmem:[%s6023_s0 + $0x1c3] sm:$0x8]   ;;  %s3693_s14 = smov 120   ;;  %v385_v5 = vsel %vm10_vm1, %v3066_v1, %v381_v0  ;;  %v3069_v6 = vld [vmem:[%s6023_s0 + $0x10c] sm:$0x2]   ;;  %s3694_s21 = smov 119  }
  0x1c   :  { %301 = vrot.lane.b32.xlu0 %v300_v47, %s3692_s26  ;;  %v342_v62 = vsel %vm52_vm10, %v340_v58, %v326_v53  ;;  %v3070_v7 = vld [vmem:[%s6023_s0 + $0x8b] sm:$0x4]   ;;  %v389_v9 = vsel %vm14_vm2, %v3067_v2, %v385_v5  ;;  %v402_v10 = vsel %vm6_vm0, %v3069_v6, %v3068_v3  ;;  %v3072_v11 = vld [vmem:[%s6023_s0 + $0x54] sm:$0x1]   ;;  %v3076_v17 = vld [vmem:[%s6023_s0 + $0x1b] sm:$0x1]  }
  0x1d   :  { %343 = vrot.lane.b32.xlu1 %v342_v62, %s3693_s14  ;;  %v3071_v8 = vld [vmem:[%s6023_s0 + $0x18a] sm:$0x8]   ;;  %v3073_v12 = vld [vmem:[%s6023_s0 + $0x153] sm:$0x2]   ;;  %v406_v13 = vsel %vm10_vm1, %v3070_v7, %v402_v10  ;;  %v3077_v20 = vld [vmem:[%s6023_s0 + $0x11a] sm:$0x2]  }
  0x1e   :  { %v422_v14 = vsel %vm6_vm0, %v3073_v12, %v3072_v11  ;;  %v3074_v15 = vld [vmem:[%s6023_s0 + $0xd2] sm:$0x4]   ;;  %v410_v18 = vsel %vm14_vm2, %v3071_v8, %v406_v13  ;;  %v3078_v21 = vld [vmem:[%s6023_s0 + $0x99] sm:$0x4]   ;;  %s3695_s9 = smov 118   ;;  %v443_v23 = vsel %vm6_vm0, %v3077_v20, %v3076_v17  ;;  %s3696_s14 = smov 117  }
  0x1f   :  { %v3075_v16 = vld [vmem:[%s6023_s0 + $0x1d1] sm:$0x8]   ;;  %v426_v19 = vsel %vm10_vm1, %v3074_v15, %v422_v14  ;;  %v3079_v22 = vld [vmem:[%s6023_s0 + $0x198] sm:$0x8]   ;;  %v3080_v24 = vld [vmem:[%s6023_s0 + $0x62] sm:$0x1]   ;;  %v447_v27 = vsel %vm10_vm1, %v3078_v21, %v443_v23 }
  0x20   :  { %369 = vrot.lane.b32.xlu0 %v368_v4, %s3694_s21  ;;  %v3081_v25 = vld [vmem:[%s6023_s0 + $0x161] sm:$0x2]   ;;  %v430_v26 = vsel %vm14_vm2, %v3075_v16, %v426_v19  ;;  %v3084_v30 = vld [vmem:[%s6023_s0 + $0x29] sm:$0x1]   ;;  %v451_v31 = vsel %vm14_vm2, %v3079_v22, %v447_v27  ;;  %v3088_v38 = vld [vmem:[%s6023_s0 + $0xf0] sm:$0x1]  }
  0x21   :  { %390 = vrot.lane.b32.xlu1 %v389_v9, %s3695_s9  ;;  %v464_v28 = vsel %vm6_vm0, %v3081_v25, %v3080_v24  ;;  %v3082_v29 = vld [vmem:[%s6023_s0 + $0xe0] sm:$0x4]   ;;  %v3085_v34 = vld [vmem:[%s6023_s0 + $0x128] sm:$0x2]   ;;  %v3089_v39 = vld [vmem:[%s6023_s0 + $0x1ef] sm:$0x2]  }
  0x22   :  { %v468_v32 = vsel %vm10_vm1, %v3082_v29, %v464_v28  ;;  %v3083_v33 = vld [vmem:[%s6023_s0 + $0x1df] sm:$0x8]   ;;  %v3086_v35 = vld [vmem:[%s6023_s0 + $0xa7] sm:$0x4]   ;;  %v485_v36 = vsel %vm6_vm0, %v3085_v34, %v3084_v30  ;;  %s3697_s2 = smov 116   ;;  %v506_v41 = vsel %vm6_vm0, %v3089_v39, %v3088_v38  ;;  %s3698_s7 = smov 115  }
  0x23   :  { %v3087_v37 = vld [vmem:[%s6023_s0 + $0x1a6] sm:$0x8]   ;;  %v489_v40 = vsel %vm10_vm1, %v3086_v35, %v485_v36  ;;  %v3090_v42 = vld [vmem:[%s6023_s0 + $0x6e] sm:$0x4]   ;;  %v3092_v43 = vld [vmem:[%s6023_s0 + $0xb7] sm:$0x1]   ;;  %v472_v44 = vsel %vm14_vm2, %v3083_v33, %v468_v32 }
  0x24   :  { %411 = vrot.lane.b32.xlu0 %v410_v18, %s3696_s14  ;;  %v3093_v45 = vld [vmem:[%s6023_s0 + $0x1b6] sm:$0x2]   ;;  %v493_v47 = vsel %vm14_vm2, %v3087_v37, %v489_v40  ;;  %v510_v48 = vsel %vm10_vm1, %v3090_v42, %v506_v41  ;;  %v3091_v49 = vld [vmem:[%s6023_s0 + $0x16d] sm:$0x8]   ;;  %v3096_v51 = vld [vmem:[%s6023_s0 + $0x7e] sm:$0x1]  }
  0x25   :  { %431 = vrot.lane.b32.xlu1 %v430_v26, %s3697_s2  ;;  %v3094_v46 = vld [vmem:[%s6023_s0 + $0x35] sm:$0x4]   ;;  %v527_v50 = vsel %vm6_vm0, %v3093_v45, %v3092_v43  ;;  %v3097_v52 = vld [vmem:[%s6023_s0 + $0x17d] sm:$0x2]   ;;  %v3100_v57 = vld [vmem:[%s6023_s0 + $0x45] sm:$0x1]   ;;  %v514_v60 = vsel %vm14_vm2, %v3091_v49, %v510_v48 }
  0x26   :  { %v531_v53 = vsel %vm10_vm1, %v3094_v46, %v527_v50  ;;  %v3095_v54 = vld [vmem:[%s6023_s0 + $0x134] sm:$0x8]   ;;  %v548_v55 = vsel %vm6_vm0, %v3097_v52, %v3096_v51  ;;  %v3098_v56 = vld [vmem:[%s6023_s0 + $0xfc] sm:$0x4]   ;;  %s3699_s24 = smov 114   ;;  %s3700_s29 = smov 113  }
  0x27   :  { %v3101_v58 = vld [vmem:[%s6023_s0 + $0x144] sm:$0x2]   ;;  %v3104_v62 = vld [vmem:[%s6023_s0 + $0xc] sm:$0x1]   ;;  %v535_v0 = vsel %vm14_vm2, %v3095_v54, %v531_v53  ;;  %v552_v1 = vsel %vm10_vm1, %v3098_v56, %v548_v55  ;;  %v3099_v2 = vld [vmem:[%s6023_s0 + $0x1fb] sm:$0x8]  }
  0x28   :  { %452 = vrot.lane.b32.xlu0 %v451_v31, %s3698_s7  ;;  %v3102_v59 = vld [vmem:[%s6023_s0 + $0xc3] sm:$0x4]   ;;  %v569_v61 = vsel %vm6_vm0, %v3101_v58, %v3100_v57  ;;  %v3105_v63 = vld [vmem:[%s6023_s0 + $0x10b] sm:$0x2]   ;;  %v3108_v3 = vld [vmem:[%s6023_s0 + $0x53] sm:$0x1]   ;;  %v556_v13 = vsel %vm14_vm2, %v3099_v2, %v552_v1 }
  0x29   :  { %473 = vrot.lane.b32.xlu1 %v472_v44, %s3699_s24  ;;  %v573_v4 = vsel %vm10_vm1, %v3102_v59, %v569_v61  ;;  %v3103_v5 = vld [vmem:[%s6023_s0 + $0x1c2] sm:$0x8]   ;;  %v590_v6 = vsel %vm6_vm0, %v3105_v63, %v3104_v62  ;;  %v3106_v7 = vld [vmem:[%s6023_s0 + $0x8a] sm:$0x4]   ;;  %v3109_v8 = vld [vmem:[%s6023_s0 + $0x152] sm:$0x2]  }
  0x2a   :  { %s3701_s15 = smov 112   ;;  %v610_v9 = vsel %vm6_vm0, %v3109_v8, %v3108_v3  ;;  %v3110_v10 = vld [vmem:[%s6023_s0 + $0xd1] sm:$0x4]   ;;  %v3112_v11 = vld [vmem:[%s6023_s0 + $0x1a] sm:$0x1]   ;;  %s3702_s22 = smov 111   ;;  %v577_v15 = vsel %vm14_vm2, %v3103_v5, %v573_v4  ;;  %v594_v16 = vsel %vm10_vm1, %v3106_v7, %v590_v6 }
  0x2b   :  { %v3113_v12 = vld [vmem:[%s6023_s0 + $0x119] sm:$0x2]   ;;  %v3116_v14 = vld [vmem:[%s6023_s0 + $0x61] sm:$0x1]   ;;  %v3107_v17 = vld [vmem:[%s6023_s0 + $0x189] sm:$0x8]   ;;  %v614_v19 = vsel %vm10_vm1, %v3110_v10, %v610_v9 }
  0x2c   :  { %494 = vrot.lane.b32.xlu0 %v493_v47, %s3700_s29  ;;  %v3117_v18 = vld [vmem:[%s6023_s0 + $0x160] sm:$0x2]   ;;  %v3111_v20 = vld [vmem:[%s6023_s0 + $0x1d0] sm:$0x8]   ;;  %v631_v21 = vsel %vm6_vm0, %v3113_v12, %v3112_v11  ;;  %v3114_v22 = vld [vmem:[%s6023_s0 + $0x98] sm:$0x4]   ;;  %v598_v27 = vsel %vm14_vm2, %v3107_v17, %v594_v16 }
  0x2d   :  { %515 = vrot.lane.b32.xlu1 %v514_v60, %s3701_s15  ;;  %s3703_s4 = smov 110   ;;  %v652_v23 = vsel %vm6_vm0, %v3117_v18, %v3116_v14  ;;  %v3118_v24 = vld [vmem:[%s6023_s0 + $0xdf] sm:$0x4]   ;;  %v3120_v25 = vld [vmem:[%s6023_s0 + $0x28] sm:$0x1]   ;;  %s3704_s11 = smov 109   ;;  %v618_v30 = vsel %vm14_vm2, %v3111_v20, %v614_v19  ;;  %v635_v31 = vsel %vm10_vm1, %v3114_v22, %v631_v21 }
  0x2e   :  { %v3121_v26 = vld [vmem:[%s6023_s0 + $0x127] sm:$0x2]   ;;  %v3124_v28 = vld [vmem:[%s6023_s0 + $0xef] sm:$0x1]   ;;  %v3115_v32 = vld [vmem:[%s6023_s0 + $0x197] sm:$0x8]   ;;  %v656_v33 = vsel %vm10_vm1, %v3118_v24, %v652_v23 }
  0x2f   :  { %v3125_v29 = vld [vmem:[%s6023_s0 + $0x1ee] sm:$0x2]   ;;  %v3119_v34 = vld [vmem:[%s6023_s0 + $0x1de] sm:$0x8]   ;;  %v673_v35 = vsel %vm6_vm0, %v3121_v26, %v3120_v25  ;;  %v3122_v36 = vld [vmem:[%s6023_s0 + $0xa6] sm:$0x4]   ;;  %v639_v41 = vsel %vm14_vm2, %v3115_v32, %v635_v31 }
  0x30   :  { %536 = vrot.lane.b32.xlu0 %v535_v0, %s3702_s22  ;;  %s3705_s22 = smov 108   ;;  %v694_v37 = vsel %vm6_vm0, %v3125_v29, %v3124_v28  ;;  %v3126_v38 = vld [vmem:[%s6023_s0 + $0x6d] sm:$0x4]   ;;  %v3128_v39 = vld [vmem:[%s6023_s0 + $0xb6] sm:$0x1]   ;;  %s3706_s29 = smov 107   ;;  %v660_v44 = vsel %vm14_vm2, %v3119_v34, %v656_v33  ;;  %v677_v45 = vsel %vm10_vm1, %v3122_v36, %v673_v35 }
  0x31   :  { %557 = vrot.lane.b32.xlu1 %v556_v13, %s3703_s4  ;;  %v3129_v40 = vld [vmem:[%s6023_s0 + $0x1b5] sm:$0x2]   ;;  %v3132_v42 = vld [vmem:[%s6023_s0 + $0x7d] sm:$0x1]   ;;  %v3123_v46 = vld [vmem:[%s6023_s0 + $0x1a5] sm:$0x8]   ;;  %v698_v47 = vsel %vm10_vm1, %v3126_v38, %v694_v37 }
  0x32   :  { %v3133_v43 = vld [vmem:[%s6023_s0 + $0x17c] sm:$0x2]   ;;  %v3127_v48 = vld [vmem:[%s6023_s0 + $0x16c] sm:$0x8]   ;;  %v715_v49 = vsel %vm6_vm0, %v3129_v40, %v3128_v39  ;;  %v3130_v50 = vld [vmem:[%s6023_s0 + $0x34] sm:$0x4]   ;;  %v681_v55 = vsel %vm14_vm2, %v3123_v46, %v677_v45 }
  0x33   :  { %v736_v51 = vsel %vm6_vm0, %v3133_v43, %v3132_v42  ;;  %v3134_v52 = vld [vmem:[%s6023_s0 + $0xfb] sm:$0x4]   ;;  %v3136_v53 = vld [vmem:[%s6023_s0 + $0x44] sm:$0x1]   ;;  %s3708_s18 = smov 105   ;;  %v702_v58 = vsel %vm14_vm2, %v3127_v48, %v698_v47  ;;  %v719_v59 = vsel %vm10_vm1, %v3130_v50, %v715_v49  ;;  %s3710_s7 = smov 103  }
  0x34   :  { %578 = vrot.lane.b32.xlu0 %v577_v15, %s3704_s11  ;;  %s3707_s11 = smov 106   ;;  %v3137_v54 = vld [vmem:[%s6023_s0 + $0x143] sm:$0x2]   ;;  %v3140_v56 = vld [vmem:[%s6023_s0 + $0xb] sm:$0x1]   ;;  %v740_v61 = vsel %vm10_vm1, %v3134_v52, %v736_v51  ;;  %s3712_s25 = smov 101  }
  0x35   :  { %599 = vrot.lane.b32.xlu1 %v598_v27, %s3705_s22  ;;  %v3141_v57 = vld [vmem:[%s6023_s0 + $0x10a] sm:$0x2]   ;;  %v3131_v60 = vld [vmem:[%s6023_s0 + $0x133] sm:$0x8]   ;;  %v3135_v62 = vld [vmem:[%s6023_s0 + $0x1fa] sm:$0x8]   ;;  %v757_v63 = vsel %vm6_vm0, %v3137_v54, %v3136_v53 }
  0x36   :  { %v3138_v0 = vld [vmem:[%s6023_s0 + $0xc2] sm:$0x4]   ;;  %v778_v1 = vsel %vm6_vm0, %v3141_v57, %v3140_v56  ;;  %v3142_v2 = vld [vmem:[%s6023_s0 + $0x89] sm:$0x4]   ;;  %v3144_v3 = vld [vmem:[%s6023_s0 + $0x52] sm:$0x1]   ;;  %v723_v5 = vsel %vm14_vm2, %v3131_v60, %v719_v59  ;;  %v744_v8 = vsel %vm14_vm2, %v3135_v62, %v740_v61 }
  0x37   :  { %v3145_v4 = vld [vmem:[%s6023_s0 + $0x151] sm:$0x2]   ;;  %v3148_v6 = vld [vmem:[%s6023_s0 + $0x19] sm:$0x1]   ;;  %v761_v9 = vsel %vm10_vm1, %v3138_v0, %v757_v63  ;;  %v3139_v10 = vld [vmem:[%s6023_s0 + $0x1c1] sm:$0x8]   ;;  %v782_v11 = vsel %vm10_vm1, %v3142_v2, %v778_v1 }
  0x38   :  { %619 = vrot.lane.b32.xlu0 %v618_v30, %s3706_s29  ;;  %s3709_s29 = smov 104   ;;  %v3149_v7 = vld [vmem:[%s6023_s0 + $0x118] sm:$0x2]   ;;  %v3143_v12 = vld [vmem:[%s6023_s0 + $0x188] sm:$0x8]   ;;  %v798_v13 = vsel %vm6_vm0, %v3145_v4, %v3144_v3  ;;  %v765_v19 = vsel %vm14_vm2, %v3139_v10, %v761_v9  ;;  %s3714_s14 = smov 99  }
  0x39   :  { %640 = vrot.lane.b32.xlu1 %v639_v41, %s3707_s11  ;;  %v3146_v14 = vld [vmem:[%s6023_s0 + $0xd0] sm:$0x4]   ;;  %v819_v15 = vsel %vm6_vm0, %v3149_v7, %v3148_v6  ;;  %v3150_v16 = vld [vmem:[%s6023_s0 + $0x97] sm:$0x4]   ;;  %v3152_v17 = vld [vmem:[%s6023_s0 + $0x60] sm:$0x1]   ;;  %v786_v22 = vsel %vm14_vm2, %v3143_v12, %v782_v11 }
  0x3a   :  { %v3153_v18 = vld [vmem:[%s6023_s0 + $0x15f] sm:$0x2]   ;;  %v3156_v20 = vld [vmem:[%s6023_s0 + $0x27] sm:$0x1]   ;;  %v802_v23 = vsel %vm10_vm1, %v3146_v14, %v798_v13  ;;  %v3147_v24 = vld [vmem:[%s6023_s0 + $0x1cf] sm:$0x8]   ;;  %v823_v25 = vsel %vm10_vm1, %v3150_v16, %v819_v15 }
  0x3b   :  { %v3157_v21 = vld [vmem:[%s6023_s0 + $0x126] sm:$0x2]   ;;  %v3151_v26 = vld [vmem:[%s6023_s0 + $0x196] sm:$0x8]   ;;  %v840_v27 = vsel %vm6_vm0, %v3153_v18, %v3152_v17  ;;  %v3154_v28 = vld [vmem:[%s6023_s0 + $0xde] sm:$0x4]   ;;  %v806_v33 = vsel %vm14_vm2, %v3147_v24, %v802_v23 }
  0x3c   :  { %661 = vrot.lane.b32.xlu0 %v660_v44, %s3708_s18  ;;  %s3711_s18 = smov 102   ;;  %v861_v29 = vsel %vm6_vm0, %v3157_v21, %v3156_v20  ;;  %v3158_v30 = vld [vmem:[%s6023_s0 + $0xa5] sm:$0x4]   ;;  %v3160_v31 = vld [vmem:[%s6023_s0 + $0xee] sm:$0x1]   ;;  %v827_v36 = vsel %vm14_vm2, %v3151_v26, %v823_v25  ;;  %v844_v37 = vsel %vm10_vm1, %v3154_v28, %v840_v27  ;;  %s3716_s3 = smov 97  }
  0x3d   :  { %682 = vrot.lane.b32.xlu1 %v681_v55, %s3709_s29  ;;  %v3161_v32 = vld [vmem:[%s6023_s0 + $0x1ed] sm:$0x2]   ;;  %v3164_v34 = vld [vmem:[%s6023_s0 + $0xb5] sm:$0x1]   ;;  %v3155_v38 = vld [vmem:[%s6023_s0 + $0x1dd] sm:$0x8]   ;;  %v865_v39 = vsel %vm10_vm1, %v3158_v30, %v861_v29 }
  0x3e   :  { %v3165_v35 = vld [vmem:[%s6023_s0 + $0x1b4] sm:$0x2]   ;;  %v3159_v40 = vld [vmem:[%s6023_s0 + $0x1a4] sm:$0x8]   ;;  %v882_v41 = vsel %vm6_vm0, %v3161_v32, %v3160_v31  ;;  %v3162_v42 = vld [vmem:[%s6023_s0 + $0x6c] sm:$0x4]   ;;  %v848_v47 = vsel %vm14_vm2, %v3155_v38, %v844_v37 }
  0x3f   :  { %v903_v43 = vsel %vm6_vm0, %v3165_v35, %v3164_v34  ;;  %v3166_v44 = vld [vmem:[%s6023_s0 + $0x33] sm:$0x4]   ;;  %v3168_v45 = vld [vmem:[%s6023_s0 + $0x7c] sm:$0x1]   ;;  %v3172_v48 = vld [vmem:[%s6023_s0 + $0x43] sm:$0x1]   ;;  %v869_v50 = vsel %vm14_vm2, %v3159_v40, %v865_v39  ;;  %v886_v51 = vsel %vm10_vm1, %v3162_v42, %v882_v41 }
  0x40   :  { %703 = vrot.lane.b32.xlu0 %v702_v58, %s3710_s7  ;;  %s3713_s7 = smov 100   ;;  %v3169_v46 = vld [vmem:[%s6023_s0 + $0x17b] sm:$0x2]   ;;  %v3173_v49 = vld [vmem:[%s6023_s0 + $0x142] sm:$0x2]   ;;  %v907_v53 = vsel %vm10_vm1, %v3166_v44, %v903_v43  ;;  %s3718_s21 = smov 95  }
  0x41   :  { %724 = vrot.lane.b32.xlu1 %v723_v5, %s3711_s18  ;;  %v3163_v52 = vld [vmem:[%s6023_s0 + $0x16b] sm:$0x8]   ;;  %v3167_v54 = vld [vmem:[%s6023_s0 + $0x132] sm:$0x8]   ;;  %v924_v55 = vsel %vm6_vm0, %v3169_v46, %v3168_v45  ;;  %v3170_v56 = vld [vmem:[%s6023_s0 + $0xfa] sm:$0x4]   ;;  %v945_v57 = vsel %vm6_vm0, %v3173_v49, %v3172_v48 }
  0x42   :  { %v3174_v58 = vld [vmem:[%s6023_s0 + $0xc1] sm:$0x4]   ;;  %v3176_v59 = vld [vmem:[%s6023_s0 + $0xa] sm:$0x1]   ;;  %v890_v61 = vsel %vm14_vm2, %v3163_v52, %v886_v51  ;;  %v3180_v62 = vld [vmem:[%s6023_s0 + $0x51] sm:$0x1]   ;;  %v911_v0 = vsel %vm14_vm2, %v3167_v54, %v907_v53  ;;  %v928_v1 = vsel %vm10_vm1, %v3170_v56, %v924_v55 }
  0x43   :  { %v3177_v60 = vld [vmem:[%s6023_s0 + $0x109] sm:$0x2]   ;;  %v3181_v63 = vld [vmem:[%s6023_s0 + $0x150] sm:$0x2]   ;;  %v3171_v2 = vld [vmem:[%s6023_s0 + $0x1f9] sm:$0x8]   ;;  %v949_v3 = vsel %vm10_vm1, %v3174_v58, %v945_v57 }
  0x44   :  { %745 = vrot.lane.b32.xlu0 %v744_v8, %s3712_s25  ;;  %s3715_s25 = smov 98   ;;  %v3175_v4 = vld [vmem:[%s6023_s0 + $0x1c0] sm:$0x8]   ;;  %v966_v5 = vsel %vm6_vm0, %v3177_v60, %v3176_v59  ;;  %v3178_v6 = vld [vmem:[%s6023_s0 + $0x88] sm:$0x4]   ;;  %v986_v7 = vsel %vm6_vm0, %v3181_v63, %v3180_v62  ;;  %s3720_s10 = smov 93   ;;  %v932_v11 = vsel %vm14_vm2, %v3171_v2, %v928_v1 }
  0x45   :  { %766 = vrot.lane.b32.xlu1 %v765_v19, %s3713_s7  ;;  %v3182_v8 = vld [vmem:[%s6023_s0 + $0xcf] sm:$0x4]   ;;  %v3184_v9 = vld [vmem:[%s6023_s0 + $0x18] sm:$0x1]   ;;  %v3188_v12 = vld [vmem:[%s6023_s0 + $0x5f] sm:$0x1]   ;;  %v953_v14 = vsel %vm14_vm2, %v3175_v4, %v949_v3  ;;  %v970_v15 = vsel %vm10_vm1, %v3178_v6, %v966_v5 }
  0x46   :  { %v3185_v10 = vld [vmem:[%s6023_s0 + $0x117] sm:$0x2]   ;;  %v3189_v13 = vld [vmem:[%s6023_s0 + $0x15e] sm:$0x2]   ;;  %v3179_v16 = vld [vmem:[%s6023_s0 + $0x187] sm:$0x8]   ;;  %v990_v17 = vsel %vm10_vm1, %v3182_v8, %v986_v7 }
  0x47   :  { %v3183_v18 = vld [vmem:[%s6023_s0 + $0x1ce] sm:$0x8]   ;;  %v1007_v19 = vsel %vm6_vm0, %v3185_v10, %v3184_v9  ;;  %v3186_v20 = vld [vmem:[%s6023_s0 + $0x96] sm:$0x4]   ;;  %v1028_v21 = vsel %vm6_vm0, %v3189_v13, %v3188_v12  ;;  %v3192_v23 = vld [vmem:[%s6023_s0 + $0x26] sm:$0x1]   ;;  %v974_v25 = vsel %vm14_vm2, %v3179_v16, %v970_v15 }
  0x48   :  { %787 = vrot.lane.b32.xlu0 %v786_v22, %s3714_s14  ;;  %s3717_s14 = smov 96   ;;  %v3190_v22 = vld [vmem:[%s6023_s0 + $0xdd] sm:$0x4]   ;;  %v3193_v24 = vld [vmem:[%s6023_s0 + $0x125] sm:$0x2]   ;;  %s3722_s28 = smov 91   ;;  %v994_v28 = vsel %vm14_vm2, %v3183_v18, %v990_v17  ;;  %v1011_v29 = vsel %vm10_vm1, %v3186_v20, %v1007_v19 }
  0x49   :  { %807 = vrot.lane.b32.xlu1 %v806_v33, %s3715_s25  ;;  %v3196_v26 = vld [vmem:[%s6023_s0 + $0xed] sm:$0x1]   ;;  %v3187_v30 = vld [vmem:[%s6023_s0 + $0x195] sm:$0x8]   ;;  %v1032_v31 = vsel %vm10_vm1, %v3190_v22, %v1028_v21  ;;  %v3191_v32 = vld [vmem:[%s6023_s0 + $0x1dc] sm:$0x8]   ;;  %v1049_v33 = vsel %vm6_vm0, %v3193_v24, %v3192_v23 }
  0x4a   :  { %v3197_v27 = vld [vmem:[%s6023_s0 + $0x1ec] sm:$0x2]   ;;  %v3194_v34 = vld [vmem:[%s6023_s0 + $0xa4] sm:$0x4]   ;;  %v3200_v37 = vld [vmem:[%s6023_s0 + $0xb4] sm:$0x1]   ;;  %v1015_v39 = vsel %vm14_vm2, %v3187_v30, %v1011_v29  ;;  %v1036_v42 = vsel %vm14_vm2, %v3191_v32, %v1032_v31 }
  0x4b   :  { %v1070_v35 = vsel %vm6_vm0, %v3197_v27, %v3196_v26  ;;  %v3201_v38 = vld [vmem:[%s6023_s0 + $0x1b3] sm:$0x2]   ;;  %s3724_s17 = smov 89   ;;  %v3204_v40 = vld [vmem:[%s6023_s0 + $0x7b] sm:$0x1]   ;;  %v1053_v43 = vsel %vm10_vm1, %v3194_v34, %v1049_v33  ;;  %s3726_s6 = smov 87  }
  0x4c   :  { %828 = vrot.lane.b32.xlu0 %v827_v36, %s3716_s3  ;;  %s3719_s3 = smov 94   ;;  %v3198_v36 = vld [vmem:[%s6023_s0 + $0x6b] sm:$0x4]   ;;  %v3205_v41 = vld [vmem:[%s6023_s0 + $0x17a] sm:$0x2]   ;;  %s3728_s24 = smov 85  }
  0x4d   :  { %849 = vrot.lane.b32.xlu1 %v848_v47, %s3717_s14  ;;  %v3195_v44 = vld [vmem:[%s6023_s0 + $0x1a3] sm:$0x8]   ;;  %v1074_v45 = vsel %vm10_vm1, %v3198_v36, %v1070_v35  ;;  %v3199_v46 = vld [vmem:[%s6023_s0 + $0x16a] sm:$0x8]   ;;  %v1091_v47 = vsel %vm6_vm0, %v3201_v38, %v3200_v37  ;;  %v3202_v48 = vld [vmem:[%s6023_s0 + $0x32] sm:$0x4]   ;;  %v1112_v49 = vsel %vm6_vm0, %v3205_v41, %v3204_v40 }
  0x4e   :  { %v3208_v51 = vld [vmem:[%s6023_s0 + $0x42] sm:$0x1]   ;;  %v1057_v53 = vsel %vm14_vm2, %v3195_v44, %v1053_v43  ;;  %v3212_v54 = vld [vmem:[%s6023_s0 + $0x9] sm:$0x1]   ;;  %v1078_v56 = vsel %vm14_vm2, %v3199_v46, %v1074_v45  ;;  %v1095_v57 = vsel %vm10_vm1, %v3202_v48, %v1091_v47  ;;  %v3203_v58 = vld [vmem:[%s6023_s0 + $0x131] sm:$0x8]  }
  0x4f   :  { %v3209_v52 = vld [vmem:[%s6023_s0 + $0x141] sm:$0x2]   ;;  %v3213_v55 = vld [vmem:[%s6023_s0 + $0x108] sm:$0x2]   ;;  %v3207_v60 = vld [vmem:[%s6023_s0 + $0x1f8] sm:$0x8]   ;;  %v1099_v3 = vsel %vm14_vm2, %v3203_v58, %v1095_v57 }
  0x50   :  { %870 = vrot.lane.b32.xlu0 %v869_v50, %s3718_s21  ;;  %s3721_s21 = smov 92   ;;  %v3206_v50 = vld [vmem:[%s6023_s0 + $0xf9] sm:$0x4]   ;;  %v3210_v62 = vld [vmem:[%s6023_s0 + $0xc0] sm:$0x4]   ;;  %v1154_v63 = vsel %vm6_vm0, %v3213_v55, %v3212_v54  ;;  %s3730_s13 = smov 83  }
  0x51   :  { %891 = vrot.lane.b32.xlu1 %v890_v61, %s3719_s3  ;;  %v1116_v59 = vsel %vm10_vm1, %v3206_v50, %v1112_v49  ;;  %v1133_v61 = vsel %vm6_vm0, %v3209_v52, %v3208_v51  ;;  %v3216_v1 = vld [vmem:[%s6023_s0 + $0x50] sm:$0x1]   ;;  %v3220_v4 = vld [vmem:[%s6023_s0 + $0x17] sm:$0x1]   ;;  %v3211_v8 = vld [vmem:[%s6023_s0 + $0x1bf] sm:$0x8]  }
  0x52   :  { %v3217_v2 = vld [vmem:[%s6023_s0 + $0x14f] sm:$0x2]   ;;  %v3221_v5 = vld [vmem:[%s6023_s0 + $0x116] sm:$0x2]   ;;  %v1120_v6 = vsel %vm14_vm2, %v3207_v60, %v1116_v59  ;;  %v1137_v7 = vsel %vm10_vm1, %v3210_v62, %v1133_v61  ;;  %v3215_v10 = vld [vmem:[%s6023_s0 + $0x186] sm:$0x8]  }
  0x53   :  { %v3218_v12 = vld [vmem:[%s6023_s0 + $0xce] sm:$0x4]   ;;  %v1195_v13 = vsel %vm6_vm0, %v3221_v5, %v3220_v4  ;;  %v3224_v15 = vld [vmem:[%s6023_s0 + $0x5e] sm:$0x1]   ;;  %v1141_v17 = vsel %vm14_vm2, %v3211_v8, %v1137_v7  ;;  %v3228_v18 = vld [vmem:[%s6023_s0 + $0x25] sm:$0x1]  }
  0x54   :  { %912 = vrot.lane.b32.xlu0 %v911_v0, %s3720_s10  ;;  %s3723_s10 = smov 90   ;;  %v3214_v0 = vld [vmem:[%s6023_s0 + $0x87] sm:$0x4]   ;;  %v3225_v16 = vld [vmem:[%s6023_s0 + $0x15d] sm:$0x2]   ;;  %s3732_s2 = smov 81  }
  0x55   :  { %933 = vrot.lane.b32.xlu1 %v932_v11, %s3721_s21  ;;  %v1158_v9 = vsel %vm10_vm1, %v3214_v0, %v1154_v63  ;;  %v1174_v11 = vsel %vm6_vm0, %v3217_v2, %v3216_v1  ;;  %v3229_v19 = vld [vmem:[%s6023_s0 + $0x124] sm:$0x2]   ;;  %v3219_v22 = vld [vmem:[%s6023_s0 + $0x1cd] sm:$0x8]   ;;  %v3223_v24 = vld [vmem:[%s6023_s0 + $0x194] sm:$0x8]  }
  0x56   :  { %v1162_v20 = vsel %vm14_vm2, %v3215_v10, %v1158_v9  ;;  %v1178_v21 = vsel %vm10_vm1, %v3218_v12, %v1174_v11  ;;  %v3226_v26 = vld [vmem:[%s6023_s0 + $0xdc] sm:$0x4]   ;;  %v1237_v27 = vsel %vm6_vm0, %v3229_v19, %v3228_v18  ;;  %v3232_v29 = vld [vmem:[%s6023_s0 + $0xec] sm:$0x1]   ;;  %v3236_v32 = vld [vmem:[%s6023_s0 + $0xb3] sm:$0x1]  }
  0x57   :  { %v3233_v30 = vld [vmem:[%s6023_s0 + $0x1eb] sm:$0x2]   ;;  %v1182_v31 = vsel %vm14_vm2, %v3219_v22, %v1178_v21  ;;  %v3237_v33 = vld [vmem:[%s6023_s0 + $0x1b2] sm:$0x2]   ;;  %v3227_v36 = vld [vmem:[%s6023_s0 + $0x1db] sm:$0x8]  }
  0x58   :  { %954 = vrot.lane.b32.xlu0 %v953_v14, %s3722_s28  ;;  %s3725_s28 = smov 88   ;;  %v3222_v14 = vld [vmem:[%s6023_s0 + $0x95] sm:$0x4]   ;;  %v3231_v38 = vld [vmem:[%s6023_s0 + $0x1a2] sm:$0x8]   ;;  %v1279_v41 = vsel %vm6_vm0, %v3237_v33, %v3236_v32  ;;  %s3734_s20 = smov 79  }
  0x59   :  { %975 = vrot.lane.b32.xlu1 %v974_v25, %s3723_s10  ;;  %v1199_v23 = vsel %vm10_vm1, %v3222_v14, %v1195_v13  ;;  %v1216_v25 = vsel %vm6_vm0, %v3225_v16, %v3224_v15  ;;  %v3234_v40 = vld [vmem:[%s6023_s0 + $0x6a] sm:$0x4]   ;;  %v3240_v43 = vld [vmem:[%s6023_s0 + $0x7a] sm:$0x1]   ;;  %v3244_v46 = vld [vmem:[%s6023_s0 + $0x41] sm:$0x1]  }
  0x5a   :  { %v1203_v34 = vsel %vm14_vm2, %v3223_v24, %v1199_v23  ;;  %v1220_v35 = vsel %vm10_vm1, %v3226_v26, %v1216_v25  ;;  %v3241_v44 = vld [vmem:[%s6023_s0 + $0x179] sm:$0x2]   ;;  %v3245_v47 = vld [vmem:[%s6023_s0 + $0x140] sm:$0x2]   ;;  %v3235_v50 = vld [vmem:[%s6023_s0 + $0x169] sm:$0x8]  }
  0x5b   :  { %v1224_v45 = vsel %vm14_vm2, %v3227_v36, %v1220_v35  ;;  %v3239_v52 = vld [vmem:[%s6023_s0 + $0x130] sm:$0x8]   ;;  %v3242_v54 = vld [vmem:[%s6023_s0 + $0xf8] sm:$0x4]   ;;  %v3246_v57 = vld [vmem:[%s6023_s0 + $0xbf] sm:$0x4]  }
  0x5c   :  { %995 = vrot.lane.b32.xlu0 %v994_v28, %s3724_s17  ;;  %s3727_s17 = smov 86   ;;  %v3230_v28 = vld [vmem:[%s6023_s0 + $0xa3] sm:$0x4]   ;;  %v3243_v55 = vld [vmem:[%s6023_s0 + $0x1f7] sm:$0x8]   ;;  %s3736_s11 = smov 77  }
  0x5d   :  { %1016 = vrot.lane.b32.xlu1 %v1015_v39, %s3725_s28  ;;  %v1241_v37 = vsel %vm10_vm1, %v3230_v28, %v1237_v27  ;;  %v1258_v39 = vsel %vm6_vm0, %v3233_v30, %v3232_v29  ;;  %v3248_v58 = vld [vmem:[%s6023_s0 + $0x8] sm:$0x1]   ;;  %v3247_v61 = vld [vmem:[%s6023_s0 + $0x1be] sm:$0x8]   ;;  %v3252_v62 = vld [vmem:[%s6023_s0 + $0x4f] sm:$0x1]  }
  0x5e   :  { %v1245_v48 = vsel %vm14_vm2, %v3231_v38, %v1241_v37  ;;  %v1262_v49 = vsel %vm10_vm1, %v3234_v40, %v1258_v39  ;;  %v3249_v59 = vld [vmem:[%s6023_s0 + $0x107] sm:$0x2]   ;;  %v3253_v63 = vld [vmem:[%s6023_s0 + $0x14e] sm:$0x2]   ;;  %v3_v4 = vld [vmem:[%s6023_s0] sm:$0x1]  }
  0x5f   :  { %v1266_v60 = vsel %vm14_vm2, %v3235_v50, %v1262_v49  ;;  %v3250_v2 = vld [vmem:[%s6023_s0 + $0x86] sm:$0x4]   ;;  %v3254_v7 = vld [vmem:[%s6023_s0 + $0xcd] sm:$0x4]   ;;  %v2995_v8 = vld [vmem:[%s6023_s0 + $0x17d] sm:$0x8]   ;;  %v1362_v10 = vsel %vm6_vm0, %v3253_v63, %v3252_v62 }
  0x60   :  { %1037 = vrot.lane.b32.xlu0 %v1036_v42, %s3726_s6  ;;  %s3729_s6 = smov 84   ;;  %v3238_v42 = vld [vmem:[%s6023_s0 + $0x31] sm:$0x4]   ;;  %v2993_v9 = vld [vmem:[%s6023_s0 + $0x7f] sm:$0x2]   ;;  %s3737_s30 = smov 76   ;;  %v1366_v22 = vsel %vm10_vm1, %v3254_v7, %v1362_v10 }
  0x61   :  { %1058 = vrot.lane.b32.xlu1 %v1057_v53, %s3727_s17  ;;  %v1283_v51 = vsel %vm10_vm1, %v3238_v42, %v1279_v41  ;;  %v1300_v53 = vsel %vm6_vm0, %v3241_v44, %v3240_v43  ;;  %v3256_v11 = vld [vmem:[%s6023_s0 + $0x16] sm:$0x1]   ;;  %vm16_vm11 = vcmask 72704   ;;  %v7_v13 = vsel %vm6_vm0, %v2993_v9, %v3_v4  ;;  %v3260_v15 = vld [vmem:[%s6023_s0 + $0x5d] sm:$0x1]   ;;  %s3739_s17 = smov 74  }
  0x62   :  { %v1287_v0 = vsel %vm14_vm2, %v3239_v52, %v1283_v51  ;;  %v1304_v1 = vsel %vm10_vm1, %v3242_v54, %v1300_v53  ;;  %v3257_v12 = vld [vmem:[%s6023_s0 + $0x115] sm:$0x2]   ;;  %v3261_v16 = vld [vmem:[%s6023_s0 + $0x15c] sm:$0x2]   ;;  %vm57_vm12 = vcmask 1048568   ;;  %vm140_vm13 = vcmask 1048552  }
  0x63   :  { %v1308_v14 = vsel %vm14_vm2, %v3243_v55, %v1304_v1  ;;  %v3255_v23 = vld [vmem:[%s6023_s0 + $0x1cc] sm:$0x8]   ;;  %v1383_v24 = vsel %vm6_vm0, %v3257_v12, %v3256_v11  ;;  %v3258_v25 = vld [vmem:[%s6023_s0 + $0x94] sm:$0x4]   ;;  %v1404_v26 = vsel %vm6_vm0, %v3261_v16, %v3260_v15  ;;  %v3262_v27 = vld [vmem:[%s6023_s0 + $0xdb] sm:$0x4]  }
  0x64   :  { %1079 = vrot.lane.b32.xlu0 %v1078_v56, %s3728_s24  ;;  %s3731_s24 = smov 82   ;;  %v1321_v56 = vsel %vm6_vm0, %v3245_v47, %v3244_v46  ;;  %v3264_v28 = vld [vmem:[%s6023_s0 + $0x24] sm:$0x1]   ;;  %v3268_v32 = vld [vmem:[%s6023_s0 + $0xeb] sm:$0x1]   ;;  %v1387_v35 = vsel %vm10_vm1, %v3258_v25, %v1383_v24  ;;  %v1408_v37 = vsel %vm10_vm1, %v3262_v27, %v1404_v26  ;;  %vm99_vm14 = vcmask 1048560  }
  0x65   :  { %1100 = vrot.lane.b32.xlu1 %v1099_v3, %s3729_s6  ;;  %v2994_v3 = vld [vmem:[%s6023_s0 + $0xfe] sm:$0x4]   ;;  %v1325_v5 = vsel %vm10_vm1, %v3246_v57, %v1321_v56  ;;  %s3738_s6 = smov 75   ;;  %v3265_v29 = vld [vmem:[%s6023_s0 + $0x123] sm:$0x2]   ;;  %s3743_s26 = smov 70  }
  0x66   :  { %v1329_v18 = vsel %vm14_vm2, %v3247_v61, %v1325_v5  ;;  %v3269_v33 = vld [vmem:[%s6023_s0 + $0x1ea] sm:$0x2]   ;;  %v3259_v36 = vld [vmem:[%s6023_s0 + $0x193] sm:$0x8]   ;;  %v3263_v38 = vld [vmem:[%s6023_s0 + $0x1da] sm:$0x8]   ;;  %v1425_v39 = vsel %vm6_vm0, %v3265_v29, %v3264_v28 }
  0x67   :  { %v3266_v40 = vld [vmem:[%s6023_s0 + $0xa2] sm:$0x4]   ;;  %v1446_v42 = vsel %vm6_vm0, %v3269_v33, %v3268_v32  ;;  %v3270_v43 = vld [vmem:[%s6023_s0 + $0x69] sm:$0x4]   ;;  %v3272_v44 = vld [vmem:[%s6023_s0 + $0xb2] sm:$0x1]   ;;  %v1391_v46 = vsel %vm14_vm2, %v3259_v36, %v1387_v35  ;;  %v1412_v49 = vsel %vm14_vm2, %v3263_v38, %v1408_v37 }
  0x68   :  { %1121 = vrot.lane.b32.xlu0 %v1120_v6, %s3730_s13  ;;  %s3733_s13 = smov 80   ;;  %v1342_v6 = vsel %vm6_vm0, %v3249_v59, %v3248_v58  ;;  %v3276_v47 = vld [vmem:[%s6023_s0 + $0x79] sm:$0x1]   ;;  %v1429_v50 = vsel %vm10_vm1, %v3266_v40, %v1425_v39  ;;  %v3267_v51 = vld [vmem:[%s6023_s0 + $0x1a1] sm:$0x8]   ;;  %v1450_v53 = vsel %vm10_vm1, %v3270_v43, %v1446_v42  ;;  %vm182_vm15 = vcmask 1048544  }
  0x69   :  { %1142 = vrot.lane.b32.xlu1 %v1141_v17, %s3731_s24  ;;  %v11_v17 = vsel %vm10_vm1, %v2994_v3, %v7_v13  ;;  %v1346_v19 = vsel %vm10_vm1, %v3250_v2, %v1342_v6  ;;  %s3740_s24 = smov 73   ;;  %v3271_v54 = vld [vmem:[%s6023_s0 + $0x168] sm:$0x8]   ;;  %v3274_v56 = vld [vmem:[%s6023_s0 + $0x30] sm:$0x4]   ;;  %v1433_v61 = vsel %vm14_vm2, %v3267_v51, %v1429_v50  ;;  %s3748_s9 = smov 65  }
  0x6a   :  { %v15_v21 = vsel %vm14_vm2, %v2995_v8, %v11_v17  ;;  %v3278_v57 = vld [vmem:[%s6023_s0 + $0xf7] sm:$0x4]   ;;  %v3280_v59 = vld [vmem:[%s6023_s0 + $0x40] sm:$0x1]   ;;  %v3284_v62 = vld [vmem:[%s6023_s0 + $0x7] sm:$0x1]  }
  0x6b   :  { %17 = vst.msk [vmem:[#allocation2] ss:$72 sm:$0x3] %vm16_vm11, %v15_v21   ;;  %19 = vst.msk [vmem:[#allocation2 - $0x8f] ss:$72 sm:$0xc] %vm16_vm11, %v15_v21  }
  0x6c   :  { %1163 = vrot.lane.b32.xlu0 %v1162_v20, %s3732_s2  ;;  %s3735_s2 = smov 78   ;;  %v3251_v20 = vld [vmem:[%s6023_s0 + $0x185] sm:$0x8]   ;;  %v3285_v63 = vld [vmem:[%s6023_s0 + $0x106] sm:$0x2]   ;;  %s3749_s22 = smov 64  }
  0x6d   :  { %1183 = vrot.lane.b32.xlu1 %v1182_v31, %s3733_s13  ;;  %v1350_v30 = vsel %vm14_vm2, %v3251_v20, %v1346_v19  ;;  %s3742_s13 = smov 71   ;;  %v3275_v3 = vld [vmem:[%s6023_s0 + $0x12f] sm:$0x8]   ;;  %v3279_v5 = vld [vmem:[%s6023_s0 + $0x1f6] sm:$0x8]   ;;  %v1530_v8 = vsel %vm6_vm0, %v3285_v63, %v3284_v62  ;;  %s3750_s27 = smov 63  }
  0x6e   :  { %v3282_v7 = vld [vmem:[%s6023_s0 + $0xbe] sm:$0x4]   ;;  %v3286_v9 = vld [vmem:[%s6023_s0 + $0x85] sm:$0x4]   ;;  %v3288_v10 = vld [vmem:[%s6023_s0 + $0x4e] sm:$0x1]  }
  0x6f   :  { %v3289_v11 = vld [vmem:[%s6023_s0 + $0x14d] sm:$0x2]   ;;  %v3293_v15 = vld [vmem:[%s6023_s0 + $0x114] sm:$0x2]   ;;  %v1534_v19 = vsel %vm10_vm1, %v3286_v9, %v1530_v8  ;;  %v3287_v20 = vld [vmem:[%s6023_s0 + $0x184] sm:$0x8]  }
  0x70   :  { %1204 = vrot.lane.b32.xlu0 %v1203_v34, %s3734_s20  ;;  %v1370_v34 = vsel %vm14_vm2, %v3255_v23, %v1366_v22  ;;  %s3746_s20 = smov 67   ;;  %v1550_v21 = vsel %vm6_vm0, %v3289_v11, %v3288_v10  ;;  %v3290_v22 = vld [vmem:[%s6023_s0 + $0xcc] sm:$0x4]   ;;  %v3294_v25 = vld [vmem:[%s6023_s0 + $0x93] sm:$0x4]   ;;  %s3752_s16 = smov 61  }
  0x71   :  { %1225 = vrot.lane.b32.xlu1 %v1224_v45, %s3735_s2  ;;  %v3273_v45 = vld [vmem:[%s6023_s0 + $0x1b1] sm:$0x2]   ;;  %s3744_s2 = smov 69   ;;  %v3296_v26 = vld [vmem:[%s6023_s0 + $0x5c] sm:$0x1]   ;;  %v1554_v32 = vsel %vm10_vm1, %v3290_v22, %v1550_v21  ;;  %s3754_s5 = smov 59  }
  0x72   :  { %v1467_v55 = vsel %vm6_vm0, %v3273_v45, %v3272_v44  ;;  %v3297_v27 = vld [vmem:[%s6023_s0 + $0x15b] sm:$0x2]   ;;  %v3300_v29 = vld [vmem:[%s6023_s0 + $0x23] sm:$0x1]   ;;  %v3291_v33 = vld [vmem:[%s6023_s0 + $0x1cb] sm:$0x8]  }
  0x73   :  { %v1471_v2 = vsel %vm10_vm1, %v3274_v56, %v1467_v55  ;;  %v3295_v36 = vld [vmem:[%s6023_s0 + $0x192] sm:$0x8]   ;;  %v1592_v37 = vsel %vm6_vm0, %v3297_v27, %v3296_v26  ;;  %v3298_v38 = vld [vmem:[%s6023_s0 + $0xda] sm:$0x4]   ;;  %v3302_v39 = vld [vmem:[%s6023_s0 + $0xa1] sm:$0x4]   ;;  %v1558_v43 = vsel %vm14_vm2, %v3291_v33, %v1554_v32 }
  0x74   :  { %1246 = vrot.lane.b32.xlu0 %v1245_v48, %s3736_s11  ;;  %v3277_v48 = vld [vmem:[%s6023_s0 + $0x178] sm:$0x2]   ;;  %v1475_v13 = vsel %vm14_vm2, %v3275_v3, %v1471_v2  ;;  %v3305_v42 = vld [vmem:[%s6023_s0 + $0x1e9] sm:$0x2]   ;;  %v3308_v44 = vld [vmem:[%s6023_s0 + $0xb1] sm:$0x1]  }
  0x75   :  { %1267 = vrot.lane.b32.xlu1 %v1266_v60, %s3737_s30  ;;  %v1488_v58 = vsel %vm6_vm0, %v3277_v48, %v3276_v47  ;;  %v3281_v60 = vld [vmem:[%s6023_s0 + $0x13f] sm:$0x2]   ;;  %v3309_v45 = vld [vmem:[%s6023_s0 + $0x1b0] sm:$0x2]   ;;  %v1596_v48 = vsel %vm10_vm1, %v3298_v38, %v1592_v37  ;;  %v3318_v8 = vld [vmem:[%s6023_s0 + $0xbd] sm:$0x4]  }
  0x76   :  { %v1492_v4 = vsel %vm10_vm1, %v3278_v57, %v1488_v58  ;;  %v1509_v6 = vsel %vm6_vm0, %v3281_v60, %v3280_v59  ;;  %v1655_v55 = vsel %vm6_vm0, %v3309_v45, %v3308_v44  ;;  %v3310_v56 = vld [vmem:[%s6023_s0 + $0x2f] sm:$0x4]   ;;  %v3312_v57 = vld [vmem:[%s6023_s0 + $0x78] sm:$0x1]   ;;  %v3316_v60 = vld [vmem:[%s6023_s0 + $0x3f] sm:$0x1]  }
  0x77   :  { %v1496_v16 = vsel %vm14_vm2, %v3279_v5, %v1492_v4  ;;  %v1513_v17 = vsel %vm10_vm1, %v3282_v7, %v1509_v6  ;;  %v3313_v58 = vld [vmem:[%s6023_s0 + $0x177] sm:$0x2]   ;;  %v1659_v3 = vsel %vm10_vm1, %v3310_v56, %v1655_v55  ;;  %v3311_v4 = vld [vmem:[%s6023_s0 + $0x12e] sm:$0x8]   ;;  %v3320_v9 = vld [vmem:[%s6023_s0 + $0x6] sm:$0x1]  }
  0x78   :  { %1288 = vrot.lane.b32.xlu0 %v1287_v0, %s3738_s6  ;;  %s3741_s6 = smov 72   ;;  %v1454_v0 = vsel %vm14_vm2, %v3271_v54, %v1450_v53  ;;  %v3306_v54 = vld [vmem:[%s6023_s0 + $0x68] sm:$0x4]   ;;  %v1676_v5 = vsel %vm6_vm0, %v3313_v58, %v3312_v57  ;;  %v3314_v6 = vld [vmem:[%s6023_s0 + $0xf6] sm:$0x4]   ;;  %vm454_vm11 = vcmask 1015704  }
  0x79   :  { %1309 = vrot.lane.b32.xlu1 %v1308_v14, %s3739_s17  ;;  %v3292_v14 = vld [vmem:[%s6023_s0 + $0x15] sm:$0x1]   ;;  %v3321_v10 = vld [vmem:[%s6023_s0 + $0x105] sm:$0x2]   ;;  %v3329_v26 = vld [vmem:[%s6023_s0 + $0x113] sm:$0x2]  }
  0x7a   :  { %v1571_v24 = vsel %vm6_vm0, %v3293_v15, %v3292_v14  ;;  %v1663_v15 = vsel %vm14_vm2, %v3311_v4, %v1659_v3  ;;  %v1718_v21 = vsel %vm6_vm0, %v3321_v10, %v3320_v9  ;;  %v3322_v22 = vld [vmem:[%s6023_s0 + $0x84] sm:$0x4]   ;;  %s3756_s23 = smov 57   ;;  %v3330_v38 = vld [vmem:[%s6023_s0 + $0x92] sm:$0x4]   ;;  %s3758_s12 = smov 55  }
  0x7b   :  { %v1575_v35 = vsel %vm10_vm1, %v3294_v25, %v1571_v24  ;;  %v3326_v24 = vld [vmem:[%s6023_s0 + $0xcb] sm:$0x4]   ;;  %v3328_v25 = vld [vmem:[%s6023_s0 + $0x14] sm:$0x1]   ;;  %v1722_v32 = vsel %vm10_vm1, %v3322_v22, %v1718_v21  ;;  %v3323_v33 = vld [vmem:[%s6023_s0 + $0x183] sm:$0x8]  }
  0x7c   :  { %1330 = vrot.lane.b32.xlu0 %v1329_v18, %s3740_s24  ;;  %v3283_v18 = vld [vmem:[%s6023_s0 + $0x1bd] sm:$0x8]   ;;  %v1579_v47 = vsel %vm14_vm2, %v3295_v36, %v1575_v35  ;;  %v3327_v36 = vld [vmem:[%s6023_s0 + $0x1ca] sm:$0x8]   ;;  %v1759_v37 = vsel %vm6_vm0, %v3329_v26, %v3328_v25  ;;  %v3340_v44 = vld [vmem:[%s6023_s0 + $0xe9] sm:$0x1]  }
  0x7d   :  { %v51_v31 = vpop.permute.xlu0 %50   ;;  %1351 = vrot.lane.b32.xlu1 %v1350_v30, %s3741_s6  ;;  %v134_v41 = vpop.permute.xlu1 %133   ;;  %v1517_v28 = vsel %vm14_vm2, %v3283_v18, %v1513_v17  ;;  %v3301_v30 = vld [vmem:[%s6023_s0 + $0x122] sm:$0x2]   ;;  %v3315_v17 = vld [vmem:[%s6023_s0 + $0x1f5] sm:$0x8]   ;;  %v3341_v45 = vld [vmem:[%s6023_s0 + $0x1e8] sm:$0x2]  }
  0x7e   :  { %54 = vst.msk [vmem:[#allocation2 + $0x28] sm:$0x3] %vm52_vm10, %v51_v31   ;;  %56 = vst.msk [vmem:[#allocation2 + $0x6e] sm:$0xc] %vm52_vm10, %v51_v31   ;;  %v1613_v40 = vsel %vm6_vm0, %v3301_v30, %v3300_v29  ;;  %vm433_vm10 = vcmask 1023904   ;;  %v1822_v55 = vsel %vm6_vm0, %v3341_v45, %v3340_v44  ;;  %s3760_s30 = smov 53  }
  0x7f   :  { %59 = vst.msk [vmem:[#allocation2 + $0x20] sm:$0x3] %vm57_vm12, %v51_v31   ;;  %61 = vst.msk [vmem:[#allocation2 + $0x66] sm:$0xc] %vm57_vm12, %v51_v31   ;;  %v1538_v31 = vsel %vm14_vm2, %v3287_v20, %v1534_v19  ;;  %v1617_v51 = vsel %vm10_vm1, %v3302_v39, %v1613_v40  ;;  %vm475_vm12 = vcmask 1007504   ;;  %s3762_s19 = smov 51  }
  0x80   :  { %1371 = vrot.lane.b32.xlu0 %v1370_v34, %s3742_s13  ;;  %137 = vst.msk [vmem:[#allocation2 + $0x30] sm:$0x3] %vm135_vm8, %v134_v41   ;;  %139 = vst.msk [vmem:[#allocation2 + $0x76] sm:$0xc] %vm135_vm8, %v134_v41   ;;  %s3745_s13 = smov 68   ;;  %vm371_vm8 = vcmask 1048504  }
  0x81   :  { %142 = vst.msk [vmem:[#allocation2 + $0x28] sm:$0x3] %vm140_vm13, %v134_v41   ;;  %144 = vst.msk [vmem:[#allocation2 + $0x6e] sm:$0xc] %vm140_vm13, %v134_v41   ;;  %v93_v52 = vpop.permute.xlu0 %92   ;;  %1392 = vrot.lane.b32.xlu1 %v1391_v46, %s3743_s26  ;;  %v3304_v41 = vld [vmem:[%s6023_s0 + $0xea] sm:$0x1]  }
  0x82   :  { %96 = vst.msk [vmem:[#allocation2 + $0x8] sm:$0x3] %vm94_vm9, %v93_v52   ;;  %98 = vst.msk [vmem:[#allocation2 + $0x4e] sm:$0xc] %vm94_vm9, %v93_v52   ;;  %v1634_v53 = vsel %vm6_vm0, %v3305_v42, %v3304_v41  ;;  %vm413_vm9 = vcmask 1032104   ;;  %vm496_vm13 = vcmask 999304  }
  0x83   :  { %100 = vst.msk [vmem:[#allocation2] sm:$0x3] %vm99_vm14, %v93_v52   ;;  %102 = vst.msk [vmem:[#allocation2 + $0x46] sm:$0xc] %vm99_vm14, %v93_v52   ;;  %v3303_v52 = vld [vmem:[%s6023_s0 + $0x1a0] sm:$0x8]  }
  0x84   :  { %1413 = vrot.lane.b32.xlu0 %v1412_v49, %s3744_s2  ;;  %s3747_s2 = smov 66   ;;  %v3299_v49 = vld [vmem:[%s6023_s0 + $0x1d9] sm:$0x8]   ;;  %v1621_v63 = vsel %vm14_vm2, %v3303_v52, %v1617_v51  ;;  %v3319_v20 = vld [vmem:[%s6023_s0 + $0x1bc] sm:$0x8]   ;;  %vm517_vm14 = vcmask 991104  }
  0x85   :  { %v176_v1 = vpop.permute.xlu1 %175   ;;  %1434 = vrot.lane.b32.xlu1 %v1433_v61, %s3745_s13  ;;  %v1600_v59 = vsel %vm14_vm2, %v3299_v49, %v1596_v48  ;;  %v3317_v61 = vld [vmem:[%s6023_s0 + $0x13e] sm:$0x2]   ;;  %v3333_v29 = vld [vmem:[%s6023_s0 + $0x15a] sm:$0x2]   ;;  %v3336_v41 = vld [vmem:[%s6023_s0 + $0x22] sm:$0x1]   ;;  %v1763_v48 = vsel %vm10_vm1, %v3330_v38, %v1759_v37 }
  0x86   :  { %179 = vst.msk [vmem:[#allocation2 + $0x10] sm:$0x3] %vm177_vm7, %v176_v1   ;;  %181 = vst.msk [vmem:[#allocation2 + $0x56] sm:$0xc] %vm177_vm7, %v176_v1   ;;  %vm224_vm7 = vcmask 1048536   ;;  %v218_v12 = vpop.permute.xlu0 %217   ;;  %v1697_v7 = vsel %vm6_vm0, %v3317_v61, %v3316_v60  ;;  %s3764_s8 = smov 49  }
  0x87   :  { %184 = vst.msk [vmem:[#allocation2 + $0x8] sm:$0x3] %vm182_vm15, %v176_v1   ;;  %186 = vst.msk [vmem:[#allocation2 + $0x4e] sm:$0xc] %vm182_vm15, %v176_v1   ;;  %v3307_v1 = vld [vmem:[%s6023_s0 + $0x167] sm:$0x8]   ;;  %v1701_v19 = vsel %vm10_vm1, %v3318_v8, %v1697_v7 }
  0x88   :  { %1455 = vrot.lane.b32.xlu0 %v1454_v0, %s3746_s20  ;;  %221 = vst.msk [vmem:[#allocation2 + $0x80] sm:$0x3] %vm173_vm6, %v218_v12   ;;  %223 = vst.msk [vmem:[#allocation2 + $0x36] sm:$0xc] %vm173_vm6, %v218_v12   ;;  %vm266_vm6 = vcmask 1048528   ;;  %v1638_v0 = vsel %vm10_vm1, %v3306_v54, %v1634_v53  ;;  %vm538_vm15 = vcmask 982904  }
  0x89   :  { %226 = vst.msk [vmem:[#allocation2 + $0x30] sm:$0x3] %vm224_vm7, %v218_v12   ;;  %228 = vst.msk [vmem:[#allocation2 + $0x76] sm:$0xc] %vm224_vm7, %v218_v12   ;;  %1476 = vrot.lane.b32.xlu1 %v1475_v13, %s3747_s2  ;;  %v260_v23 = vpop.permute.xlu1 %259   ;;  %v1642_v11 = vsel %vm14_vm2, %v3307_v1, %v1638_v0  ;;  %v3324_v12 = vld [vmem:[%s6023_s0 + $0x4d] sm:$0x1]  }
  0x8a   :  { %263 = vst.msk [vmem:[#allocation2 + $0x60] sm:$0x3] %vm131_vm4, %v260_v23   ;;  %265 = vst.msk [vmem:[#allocation2 + $0x16] sm:$0xc] %vm131_vm4, %v260_v23   ;;  %vm308_vm4 = vcmask 1048520   ;;  %vm559_vm7 = vcmask 974704  }
  0x8b   :  { %268 = vst.msk [vmem:[#allocation2 + $0x10] sm:$0x3] %vm266_vm6, %v260_v23   ;;  %270 = vst.msk [vmem:[#allocation2 + $0x56] sm:$0xc] %vm266_vm6, %v260_v23   ;;  %v3325_v13 = vld [vmem:[%s6023_s0 + $0x14c] sm:$0x2]  }
  0x8c   :  { %1497 = vrot.lane.b32.xlu0 %v1496_v16, %s3748_s9  ;;  %s3751_s9 = smov 62   ;;  %v1680_v16 = vsel %vm10_vm1, %v3314_v6, %v1676_v5  ;;  %v1738_v23 = vsel %vm6_vm0, %v3325_v13, %v3324_v12  ;;  %v3334_v40 = vld [vmem:[%s6023_s0 + $0xd9] sm:$0x4]   ;;  %v3337_v42 = vld [vmem:[%s6023_s0 + $0x121] sm:$0x2]   ;;  %vm580_vm6 = vcmask 966504  }
  0x8d   :  { %1518 = vrot.lane.b32.xlu1 %v1517_v28, %s3749_s22  ;;  %v1684_v27 = vsel %vm14_vm2, %v3315_v17, %v1680_v16  ;;  %v3332_v28 = vld [vmem:[%s6023_s0 + $0x5b] sm:$0x1]   ;;  %v1742_v35 = vsel %vm10_vm1, %v3326_v24, %v1738_v23  ;;  %v3331_v49 = vld [vmem:[%s6023_s0 + $0x191] sm:$0x8]   ;;  %v1801_v53 = vsel %vm6_vm0, %v3337_v42, %v3336_v41  ;;  %v3338_v54 = vld [vmem:[%s6023_s0 + $0xa0] sm:$0x4]  }
  0x8e   :  { %v302_v34 = vpop.permute.xlu0 %301   ;;  %v1780_v39 = vsel %vm6_vm0, %v3333_v29, %v3332_v28  ;;  %v3335_v52 = vld [vmem:[%s6023_s0 + $0x1d8] sm:$0x8]   ;;  %v3342_v56 = vld [vmem:[%s6023_s0 + $0x67] sm:$0x4]   ;;  %v3344_v57 = vld [vmem:[%s6023_s0 + $0xb0] sm:$0x1]   ;;  %v1805_v0 = vsel %vm10_vm1, %v3338_v54, %v1801_v53 }
  0x8f   :  { %305 = vst.msk [vmem:[#allocation2 + $0x40] sm:$0x3] %vm90_vm5, %v302_v34   ;;  %307 = vst.msk [vmem:[#allocation2 + $0x86] sm:$0xc] %vm90_vm5, %v302_v34   ;;  %vm350_vm5 = vcmask 1048512   ;;  %v344_v46 = vpop.permute.xlu1 %343   ;;  %v1784_v51 = vsel %vm10_vm1, %v3334_v40, %v1780_v39  ;;  %v1826_v3 = vsel %vm10_vm1, %v3342_v56, %v1822_v55  ;;  %s3766_s26 = smov 47  }
  0x90   :  { %310 = vst.msk [vmem:[#allocation2 + $0x80] sm:$0x3] %vm308_vm4, %v302_v34   ;;  %312 = vst.msk [vmem:[#allocation2 + $0x36] sm:$0xc] %vm308_vm4, %v302_v34   ;;  %1539 = vrot.lane.b32.xlu0 %v1538_v31, %s3750_s27  ;;  %s3753_s27 = smov 60   ;;  %v1705_v31 = vsel %vm14_vm2, %v3319_v20, %v1701_v19  ;;  %vm601_vm4 = vcmask 958304  }
  0x91   :  { %347 = vst.msk [vmem:[#allocation2 + $0x20] sm:$0x3] %vm48_vm3, %v344_v46   ;;  %349 = vst.msk [vmem:[#allocation2 + $0x66] sm:$0xc] %vm48_vm3, %v344_v46   ;;  %vm392_vm3 = vcmask 1040304   ;;  %1559 = vrot.lane.b32.xlu1 %v1558_v43, %s3751_s9  ;;  %v1726_v43 = vsel %vm14_vm2, %v3323_v33, %v1722_v32  ;;  %s3768_s15 = smov 45  }
  0x92   :  { %v370_v50 = vpop.permute.xlu0 %369   ;;  %352 = vst.msk [vmem:[#allocation2 + $0x60] sm:$0x3] %vm350_vm5, %v344_v46   ;;  %354 = vst.msk [vmem:[#allocation2 + $0x16] sm:$0xc] %vm350_vm5, %v344_v46   ;;  %v3345_v58 = vld [vmem:[%s6023_s0 + $0x1af] sm:$0x2]  }
  0x93   :  { %373 = vst.msk [vmem:[#allocation2 + $0x40] sm:$0x3] %vm371_vm8, %v370_v50   ;;  %375 = vst.msk [vmem:[#allocation2 + $0x86] sm:$0xc] %vm371_vm8, %v370_v50   ;;  %v391_v62 = vpop.permute.xlu1 %390   ;;  %v3348_v60 = vld [vmem:[%s6023_s0 + $0x77] sm:$0x1]   ;;  %v1843_v5 = vsel %vm6_vm0, %v3345_v58, %v3344_v57 }
  0x94   :  { %1580 = vrot.lane.b32.xlu0 %v1579_v47, %s3752_s16  ;;  %394 = vst.msk [vmem:[#allocation2 + $0x20] sm:$0x3] %vm392_vm3, %v391_v62   ;;  %396 = vst.msk [vmem:[#allocation2 + $0x66] sm:$0xc] %vm392_vm3, %v391_v62   ;;  %s3755_s16 = smov 58   ;;  %v1746_v47 = vsel %vm14_vm2, %v3327_v36, %v1742_v35  ;;  %vm621_vm5 = vcmask 950104  }
  0x95   :  { %1601 = vrot.lane.b32.xlu1 %v1600_v59, %s3753_s27  ;;  %v1767_v59 = vsel %vm14_vm2, %v3331_v49, %v1763_v48  ;;  %v3349_v61 = vld [vmem:[%s6023_s0 + $0x176] sm:$0x2]   ;;  %v3339_v1 = vld [vmem:[%s6023_s0 + $0x19f] sm:$0x8]   ;;  %v3343_v4 = vld [vmem:[%s6023_s0 + $0x166] sm:$0x8]  }
  0x96   :  { %v412_v2 = vpop.permute.xlu0 %411   ;;  %v3346_v6 = vld [vmem:[%s6023_s0 + $0x2e] sm:$0x4]   ;;  %v1864_v7 = vsel %vm6_vm0, %v3349_v61, %v3348_v60  ;;  %v3350_v8 = vld [vmem:[%s6023_s0 + $0xf5] sm:$0x4]   ;;  %v3352_v9 = vld [vmem:[%s6023_s0 + $0x3e] sm:$0x1]  }
  0x97   :  { %414 = vst.msk [vmem:[#allocation2] sm:$0x3] %vm413_vm9, %v412_v2   ;;  %416 = vst.msk [vmem:[#allocation2 + $0x46] sm:$0xc] %vm413_vm9, %v412_v2   ;;  %v432_v14 = vpop.permute.xlu1 %431   ;;  %v3353_v10 = vld [vmem:[%s6023_s0 + $0x13d] sm:$0x2]   ;;  %v1847_v16 = vsel %vm10_vm1, %v3346_v6, %v1843_v5  ;;  %v1868_v19 = vsel %vm10_vm1, %v3350_v8, %v1864_v7 }
  0x98   :  { %1622 = vrot.lane.b32.xlu0 %v1621_v63, %s3754_s5  ;;  %435 = vst.msk [vmem:[#allocation2 + $0x28] sm:$0x3] %vm433_vm10, %v432_v14   ;;  %437 = vst.msk [vmem:[#allocation2 + $0x6e] sm:$0xc] %vm433_vm10, %v432_v14   ;;  %s3757_s5 = smov 56   ;;  %v1788_v63 = vsel %vm14_vm2, %v3335_v52, %v1784_v51  ;;  %vm642_vm8 = vcmask 941904   ;;  %v1885_v21 = vsel %vm6_vm0, %v3353_v10, %v3352_v9 }
  0x99   :  { %1643 = vrot.lane.b32.xlu1 %v1642_v11, %s3755_s16  ;;  %v1809_v11 = vsel %vm14_vm2, %v3339_v1, %v1805_v0  ;;  %v3356_v12 = vld [vmem:[%s6023_s0 + $0x5] sm:$0x1]   ;;  %v3347_v17 = vld [vmem:[%s6023_s0 + $0x12d] sm:$0x8]   ;;  %v3351_v20 = vld [vmem:[%s6023_s0 + $0x1f4] sm:$0x8]  }
  0x9a   :  { %v453_v18 = vpop.permute.xlu0 %452   ;;  %v3357_v13 = vld [vmem:[%s6023_s0 + $0x104] sm:$0x2]   ;;  %v3354_v22 = vld [vmem:[%s6023_s0 + $0xbc] sm:$0x4]   ;;  %v3360_v25 = vld [vmem:[%s6023_s0 + $0x4c] sm:$0x1]  }
  0x9b   :  { %456 = vst.msk [vmem:[#allocation2 + $0x8] sm:$0x3] %vm454_vm11, %v453_v18   ;;  %458 = vst.msk [vmem:[#allocation2 + $0x4e] sm:$0xc] %vm454_vm11, %v453_v18   ;;  %v474_v30 = vpop.permute.xlu1 %473   ;;  %v1906_v23 = vsel %vm6_vm0, %v3357_v13, %v3356_v12  ;;  %v3358_v24 = vld [vmem:[%s6023_s0 + $0x83] sm:$0x4]   ;;  %v1889_v32 = vsel %vm10_vm1, %v3354_v22, %v1885_v21 }
  0x9c   :  { %1664 = vrot.lane.b32.xlu0 %v1663_v15, %s3756_s23  ;;  %477 = vst.msk [vmem:[#allocation2 + $0x30] sm:$0x3] %vm475_vm12, %v474_v30   ;;  %479 = vst.msk [vmem:[#allocation2 + $0x76] sm:$0xc] %vm475_vm12, %v474_v30   ;;  %s3759_s23 = smov 54   ;;  %v1830_v15 = vsel %vm14_vm2, %v3343_v4, %v1826_v3  ;;  %vm663_vm3 = vcmask 933704   ;;  %v1910_v35 = vsel %vm10_vm1, %v3358_v24, %v1906_v23 }
  0x9d   :  { %1685 = vrot.lane.b32.xlu1 %v1684_v27, %s3757_s5  ;;  %v3361_v26 = vld [vmem:[%s6023_s0 + $0x14b] sm:$0x2]   ;;  %v1851_v27 = vsel %vm14_vm2, %v3347_v17, %v1847_v16  ;;  %v3364_v28 = vld [vmem:[%s6023_s0 + $0x13] sm:$0x1]   ;;  %v3355_v33 = vld [vmem:[%s6023_s0 + $0x1bb] sm:$0x8]  }
  0x9e   :  { %v495_v34 = vpop.permute.xlu0 %494   ;;  %v3365_v29 = vld [vmem:[%s6023_s0 + $0x112] sm:$0x2]   ;;  %vm684_vm9 = vcmask 925504   ;;  %v3359_v36 = vld [vmem:[%s6023_s0 + $0x182] sm:$0x8]   ;;  %v1926_v37 = vsel %vm6_vm0, %v3361_v26, %v3360_v25  ;;  %vm705_vm10 = vcmask 917304  }
  0x9f   :  { %498 = vst.msk [vmem:[#allocation2 + $0x10] sm:$0x3] %vm496_vm13, %v495_v34   ;;  %500 = vst.msk [vmem:[#allocation2 + $0x56] sm:$0xc] %vm496_vm13, %v495_v34   ;;  %v516_v46 = vpop.permute.xlu1 %515   ;;  %v3362_v38 = vld [vmem:[%s6023_s0 + $0xca] sm:$0x4]   ;;  %v1947_v39 = vsel %vm6_vm0, %v3365_v29, %v3364_v28 }
  0xa0   :  { %1706 = vrot.lane.b32.xlu0 %v1705_v31, %s3758_s12  ;;  %519 = vst.msk [vmem:[#allocation2 + $0x80] sm:$0x3] %vm517_vm14, %v516_v46   ;;  %521 = vst.msk [vmem:[#allocation2 + $0x36] sm:$0xc] %vm517_vm14, %v516_v46   ;;  %s3761_s12 = smov 52   ;;  %v1872_v31 = vsel %vm14_vm2, %v3351_v20, %v1868_v19  ;;  %v1930_v48 = vsel %vm10_vm1, %v3362_v38, %v1926_v37  ;;  %vm726_vm11 = vcmask 909104  }
  0xa1   :  { %1727 = vrot.lane.b32.xlu1 %v1726_v43, %s3759_s23  ;;  %v3366_v40 = vld [vmem:[%s6023_s0 + $0x91] sm:$0x4]   ;;  %v3368_v41 = vld [vmem:[%s6023_s0 + $0x5a] sm:$0x1]   ;;  %v1893_v43 = vsel %vm14_vm2, %v3355_v33, %v1889_v32  ;;  %v3372_v44 = vld [vmem:[%s6023_s0 + $0x21] sm:$0x1]  }
  0xa2   :  { %v537_v50 = vpop.permute.xlu0 %536   ;;  %v3369_v42 = vld [vmem:[%s6023_s0 + $0x159] sm:$0x2]   ;;  %v3373_v45 = vld [vmem:[%s6023_s0 + $0x120] sm:$0x2]   ;;  %v3363_v49 = vld [vmem:[%s6023_s0 + $0x1c9] sm:$0x8]   ;;  %v1951_v51 = vsel %vm10_vm1, %v3366_v40, %v1947_v39 }
  0xa3   :  { %540 = vst.msk [vmem:[#allocation2 + $0x60] sm:$0x3] %vm538_vm15, %v537_v50   ;;  %542 = vst.msk [vmem:[#allocation2 + $0x16] sm:$0xc] %vm538_vm15, %v537_v50   ;;  %v558_v62 = vpop.permute.xlu1 %557   ;;  %v3367_v52 = vld [vmem:[%s6023_s0 + $0x190] sm:$0x8]   ;;  %v1968_v53 = vsel %vm6_vm0, %v3369_v42, %v3368_v41  ;;  %v1989_v55 = vsel %vm6_vm0, %v3373_v45, %v3372_v44 }
  0xa4   :  { %1747 = vrot.lane.b32.xlu0 %v1746_v47, %s3760_s30  ;;  %561 = vst.msk [vmem:[#allocation2 + $0x40] sm:$0x3] %vm559_vm7, %v558_v62   ;;  %563 = vst.msk [vmem:[#allocation2 + $0x86] sm:$0xc] %vm559_vm7, %v558_v62   ;;  %s3763_s30 = smov 50   ;;  %v1914_v47 = vsel %vm14_vm2, %v3359_v36, %v1910_v35  ;;  %vm747_vm12 = vcmask 900904  }
  0xa5   :  { %1768 = vrot.lane.b32.xlu1 %v1767_v59, %s3761_s12  ;;  %v3370_v54 = vld [vmem:[%s6023_s0 + $0xd8] sm:$0x4]   ;;  %v3374_v56 = vld [vmem:[%s6023_s0 + $0x9f] sm:$0x4]   ;;  %v3376_v57 = vld [vmem:[%s6023_s0 + $0xe8] sm:$0x1]   ;;  %v1934_v59 = vsel %vm14_vm2, %v3363_v49, %v1930_v48 }
  0xa6   :  { %v579_v2 = vpop.permute.xlu0 %578   ;;  %v3377_v58 = vld [vmem:[%s6023_s0 + $0x1e7] sm:$0x2]   ;;  %v3380_v60 = vld [vmem:[%s6023_s0 + $0xaf] sm:$0x1]   ;;  %v1972_v0 = vsel %vm10_vm1, %v3370_v54, %v1968_v53  ;;  %v3371_v1 = vld [vmem:[%s6023_s0 + $0x1d7] sm:$0x8]   ;;  %v1993_v3 = vsel %vm10_vm1, %v3374_v56, %v1989_v55 }
  0xa7   :  { %582 = vst.msk [vmem:[#allocation2 + $0x20] sm:$0x3] %vm580_vm6, %v579_v2   ;;  %584 = vst.msk [vmem:[#allocation2 + $0x66] sm:$0xc] %vm580_vm6, %v579_v2   ;;  %v600_v14 = vpop.permute.xlu1 %599   ;;  %v3381_v61 = vld [vmem:[%s6023_s0 + $0x1ae] sm:$0x2]   ;;  %v2010_v5 = vsel %vm6_vm0, %v3377_v58, %v3376_v57 }
  0xa8   :  { %1789 = vrot.lane.b32.xlu0 %v1788_v63, %s3762_s19  ;;  %602 = vst.msk [vmem:[#allocation2] sm:$0x3] %vm601_vm4, %v600_v14   ;;  %604 = vst.msk [vmem:[#allocation2 + $0x46] sm:$0xc] %vm601_vm4, %v600_v14   ;;  %s3765_s19 = smov 48   ;;  %v1955_v63 = vsel %vm14_vm2, %v3367_v52, %v1951_v51  ;;  %vm768_vm13 = vcmask 892704   ;;  %v2031_v7 = vsel %vm6_vm0, %v3381_v61, %v3380_v60 }
  0xa9   :  { %1810 = vrot.lane.b32.xlu1 %v1809_v11, %s3763_s30  ;;  %v3375_v4 = vld [vmem:[%s6023_s0 + $0x19e] sm:$0x8]   ;;  %v3378_v6 = vld [vmem:[%s6023_s0 + $0x66] sm:$0x4]   ;;  %v3382_v8 = vld [vmem:[%s6023_s0 + $0x2d] sm:$0x4]   ;;  %v1976_v11 = vsel %vm14_vm2, %v3371_v1, %v1972_v0 }
  0xaa   :  { %v620_v18 = vpop.permute.xlu0 %619   ;;  %v3384_v9 = vld [vmem:[%s6023_s0 + $0x76] sm:$0x1]   ;;  %s3770_s4 = smov 43   ;;  %vm789_vm14 = vcmask 884504   ;;  %v3388_v12 = vld [vmem:[%s6023_s0 + $0x3d] sm:$0x1]   ;;  %v2014_v16 = vsel %vm10_vm1, %v3378_v6, %v2010_v5  ;;  %v2035_v19 = vsel %vm10_vm1, %v3382_v8, %v2031_v7 }
  0xab   :  { %623 = vst.msk [vmem:[#allocation2 + $0x28] sm:$0x3] %vm621_vm5, %v620_v18   ;;  %625 = vst.msk [vmem:[#allocation2 + $0x6e] sm:$0xc] %vm621_vm5, %v620_v18   ;;  %v641_v30 = vpop.permute.xlu1 %640   ;;  %v3385_v10 = vld [vmem:[%s6023_s0 + $0x175] sm:$0x2]  }
  0xac   :  { %1831 = vrot.lane.b32.xlu0 %v1830_v15, %s3764_s8  ;;  %644 = vst.msk [vmem:[#allocation2 + $0x8] sm:$0x3] %vm642_vm8, %v641_v30   ;;  %646 = vst.msk [vmem:[#allocation2 + $0x4e] sm:$0xc] %vm642_vm8, %v641_v30   ;;  %s3767_s8 = smov 46   ;;  %v1997_v15 = vsel %vm14_vm2, %v3375_v4, %v1993_v3  ;;  %vm809_vm15 = vcmask 876304   ;;  %v2052_v21 = vsel %vm6_vm0, %v3385_v10, %v3384_v9 }
  0xad   :  { %1852 = vrot.lane.b32.xlu1 %v1851_v27, %s3765_s19  ;;  %v3389_v13 = vld [vmem:[%s6023_s0 + $0x13c] sm:$0x2]   ;;  %v3379_v17 = vld [vmem:[%s6023_s0 + $0x165] sm:$0x8]   ;;  %v3383_v20 = vld [vmem:[%s6023_s0 + $0x12c] sm:$0x8]  }
  0xae   :  { %v662_v34 = vpop.permute.xlu0 %661   ;;  %v3386_v22 = vld [vmem:[%s6023_s0 + $0xf4] sm:$0x4]   ;;  %v2073_v23 = vsel %vm6_vm0, %v3389_v13, %v3388_v12  ;;  %v3390_v24 = vld [vmem:[%s6023_s0 + $0xbb] sm:$0x4]   ;;  %v3392_v25 = vld [vmem:[%s6023_s0 + $0x4] sm:$0x1]   ;;  %v2018_v27 = vsel %vm14_vm2, %v3379_v17, %v2014_v16 }
  0xaf   :  { %665 = vst.msk [vmem:[#allocation2 + $0x30] sm:$0x3] %vm663_vm3, %v662_v34   ;;  %667 = vst.msk [vmem:[#allocation2 + $0x76] sm:$0xc] %vm663_vm3, %v662_v34   ;;  %v683_v46 = vpop.permute.xlu1 %682   ;;  %v3393_v26 = vld [vmem:[%s6023_s0 + $0x103] sm:$0x2]   ;;  %v2056_v32 = vsel %vm10_vm1, %v3386_v22, %v2052_v21  ;;  %v2077_v35 = vsel %vm10_vm1, %v3390_v24, %v2073_v23 }
  0xb0   :  { %1873 = vrot.lane.b32.xlu0 %v1872_v31, %s3766_s26  ;;  %686 = vst.msk [vmem:[#allocation2 + $0x10] sm:$0x3] %vm684_vm9, %v683_v46   ;;  %688 = vst.msk [vmem:[#allocation2 + $0x56] sm:$0xc] %vm684_vm9, %v683_v46   ;;  %s3769_s26 = smov 44   ;;  %s3772_s22 = smov 41   ;;  %v2039_v31 = vsel %vm14_vm2, %v3383_v20, %v2035_v19  ;;  %v2094_v37 = vsel %vm6_vm0, %v3393_v26, %v3392_v25 }
  0xb1   :  { %1894 = vrot.lane.b32.xlu1 %v1893_v43, %s3767_s8  ;;  %vm830_vm7 = vcmask 868104   ;;  %v3396_v28 = vld [vmem:[%s6023_s0 + $0x4b] sm:$0x1]   ;;  %v3387_v33 = vld [vmem:[%s6023_s0 + $0x1f3] sm:$0x8]   ;;  %vm851_vm6 = vcmask 859904  }
  0xb2   :  { %v704_v50 = vpop.permute.xlu0 %703   ;;  %v3397_v29 = vld [vmem:[%s6023_s0 + $0x14a] sm:$0x2]   ;;  %v3391_v36 = vld [vmem:[%s6023_s0 + $0x1ba] sm:$0x8]   ;;  %v3394_v38 = vld [vmem:[%s6023_s0 + $0x82] sm:$0x4]   ;;  %v2060_v43 = vsel %vm14_vm2, %v3387_v33, %v2056_v32 }
  0xb3   :  { %707 = vst.msk [vmem:[#allocation2 + $0x80] sm:$0x3] %vm705_vm10, %v704_v50   ;;  %709 = vst.msk [vmem:[#allocation2 + $0x36] sm:$0xc] %vm705_vm10, %v704_v50   ;;  %v725_v62 = vpop.permute.xlu1 %724   ;;  %v2114_v39 = vsel %vm6_vm0, %v3397_v29, %v3396_v28  ;;  %v3398_v40 = vld [vmem:[%s6023_s0 + $0xc9] sm:$0x4]   ;;  %v2098_v48 = vsel %vm10_vm1, %v3394_v38, %v2094_v37 }
  0xb4   :  { %1915 = vrot.lane.b32.xlu0 %v1914_v47, %s3768_s15  ;;  %728 = vst.msk [vmem:[#allocation2 + $0x60] sm:$0x3] %vm726_vm11, %v725_v62   ;;  %730 = vst.msk [vmem:[#allocation2 + $0x16] sm:$0xc] %vm726_vm11, %v725_v62   ;;  %s3771_s15 = smov 42   ;;  %s3774_s11 = smov 39   ;;  %v2081_v47 = vsel %vm14_vm2, %v3391_v36, %v2077_v35  ;;  %v2118_v51 = vsel %vm10_vm1, %v3398_v40, %v2114_v39 }
  0xb5   :  { %1935 = vrot.lane.b32.xlu1 %v1934_v59, %s3769_s26  ;;  %v3400_v41 = vld [vmem:[%s6023_s0 + $0x12] sm:$0x1]   ;;  %vm872_vm4 = vcmask 851704   ;;  %v3404_v44 = vld [vmem:[%s6023_s0 + $0x59] sm:$0x1]   ;;  %vm893_vm5 = vcmask 843504  }
  0xb6   :  { %v746_v2 = vpop.permute.xlu0 %745   ;;  %v3401_v42 = vld [vmem:[%s6023_s0 + $0x111] sm:$0x2]   ;;  %v3405_v45 = vld [vmem:[%s6023_s0 + $0x158] sm:$0x2]   ;;  %v3395_v49 = vld [vmem:[%s6023_s0 + $0x181] sm:$0x8]  }
  0xb7   :  { %749 = vst.msk [vmem:[#allocation2 + $0x40] sm:$0x3] %vm747_vm12, %v746_v2   ;;  %751 = vst.msk [vmem:[#allocation2 + $0x86] sm:$0xc] %vm747_vm12, %v746_v2   ;;  %v767_v14 = vpop.permute.xlu1 %766   ;;  %v3399_v52 = vld [vmem:[%s6023_s0 + $0x1c8] sm:$0x8]   ;;  %v2135_v53 = vsel %vm6_vm0, %v3401_v42, %v3400_v41  ;;  %v2156_v55 = vsel %vm6_vm0, %v3405_v45, %v3404_v44  ;;  %v2102_v59 = vsel %vm14_vm2, %v3395_v49, %v2098_v48 }
  0xb8   :  { %1956 = vrot.lane.b32.xlu0 %v1955_v63, %s3770_s4  ;;  %770 = vst.msk [vmem:[#allocation2 + $0x20] sm:$0x3] %vm768_vm13, %v767_v14   ;;  %772 = vst.msk [vmem:[#allocation2 + $0x66] sm:$0xc] %vm768_vm13, %v767_v14   ;;  %s3773_s4 = smov 40   ;;  %s3776_s29 = smov 37   ;;  %v2122_v63 = vsel %vm14_vm2, %v3399_v52, %v2118_v51 }
  0xb9   :  { %1977 = vrot.lane.b32.xlu1 %v1976_v11, %s3771_s15  ;;  %v3402_v54 = vld [vmem:[%s6023_s0 + $0x90] sm:$0x4]   ;;  %v3406_v56 = vld [vmem:[%s6023_s0 + $0xd7] sm:$0x4]   ;;  %v3408_v57 = vld [vmem:[%s6023_s0 + $0x20] sm:$0x1]  }
  0xba   :  { %v788_v18 = vpop.permute.xlu0 %787   ;;  %v3409_v58 = vld [vmem:[%s6023_s0 + $0x11f] sm:$0x2]   ;;  %vm914_vm8 = vcmask 835304   ;;  %v3412_v60 = vld [vmem:[%s6023_s0 + $0xe7] sm:$0x1]   ;;  %v2139_v0 = vsel %vm10_vm1, %v3402_v54, %v2135_v53  ;;  %vm935_vm3 = vcmask 827104   ;;  %v2160_v3 = vsel %vm10_vm1, %v3406_v56, %v2156_v55 }
  0xbb   :  { %790 = vst.msk [vmem:[#allocation2] sm:$0x3] %vm789_vm14, %v788_v18   ;;  %792 = vst.msk [vmem:[#allocation2 + $0x46] sm:$0xc] %vm789_vm14, %v788_v18   ;;  %v808_v30 = vpop.permute.xlu1 %807   ;;  %v3413_v61 = vld [vmem:[%s6023_s0 + $0x1e6] sm:$0x2]   ;;  %v2177_v5 = vsel %vm6_vm0, %v3409_v58, %v3408_v57 }
  0xbc   :  { %1998 = vrot.lane.b32.xlu0 %v1997_v15, %s3772_s22  ;;  %811 = vst.msk [vmem:[#allocation2 + $0x28] sm:$0x3] %vm809_vm15, %v808_v30   ;;  %813 = vst.msk [vmem:[#allocation2 + $0x6e] sm:$0xc] %vm809_vm15, %v808_v30   ;;  %s3775_s22 = smov 38   ;;  %v2198_v7 = vsel %vm6_vm0, %v3413_v61, %v3412_v60  ;;  %s3778_s18 = smov 35  }
  0xbd   :  { %2019 = vrot.lane.b32.xlu1 %v2018_v27, %s3773_s4  ;;  %v3403_v1 = vld [vmem:[%s6023_s0 + $0x18f] sm:$0x8]   ;;  %v3407_v4 = vld [vmem:[%s6023_s0 + $0x1d6] sm:$0x8]   ;;  %v3410_v6 = vld [vmem:[%s6023_s0 + $0x9e] sm:$0x4]  }
  0xbe   :  { %v829_v34 = vpop.permute.xlu0 %828   ;;  %v3414_v8 = vld [vmem:[%s6023_s0 + $0x65] sm:$0x4]   ;;  %v3416_v9 = vld [vmem:[%s6023_s0 + $0xae] sm:$0x1]   ;;  %vm956_vm9 = vcmask 818904   ;;  %v2143_v11 = vsel %vm14_vm2, %v3403_v1, %v2139_v0  ;;  %v2164_v15 = vsel %vm14_vm2, %v3407_v4, %v2160_v3  ;;  %v2181_v16 = vsel %vm10_vm1, %v3410_v6, %v2177_v5  ;;  %s3780_s7 = smov 33  }
  0xbf   :  { %832 = vst.msk [vmem:[#allocation2 + $0x8] sm:$0x3] %vm830_vm7, %v829_v34   ;;  %834 = vst.msk [vmem:[#allocation2 + $0x4e] sm:$0xc] %vm830_vm7, %v829_v34   ;;  %v850_v46 = vpop.permute.xlu1 %849   ;;  %v3417_v10 = vld [vmem:[%s6023_s0 + $0x1ad] sm:$0x2]   ;;  %v2202_v19 = vsel %vm10_vm1, %v3414_v8, %v2198_v7 }
  0xc0   :  { %2040 = vrot.lane.b32.xlu0 %v2039_v31, %s3774_s11  ;;  %853 = vst.msk [vmem:[#allocation2 + $0x30] sm:$0x3] %vm851_vm6, %v850_v46   ;;  %855 = vst.msk [vmem:[#allocation2 + $0x76] sm:$0xc] %vm851_vm6, %v850_v46   ;;  %s3777_s11 = smov 36   ;;  %vm977_vm10 = vcmask 810704   ;;  %v2219_v21 = vsel %vm6_vm0, %v3417_v10, %v3416_v9 }
  0xc1   :  { %2061 = vrot.lane.b32.xlu1 %v2060_v43, %s3775_s22  ;;  %v3420_v12 = vld [vmem:[%s6023_s0 + $0x75] sm:$0x1]   ;;  %v3411_v17 = vld [vmem:[%s6023_s0 + $0x19d] sm:$0x8]   ;;  %v3415_v20 = vld [vmem:[%s6023_s0 + $0x164] sm:$0x8]  }
  0xc2   :  { %v871_v50 = vpop.permute.xlu0 %870   ;;  %v3421_v13 = vld [vmem:[%s6023_s0 + $0x174] sm:$0x2]   ;;  %v3418_v22 = vld [vmem:[%s6023_s0 + $0x2c] sm:$0x4]   ;;  %v3424_v25 = vld [vmem:[%s6023_s0 + $0x3c] sm:$0x1]   ;;  %v2185_v27 = vsel %vm14_vm2, %v3411_v17, %v2181_v16  ;;  %v2206_v31 = vsel %vm14_vm2, %v3415_v20, %v2202_v19 }
  0xc3   :  { %874 = vst.msk [vmem:[#allocation2 + $0x10] sm:$0x3] %vm872_vm4, %v871_v50   ;;  %876 = vst.msk [vmem:[#allocation2 + $0x56] sm:$0xc] %vm872_vm4, %v871_v50   ;;  %v892_v62 = vpop.permute.xlu1 %891   ;;  %v2240_v23 = vsel %vm6_vm0, %v3421_v13, %v3420_v12  ;;  %v3422_v24 = vld [vmem:[%s6023_s0 + $0xf3] sm:$0x4]   ;;  %v2223_v32 = vsel %vm10_vm1, %v3418_v22, %v2219_v21 }
  0xc4   :  { %2082 = vrot.lane.b32.xlu0 %v2081_v47, %s3776_s29  ;;  %895 = vst.msk [vmem:[#allocation2 + $0x80] sm:$0x3] %vm893_vm5, %v892_v62   ;;  %897 = vst.msk [vmem:[#allocation2 + $0x36] sm:$0xc] %vm893_vm5, %v892_v62   ;;  %s3779_s29 = smov 34   ;;  %vm997_vm11 = vcmask 802504   ;;  %v2244_v35 = vsel %vm10_vm1, %v3422_v24, %v2240_v23 }
  0xc5   :  { %2103 = vrot.lane.b32.xlu1 %v2102_v59, %s3777_s11  ;;  %v3425_v26 = vld [vmem:[%s6023_s0 + $0x13b] sm:$0x2]   ;;  %v3428_v28 = vld [vmem:[%s6023_s0 + $0x3] sm:$0x1]   ;;  %v3419_v33 = vld [vmem:[%s6023_s0 + $0x12b] sm:$0x8]  }
  0xc6   :  { %v913_v2 = vpop.permute.xlu0 %912   ;;  %v3429_v29 = vld [vmem:[%s6023_s0 + $0x102] sm:$0x2]   ;;  %vm1018_vm12 = vcmask 794304   ;;  %v3423_v36 = vld [vmem:[%s6023_s0 + $0x1f2] sm:$0x8]   ;;  %v2261_v37 = vsel %vm6_vm0, %v3425_v26, %v3424_v25  ;;  %s3782_s25 = smov 31   ;;  %v2227_v43 = vsel %vm14_vm2, %v3419_v33, %v2223_v32 }
  0xc7   :  { %916 = vst.msk [vmem:[#allocation2 + $0x60] sm:$0x3] %vm914_vm8, %v913_v2   ;;  %918 = vst.msk [vmem:[#allocation2 + $0x16] sm:$0xc] %vm914_vm8, %v913_v2   ;;  %v934_v14 = vpop.permute.xlu1 %933   ;;  %v3426_v38 = vld [vmem:[%s6023_s0 + $0xba] sm:$0x4]   ;;  %v2282_v39 = vsel %vm6_vm0, %v3429_v29, %v3428_v28  ;;  %v2248_v47 = vsel %vm14_vm2, %v3423_v36, %v2244_v35 }
  0xc8   :  { %2123 = vrot.lane.b32.xlu0 %v2122_v63, %s3778_s18  ;;  %937 = vst.msk [vmem:[#allocation2 + $0x40] sm:$0x3] %vm935_vm3, %v934_v14   ;;  %939 = vst.msk [vmem:[#allocation2 + $0x86] sm:$0xc] %vm935_vm3, %v934_v14   ;;  %s3781_s18 = smov 32   ;;  %vm1039_vm13 = vcmask 786104   ;;  %v2265_v48 = vsel %vm10_vm1, %v3426_v38, %v2261_v37 }
  0xc9   :  { %2144 = vrot.lane.b32.xlu1 %v2143_v11, %s3779_s29  ;;  %v3430_v40 = vld [vmem:[%s6023_s0 + $0x81] sm:$0x4]   ;;  %v3432_v41 = vld [vmem:[%s6023_s0 + $0x4a] sm:$0x1]   ;;  %v3436_v44 = vld [vmem:[%s6023_s0 + $0x11] sm:$0x1]  }
  0xca   :  { %v955_v18 = vpop.permute.xlu0 %954   ;;  %v3433_v42 = vld [vmem:[%s6023_s0 + $0x149] sm:$0x2]   ;;  %v3437_v45 = vld [vmem:[%s6023_s0 + $0x110] sm:$0x2]   ;;  %v3427_v49 = vld [vmem:[%s6023_s0 + $0x1b9] sm:$0x8]   ;;  %v2286_v51 = vsel %vm10_vm1, %v3430_v40, %v2282_v39 }
  0xcb   :  { %958 = vst.msk [vmem:[#allocation2 + $0x20] sm:$0x3] %vm956_vm9, %v955_v18   ;;  %960 = vst.msk [vmem:[#allocation2 + $0x66] sm:$0xc] %vm956_vm9, %v955_v18   ;;  %v976_v30 = vpop.permute.xlu1 %975   ;;  %vm1060_vm14 = vcmask 777904   ;;  %v2302_v53 = vsel %vm6_vm0, %v3433_v42, %v3432_v41  ;;  %v2323_v55 = vsel %vm6_vm0, %v3437_v45, %v3436_v44  ;;  %s3784_s14 = smov 29   ;;  %v2269_v59 = vsel %vm14_vm2, %v3427_v49, %v2265_v48 }
  0xcc   :  { %2165 = vrot.lane.b32.xlu0 %v2164_v15, %s3780_s7  ;;  %978 = vst.msk [vmem:[#allocation2] sm:$0x3] %vm977_vm10, %v976_v30   ;;  %980 = vst.msk [vmem:[#allocation2 + $0x46] sm:$0xc] %vm977_vm10, %v976_v30   ;;  %v3431_v52 = vld [vmem:[%s6023_s0 + $0x180] sm:$0x8]  }
  0xcd   :  { %2186 = vrot.lane.b32.xlu1 %v2185_v27, %s3781_s18  ;;  %v3434_v54 = vld [vmem:[%s6023_s0 + $0xc8] sm:$0x4]   ;;  %s3783_s7 = smov 30   ;;  %v3438_v56 = vld [vmem:[%s6023_s0 + $0x8f] sm:$0x4]   ;;  %vm1081_vm15 = vcmask 769704   ;;  %v2290_v63 = vsel %vm14_vm2, %v3431_v52, %v2286_v51 }
  0xce   :  { %v996_v34 = vpop.permute.xlu0 %995   ;;  %v3440_v57 = vld [vmem:[%s6023_s0 + $0x58] sm:$0x1]   ;;  %v3444_v60 = vld [vmem:[%s6023_s0 + $0x1f] sm:$0x1]   ;;  %v2306_v0 = vsel %vm10_vm1, %v3434_v54, %v2302_v53  ;;  %v3435_v1 = vld [vmem:[%s6023_s0 + $0x1c7] sm:$0x8]   ;;  %v2327_v3 = vsel %vm10_vm1, %v3438_v56, %v2323_v55 }
  0xcf   :  { %999 = vst.msk [vmem:[#allocation2 + $0x28] sm:$0x3] %vm997_vm11, %v996_v34   ;;  %1001 = vst.msk [vmem:[#allocation2 + $0x6e] sm:$0xc] %vm997_vm11, %v996_v34   ;;  %v1017_v46 = vpop.permute.xlu1 %1016   ;;  %v3441_v58 = vld [vmem:[%s6023_s0 + $0x157] sm:$0x2]   ;;  %v2310_v11 = vsel %vm14_vm2, %v3435_v1, %v2306_v0 }
  0xd0   :  { %2207 = vrot.lane.b32.xlu0 %v2206_v31, %s3782_s25  ;;  %1020 = vst.msk [vmem:[#allocation2 + $0x8] sm:$0x3] %vm1018_vm12, %v1017_v46   ;;  %1022 = vst.msk [vmem:[#allocation2 + $0x4e] sm:$0xc] %vm1018_vm12, %v1017_v46   ;;  %v3445_v61 = vld [vmem:[%s6023_s0 + $0x11e] sm:$0x2]   ;;  %v2344_v5 = vsel %vm6_vm0, %v3441_v58, %v3440_v57 }
  0xd1   :  { %2228 = vrot.lane.b32.xlu1 %v2227_v43, %s3783_s7  ;;  %vm1102_vm7 = vcmask 761504   ;;  %v3439_v4 = vld [vmem:[%s6023_s0 + $0x18e] sm:$0x8]   ;;  %v3442_v6 = vld [vmem:[%s6023_s0 + $0xd6] sm:$0x4]   ;;  %s3785_s25 = smov 28   ;;  %v2365_v7 = vsel %vm6_vm0, %v3445_v61, %v3444_v60 }
  0xd2   :  { %v1038_v50 = vpop.permute.xlu0 %1037   ;;  %v3446_v8 = vld [vmem:[%s6023_s0 + $0x9d] sm:$0x4]   ;;  %v3448_v9 = vld [vmem:[%s6023_s0 + $0xe6] sm:$0x1]   ;;  %s3786_s3 = smov 27   ;;  %vm1123_vm6 = vcmask 753304   ;;  %v2331_v15 = vsel %vm14_vm2, %v3439_v4, %v2327_v3  ;;  %v2348_v16 = vsel %vm10_vm1, %v3442_v6, %v2344_v5 }
  0xd3   :  { %1041 = vst.msk [vmem:[#allocation2 + $0x30] sm:$0x3] %vm1039_vm13, %v1038_v50   ;;  %1043 = vst.msk [vmem:[#allocation2 + $0x76] sm:$0xc] %vm1039_vm13, %v1038_v50   ;;  %v1059_v62 = vpop.permute.xlu1 %1058   ;;  %v3449_v10 = vld [vmem:[%s6023_s0 + $0x1e5] sm:$0x2]   ;;  %v2369_v19 = vsel %vm10_vm1, %v3446_v8, %v2365_v7 }
  0xd4   :  { %2249 = vrot.lane.b32.xlu0 %v2248_v47, %s3784_s14  ;;  %1062 = vst.msk [vmem:[#allocation2 + $0x10] sm:$0x3] %vm1060_vm14, %v1059_v62   ;;  %1064 = vst.msk [vmem:[#allocation2 + $0x56] sm:$0xc] %vm1060_vm14, %v1059_v62   ;;  %v3452_v12 = vld [vmem:[%s6023_s0 + $0xad] sm:$0x1]   ;;  %v2386_v21 = vsel %vm6_vm0, %v3449_v10, %v3448_v9 }
  0xd5   :  { %2270 = vrot.lane.b32.xlu1 %v2269_v59, %s3785_s25  ;;  %v3453_v13 = vld [vmem:[%s6023_s0 + $0x1ac] sm:$0x2]   ;;  %vm1144_vm4 = vcmask 745104   ;;  %v3443_v17 = vld [vmem:[%s6023_s0 + $0x1d5] sm:$0x8]   ;;  %s3787_s16 = smov 26  }
  0xd6   :  { %v1080_v2 = vpop.permute.xlu0 %1079   ;;  %v3447_v20 = vld [vmem:[%s6023_s0 + $0x19c] sm:$0x8]   ;;  %v3450_v22 = vld [vmem:[%s6023_s0 + $0x64] sm:$0x4]   ;;  %v3454_v23 = vld [vmem:[%s6023_s0 + $0x2b] sm:$0x4]   ;;  %v2407_v24 = vsel %vm6_vm0, %v3453_v13, %v3452_v12 }
  0xd7   :  { %1083 = vst.msk [vmem:[#allocation2 + $0x80] sm:$0x3] %vm1081_vm15, %v1080_v2   ;;  %1085 = vst.msk [vmem:[#allocation2 + $0x36] sm:$0xc] %vm1081_vm15, %v1080_v2   ;;  %v1101_v14 = vpop.permute.xlu1 %1100   ;;  %v3456_v25 = vld [vmem:[%s6023_s0 + $0x74] sm:$0x1]  }
  0xd8   :  { %2291 = vrot.lane.b32.xlu0 %v2290_v63, %s3786_s3  ;;  %1104 = vst.msk [vmem:[#allocation2 + $0x60] sm:$0x3] %vm1102_vm7, %v1101_v14   ;;  %1106 = vst.msk [vmem:[#allocation2 + $0x16] sm:$0xc] %vm1102_vm7, %v1101_v14   ;;  %v3457_v26 = vld [vmem:[%s6023_s0 + $0x173] sm:$0x2]  }
  0xd9   :  { %2311 = vrot.lane.b32.xlu1 %v2310_v11, %s3787_s16 }
  0xda   :  { %v1122_v18 = vpop.permute.xlu0 %1121  }
  0xdb   :  { %1125 = vst.msk [vmem:[#allocation2 + $0x40] sm:$0x3] %vm1123_vm6, %v1122_v18   ;;  %1127 = vst.msk [vmem:[#allocation2 + $0x86] sm:$0xc] %vm1123_vm6, %v1122_v18  }
  0xdc   :  { %2 = vsyncpa [#allocation1], 0  ;;  %s3788_s21 = smov 25   ;;  %vm1165_vm5 = vcmask 736904   ;;  %v2352_v27 = vsel %vm14_vm2, %v3443_v17, %v2348_v16  ;;  %v3460_v28 = vld [vmem:[%s6023_s0 + $0x3b] sm:$0x1]   ;;  %v1143_v30 = vpop.permute.xlu1 %1142   ;;  %v2373_v31 = vsel %vm14_vm2, %v3447_v20, %v2369_v19  ;;  %v2390_v32 = vsel %vm10_vm1, %v3450_v22, %v2386_v21 }
  0xdd   :  { %2332 = vrot.lane.b32.xlu0 %v2331_v15, %s3788_s21  ;;  %v3461_v29 = vld [vmem:[%s6023_s0 + $0x13a] sm:$0x2]   ;;  %v3451_v33 = vld [vmem:[%s6023_s0 + $0x163] sm:$0x8]   ;;  %1146 = vst.msk [vmem:[#allocation2 + $0x20] sm:$0x3] %vm1144_vm4, %v1143_v30   ;;  %v2411_v35 = vsel %vm10_vm1, %v3454_v23, %v2407_v24  ;;  %v2428_v37 = vsel %vm6_vm0, %v3457_v26, %v3456_v25 }
  0xde   :  { %1148 = vst.msk [vmem:[#allocation2 + $0x66] sm:$0xc] %vm1144_vm4, %v1143_v30   ;;  %v1164_v34 = vpop.permute.xlu0 %1163   ;;  %vm1185_vm8 = vcmask 728704   ;;  %v3455_v36 = vld [vmem:[%s6023_s0 + $0x12a] sm:$0x8]   ;;  %s3789_s3 = smov 24   ;;  %v2449_v39 = vsel %vm6_vm0, %v3461_v29, %v3460_v28  ;;  %v2394_v43 = vsel %vm14_vm2, %v3451_v33, %v2390_v32 }
  0xdf   :  { %v3458_v38 = vld [vmem:[%s6023_s0 + $0xf2] sm:$0x4]   ;;  %1166 = vst.msk [vmem:[#allocation2] sm:$0x3] %vm1165_vm5, %v1164_v34   ;;  %1168 = vst.msk [vmem:[#allocation2 + $0x46] sm:$0xc] %vm1165_vm5, %v1164_v34   ;;  %2353 = vrot.lane.b32.xlu1 %v2352_v27, %s3789_s3  ;;  %v2415_v47 = vsel %vm14_vm2, %v3455_v36, %v2411_v35 }
  0xe0   :  { %v3462_v40 = vld [vmem:[%s6023_s0 + $0xb9] sm:$0x4]   ;;  %v3464_v41 = vld [vmem:[%s6023_s0 + $0x2] sm:$0x1]   ;;  %s3790_s10 = smov 23   ;;  %vm1206_vm3 = vcmask 720504   ;;  %v1184_v46 = vpop.permute.xlu1 %1183   ;;  %v2432_v48 = vsel %vm10_vm1, %v3458_v38, %v2428_v37 }
  0xe1   :  { %v3465_v42 = vld [vmem:[%s6023_s0 + $0x101] sm:$0x2]   ;;  %2374 = vrot.lane.b32.xlu0 %v2373_v31, %s3790_s10  ;;  %v3468_v44 = vld [vmem:[%s6023_s0 + $0x49] sm:$0x1]   ;;  %v3459_v49 = vld [vmem:[%s6023_s0 + $0x1f1] sm:$0x8]   ;;  %v2453_v51 = vsel %vm10_vm1, %v3462_v40, %v2449_v39 }
  0xe2   :  { %v3469_v45 = vld [vmem:[%s6023_s0 + $0x148] sm:$0x2]   ;;  %1187 = vst.msk [vmem:[#allocation2 + $0x28] sm:$0x3] %vm1185_vm8, %v1184_v46   ;;  %1189 = vst.msk [vmem:[#allocation2 + $0x6e] sm:$0xc] %vm1185_vm8, %v1184_v46   ;;  %v1205_v50 = vpop.permute.xlu0 %1204   ;;  %v2470_v53 = vsel %vm6_vm0, %v3465_v42, %v3464_v41  ;;  %v2436_v59 = vsel %vm14_vm2, %v3459_v49, %v2432_v48 }
  0xe3   :  { %vm1227_vm9 = vcmask 712304   ;;  %v3463_v52 = vld [vmem:[%s6023_s0 + $0x1b8] sm:$0x8]   ;;  %v3466_v54 = vld [vmem:[%s6023_s0 + $0x80] sm:$0x4]   ;;  %s3791_s21 = smov 22   ;;  %v2490_v55 = vsel %vm6_vm0, %v3469_v45, %v3468_v44 }
  0xe4   :  { %1208 = vst.msk [vmem:[#allocation2 + $0x8] sm:$0x3] %vm1206_vm3, %v1205_v50   ;;  %1210 = vst.msk [vmem:[#allocation2 + $0x4e] sm:$0xc] %vm1206_vm3, %v1205_v50   ;;  %2395 = vrot.lane.b32.xlu1 %v2394_v43, %s3791_s21  ;;  %v3470_v56 = vld [vmem:[%s6023_s0 + $0xc7] sm:$0x4]   ;;  %v1226_v62 = vpop.permute.xlu1 %1225   ;;  %v2457_v63 = vsel %vm14_vm2, %v3463_v52, %v2453_v51  ;;  %v2474_v0 = vsel %vm10_vm1, %v3466_v54, %v2470_v53 }
  0xe5   :  { %v3472_v57 = vld [vmem:[%s6023_s0 + $0x10] sm:$0x1]   ;;  %s3792_s28 = smov 21   ;;  %vm1248_vm10 = vcmask 704104   ;;  %v3476_v60 = vld [vmem:[%s6023_s0 + $0x57] sm:$0x1]   ;;  %v2494_v3 = vsel %vm10_vm1, %v3470_v56, %v2490_v55 }
  0xe6   :  { %v3473_v58 = vld [vmem:[%s6023_s0 + $0x10f] sm:$0x2]   ;;  %2416 = vrot.lane.b32.xlu0 %v2415_v47, %s3792_s28  ;;  %v3477_v61 = vld [vmem:[%s6023_s0 + $0x156] sm:$0x2]   ;;  %v3467_v1 = vld [vmem:[%s6023_s0 + $0x17f] sm:$0x8]   ;;  %v1247_v2 = vpop.permute.xlu0 %1246  }
  0xe7   :  { %1229 = vst.msk [vmem:[#allocation2 + $0x30] sm:$0x3] %vm1227_vm9, %v1226_v62   ;;  %1231 = vst.msk [vmem:[#allocation2 + $0x76] sm:$0xc] %vm1227_vm9, %v1226_v62   ;;  %vm1269_vm11 = vcmask 695904   ;;  %v2511_v5 = vsel %vm6_vm0, %v3473_v58, %v3472_v57  ;;  %s3793_s10 = smov 20   ;;  %v2532_v7 = vsel %vm6_vm0, %v3477_v61, %v3476_v60  ;;  %v2478_v11 = vsel %vm14_vm2, %v3467_v1, %v2474_v0 }
  0xe8   :  { %v3471_v4 = vld [vmem:[%s6023_s0 + $0x1c6] sm:$0x8]   ;;  %v3474_v6 = vld [vmem:[%s6023_s0 + $0x8e] sm:$0x4]   ;;  %1250 = vst.msk [vmem:[#allocation2 + $0x10] sm:$0x3] %vm1248_vm10, %v1247_v2   ;;  %2437 = vrot.lane.b32.xlu1 %v2436_v59, %s3793_s10  ;;  %v1268_v14 = vpop.permute.xlu1 %1267  }
  0xe9   :  { %1252 = vst.msk [vmem:[#allocation2 + $0x56] sm:$0xc] %vm1248_vm10, %v1247_v2   ;;  %v3478_v8 = vld [vmem:[%s6023_s0 + $0xd5] sm:$0x4]   ;;  %v3480_v9 = vld [vmem:[%s6023_s0 + $0x1e] sm:$0x1]   ;;  %v2498_v15 = vsel %vm14_vm2, %v3471_v4, %v2494_v3  ;;  %v2515_v16 = vsel %vm10_vm1, %v3474_v6, %v2511_v5 }
  0xea   :  { %v3481_v10 = vld [vmem:[%s6023_s0 + $0x11d] sm:$0x2]   ;;  %s3794_s17 = smov 19   ;;  %vm1290_vm12 = vcmask 687704   ;;  %v3484_v12 = vld [vmem:[%s6023_s0 + $0xe5] sm:$0x1]   ;;  %v1289_v18 = vpop.permute.xlu0 %1288   ;;  %v2536_v19 = vsel %vm10_vm1, %v3478_v8, %v2532_v7 }
  0xeb   :  { %2458 = vrot.lane.b32.xlu0 %v2457_v63, %s3794_s17  ;;  %v3485_v13 = vld [vmem:[%s6023_s0 + $0x1e4] sm:$0x2]   ;;  %v3475_v17 = vld [vmem:[%s6023_s0 + $0x18d] sm:$0x8]   ;;  %1271 = vst.msk [vmem:[#allocation2 + $0x80] sm:$0x3] %vm1269_vm11, %v1268_v14   ;;  %v2553_v21 = vsel %vm6_vm0, %v3481_v10, %v3480_v9 }
  0xec   :  { %1273 = vst.msk [vmem:[#allocation2 + $0x36] sm:$0xc] %vm1269_vm11, %v1268_v14   ;;  %vm1311_vm13 = vcmask 679504   ;;  %v3479_v20 = vld [vmem:[%s6023_s0 + $0x1d4] sm:$0x8]   ;;  %s3795_s28 = smov 18   ;;  %v2574_v23 = vsel %vm6_vm0, %v3485_v13, %v3484_v12  ;;  %v2519_v27 = vsel %vm14_vm2, %v3475_v17, %v2515_v16  ;;  %v1310_v30 = vpop.permute.xlu1 %1309  }
  0xed   :  { %v3482_v22 = vld [vmem:[%s6023_s0 + $0x9c] sm:$0x4]   ;;  %1292 = vst.msk [vmem:[#allocation2 + $0x60] sm:$0x3] %vm1290_vm12, %v1289_v18   ;;  %1294 = vst.msk [vmem:[#allocation2 + $0x16] sm:$0xc] %vm1290_vm12, %v1289_v18   ;;  %2479 = vrot.lane.b32.xlu1 %v2478_v11, %s3795_s28  ;;  %v2540_v31 = vsel %vm14_vm2, %v3479_v20, %v2536_v19 }
  0xee   :  { %v3486_v24 = vld [vmem:[%s6023_s0 + $0x63] sm:$0x4]   ;;  %v3488_v25 = vld [vmem:[%s6023_s0 + $0xac] sm:$0x1]   ;;  %s3796_s6 = smov 17   ;;  %vm1332_vm14 = vcmask 671304   ;;  %v2557_v32 = vsel %vm10_vm1, %v3482_v22, %v2553_v21  ;;  %v1331_v34 = vpop.permute.xlu0 %1330  }
  0xef   :  { %v3489_v26 = vld [vmem:[%s6023_s0 + $0x1ab] sm:$0x2]   ;;  %2499 = vrot.lane.b32.xlu0 %v2498_v15, %s3796_s6  ;;  %v3492_v28 = vld [vmem:[%s6023_s0 + $0x73] sm:$0x1]   ;;  %v3483_v33 = vld [vmem:[%s6023_s0 + $0x19b] sm:$0x8]   ;;  %v2578_v35 = vsel %vm10_vm1, %v3486_v24, %v2574_v23 }
  0xf0   :  { %v3493_v29 = vld [vmem:[%s6023_s0 + $0x172] sm:$0x2]   ;;  %1313 = vst.msk [vmem:[#allocation2 + $0x40] sm:$0x3] %vm1311_vm13, %v1310_v30   ;;  %1315 = vst.msk [vmem:[#allocation2 + $0x86] sm:$0xc] %vm1311_vm13, %v1310_v30   ;;  %v2595_v37 = vsel %vm6_vm0, %v3489_v26, %v3488_v25  ;;  %v2561_v43 = vsel %vm14_vm2, %v3483_v33, %v2557_v32  ;;  %v1352_v46 = vpop.permute.xlu1 %1351  }
  0xf1   :  { %vm1353_vm15 = vcmask 663104   ;;  %v3487_v36 = vld [vmem:[%s6023_s0 + $0x162] sm:$0x8]   ;;  %v3490_v38 = vld [vmem:[%s6023_s0 + $0x2a] sm:$0x4]   ;;  %s3797_s17 = smov 16   ;;  %v2616_v39 = vsel %vm6_vm0, %v3493_v29, %v3492_v28 }
  0xf2   :  { %1334 = vst.msk [vmem:[#allocation2 + $0x20] sm:$0x3] %vm1332_vm14, %v1331_v34   ;;  %1336 = vst.msk [vmem:[#allocation2 + $0x66] sm:$0xc] %vm1332_vm14, %v1331_v34   ;;  %2520 = vrot.lane.b32.xlu1 %v2519_v27, %s3797_s17  ;;  %v3494_v40 = vld [vmem:[%s6023_s0 + $0xf1] sm:$0x4]   ;;  %v2582_v47 = vsel %vm14_vm2, %v3487_v36, %v2578_v35  ;;  %v2599_v48 = vsel %vm10_vm1, %v3490_v38, %v2595_v37  ;;  %v1372_v50 = vpop.permute.xlu0 %1371  }
  0xf3   :  { %v3496_v41 = vld [vmem:[%s6023_s0 + $0x3a] sm:$0x1]   ;;  %s3798_s24 = smov 15   ;;  %vm1373_vm7 = vcmask 654904   ;;  %v3500_v44 = vld [vmem:[%s6023_s0 + $0x1] sm:$0x1]   ;;  %v2620_v51 = vsel %vm10_vm1, %v3494_v40, %v2616_v39 }
  0xf4   :  { %v3497_v42 = vld [vmem:[%s6023_s0 + $0x139] sm:$0x2]   ;;  %2541 = vrot.lane.b32.xlu0 %v2540_v31, %s3798_s24  ;;  %v3501_v45 = vld [vmem:[%s6023_s0 + $0x100] sm:$0x2]   ;;  %v3491_v49 = vld [vmem:[%s6023_s0 + $0x129] sm:$0x8]   ;;  %v1393_v62 = vpop.permute.xlu1 %1392  }
  0xf5   :  { %1354 = vst.msk [vmem:[#allocation2] sm:$0x3] %vm1353_vm15, %v1352_v46   ;;  %1356 = vst.msk [vmem:[#allocation2 + $0x46] sm:$0xc] %vm1353_vm15, %v1352_v46   ;;  %vm1394_vm6 = vcmask 646704   ;;  %v2637_v53 = vsel %vm6_vm0, %v3497_v42, %v3496_v41  ;;  %s3799_s6 = smov 14   ;;  %v2658_v55 = vsel %vm6_vm0, %v3501_v45, %v3500_v44  ;;  %v2603_v59 = vsel %vm14_vm2, %v3491_v49, %v2599_v48 }
  0xf6   :  { %v3495_v52 = vld [vmem:[%s6023_s0 + $0x1f0] sm:$0x8]   ;;  %v3498_v54 = vld [vmem:[%s6023_s0 + $0xb8] sm:$0x4]   ;;  %1375 = vst.msk [vmem:[#allocation2 + $0x28] sm:$0x3] %vm1373_vm7, %v1372_v50   ;;  %2562 = vrot.lane.b32.xlu1 %v2561_v43, %s3799_s6  ;;  %v1414_v2 = vpop.permute.xlu0 %1413  }
  0xf7   :  { %1377 = vst.msk [vmem:[#allocation2 + $0x6e] sm:$0xc] %vm1373_vm7, %v1372_v50   ;;  %v3502_v56 = vld [vmem:[%s6023_s0 + $0x7f] sm:$0x4]   ;;  %v3504_v57 = vld [vmem:[%s6023_s0 + $0x48] sm:$0x1]   ;;  %v2624_v63 = vsel %vm14_vm2, %v3495_v52, %v2620_v51  ;;  %v2641_v0 = vsel %vm10_vm1, %v3498_v54, %v2637_v53 }
  0xf8   :  { %v3505_v58 = vld [vmem:[%s6023_s0 + $0x147] sm:$0x2]   ;;  %s3800_s13 = smov 13   ;;  %vm1415_vm4 = vcmask 638504   ;;  %v3508_v60 = vld [vmem:[%s6023_s0 + $0xf] sm:$0x1]   ;;  %v2662_v3 = vsel %vm10_vm1, %v3502_v56, %v2658_v55  ;;  %v1435_v14 = vpop.permute.xlu1 %1434  }
  0xf9   :  { %2583 = vrot.lane.b32.xlu0 %v2582_v47, %s3800_s13  ;;  %v3509_v61 = vld [vmem:[%s6023_s0 + $0x10e] sm:$0x2]   ;;  %v3499_v1 = vld [vmem:[%s6023_s0 + $0x1b7] sm:$0x8]   ;;  %1396 = vst.msk [vmem:[#allocation2 + $0x8] sm:$0x3] %vm1394_vm6, %v1393_v62   ;;  %v2678_v5 = vsel %vm6_vm0, %v3505_v58, %v3504_v57 }
  0xfa   :  { %1398 = vst.msk [vmem:[#allocation2 + $0x4e] sm:$0xc] %vm1394_vm6, %v1393_v62   ;;  %vm1436_vm5 = vcmask 630304   ;;  %v3503_v4 = vld [vmem:[%s6023_s0 + $0x17e] sm:$0x8]   ;;  %s3801_s24 = smov 12   ;;  %v2699_v7 = vsel %vm6_vm0, %v3509_v61, %v3508_v60  ;;  %v2645_v11 = vsel %vm14_vm2, %v3499_v1, %v2641_v0  ;;  %v1456_v18 = vpop.permute.xlu0 %1455  }
  0xfb   :  { %v3506_v6 = vld [vmem:[%s6023_s0 + $0xc6] sm:$0x4]   ;;  %1417 = vst.msk [vmem:[#allocation2 + $0x30] sm:$0x3] %vm1415_vm4, %v1414_v2   ;;  %1419 = vst.msk [vmem:[#allocation2 + $0x76] sm:$0xc] %vm1415_vm4, %v1414_v2   ;;  %2604 = vrot.lane.b32.xlu1 %v2603_v59, %s3801_s24  ;;  %v2666_v15 = vsel %vm14_vm2, %v3503_v4, %v2662_v3 }
  0xfc   :  { %v3510_v8 = vld [vmem:[%s6023_s0 + $0x8d] sm:$0x4]   ;;  %v3512_v9 = vld [vmem:[%s6023_s0 + $0x56] sm:$0x1]   ;;  %s3802_s2 = smov 11   ;;  %vm1457_vm8 = vcmask 622104   ;;  %v2682_v16 = vsel %vm10_vm1, %v3506_v6, %v2678_v5  ;;  %v1477_v30 = vpop.permute.xlu1 %1476  }
  0xfd   :  { %v3513_v10 = vld [vmem:[%s6023_s0 + $0x155] sm:$0x2]   ;;  %2625 = vrot.lane.b32.xlu0 %v2624_v63, %s3802_s2  ;;  %v3516_v12 = vld [vmem:[%s6023_s0 + $0x1d] sm:$0x1]   ;;  %v3507_v17 = vld [vmem:[%s6023_s0 + $0x1c5] sm:$0x8]   ;;  %v2703_v19 = vsel %vm10_vm1, %v3510_v8, %v2699_v7 }
  0xfe   :  { %v3517_v13 = vld [vmem:[%s6023_s0 + $0x11c] sm:$0x2]   ;;  %1438 = vst.msk [vmem:[#allocation2 + $0x10] sm:$0x3] %vm1436_vm5, %v1435_v14   ;;  %1440 = vst.msk [vmem:[#allocation2 + $0x56] sm:$0xc] %vm1436_vm5, %v1435_v14   ;;  %v2720_v21 = vsel %vm6_vm0, %v3513_v10, %v3512_v9  ;;  %v2686_v27 = vsel %vm14_vm2, %v3507_v17, %v2682_v16  ;;  %v1498_v34 = vpop.permute.xlu0 %1497  }
  0xff   :  { %vm1478_vm3 = vcmask 613904   ;;  %v3511_v20 = vld [vmem:[%s6023_s0 + $0x18c] sm:$0x8]   ;;  %v3514_v22 = vld [vmem:[%s6023_s0 + $0xd4] sm:$0x4]   ;;  %s3803_s13 = smov 10   ;;  %v2741_v23 = vsel %vm6_vm0, %v3517_v13, %v3516_v12 }
 0x100   :  { %1459 = vst.msk [vmem:[#allocation2 + $0x80] sm:$0x3] %vm1457_vm8, %v1456_v18   ;;  %1461 = vst.msk [vmem:[#allocation2 + $0x36] sm:$0xc] %vm1457_vm8, %v1456_v18   ;;  %2646 = vrot.lane.b32.xlu1 %v2645_v11, %s3803_s13  ;;  %v3518_v24 = vld [vmem:[%s6023_s0 + $0x9b] sm:$0x4]   ;;  %v2707_v31 = vsel %vm14_vm2, %v3511_v20, %v2703_v19  ;;  %v2724_v32 = vsel %vm10_vm1, %v3514_v22, %v2720_v21  ;;  %v1519_v46 = vpop.permute.xlu1 %1518  }
 0x101   :  { %v3520_v25 = vld [vmem:[%s6023_s0 + $0xe4] sm:$0x1]   ;;  %s3804_s20 = smov 9   ;;  %vm1499_vm9 = vcmask 605704   ;;  %v3524_v28 = vld [vmem:[%s6023_s0 + $0xab] sm:$0x1]   ;;  %v2745_v35 = vsel %vm10_vm1, %v3518_v24, %v2741_v23 }
 0x102   :  { %v3521_v26 = vld [vmem:[%s6023_s0 + $0x1e3] sm:$0x2]   ;;  %2667 = vrot.lane.b32.xlu0 %v2666_v15, %s3804_s20  ;;  %v3525_v29 = vld [vmem:[%s6023_s0 + $0x1aa] sm:$0x2]   ;;  %v3515_v33 = vld [vmem:[%s6023_s0 + $0x1d3] sm:$0x8]   ;;  %v1540_v50 = vpop.permute.xlu0 %1539  }
 0x103   :  { %1480 = vst.msk [vmem:[#allocation2 + $0x60] sm:$0x3] %vm1478_vm3, %v1477_v30   ;;  %1482 = vst.msk [vmem:[#allocation2 + $0x16] sm:$0xc] %vm1478_vm3, %v1477_v30   ;;  %vm1520_vm10 = vcmask 597504   ;;  %v2762_v37 = vsel %vm6_vm0, %v3521_v26, %v3520_v25  ;;  %s3805_s2 = smov 8   ;;  %v2783_v39 = vsel %vm6_vm0, %v3525_v29, %v3524_v28  ;;  %v2728_v43 = vsel %vm14_vm2, %v3515_v33, %v2724_v32 }
 0x104   :  { %v3519_v36 = vld [vmem:[%s6023_s0 + $0x19a] sm:$0x8]   ;;  %v3522_v38 = vld [vmem:[%s6023_s0 + $0x62] sm:$0x4]   ;;  %1501 = vst.msk [vmem:[#allocation2 + $0x40] sm:$0x3] %vm1499_vm9, %v1498_v34   ;;  %2687 = vrot.lane.b32.xlu1 %v2686_v27, %s3805_s2  ;;  %v1560_v58 = vpop.permute.xlu1 %1559  }
 0x105   :  { %1503 = vst.msk [vmem:[#allocation2 + $0x86] sm:$0xc] %vm1499_vm9, %v1498_v34   ;;  %v3526_v40 = vld [vmem:[%s6023_s0 + $0x29] sm:$0x4]   ;;  %v3528_v41 = vld [vmem:[%s6023_s0 + $0x72] sm:$0x1]   ;;  %v2749_v47 = vsel %vm14_vm2, %v3519_v36, %v2745_v35  ;;  %v2766_v48 = vsel %vm10_vm1, %v3522_v38, %v2762_v37 }
 0x106   :  { %v3529_v42 = vld [vmem:[%s6023_s0 + $0x171] sm:$0x2]   ;;  %s3806_s9 = smov 7   ;;  %vm1541_vm11 = vcmask 589304   ;;  %v3532_v44 = vld [vmem:[%s6023_s0 + $0x39] sm:$0x1]   ;;  %v2787_v51 = vsel %vm10_vm1, %v3526_v40, %v2783_v39  ;;  %v1581_v62 = vpop.permute.xlu0 %1580  }
 0x107   :  { %2708 = vrot.lane.b32.xlu0 %v2707_v31, %s3806_s9  ;;  %v3533_v45 = vld [vmem:[%s6023_s0 + $0x138] sm:$0x2]   ;;  %v3523_v49 = vld [vmem:[%s6023_s0 + $0x161] sm:$0x8]   ;;  %1522 = vst.msk [vmem:[#allocation2 + $0x20] sm:$0x3] %vm1520_vm10, %v1519_v46   ;;  %v2804_v53 = vsel %vm6_vm0, %v3529_v42, %v3528_v41 }
 0x108   :  { %1524 = vst.msk [vmem:[#allocation2 + $0x66] sm:$0xc] %vm1520_vm10, %v1519_v46   ;;  %v3527_v52 = vld [vmem:[%s6023_s0 + $0x128] sm:$0x8]   ;;  %v3530_v54 = vld [vmem:[%s6023_s0 + $0xf0] sm:$0x4]   ;;  %v2825_v55 = vsel %vm6_vm0, %v3533_v45, %v3532_v44  ;;  %v2770_v57 = vsel %vm14_vm2, %v3523_v49, %v2766_v48  ;;  %v1602_v2 = vpop.permute.xlu1 %1601  }
 0x109   :  { %1542 = vst.msk [vmem:[#allocation2] sm:$0x3] %vm1541_vm11, %v1540_v50   ;;  %1544 = vst.msk [vmem:[#allocation2 + $0x46] sm:$0xc] %vm1541_vm11, %v1540_v50   ;;  %s3807_s20 = smov 6   ;;  %vm1561_vm12 = vcmask 581104   ;;  %v2791_v59 = vsel %vm14_vm2, %v3527_v52, %v2787_v51  ;;  %v2808_v60 = vsel %vm10_vm1, %v3530_v54, %v2804_v53 }
 0x10a   :  { %2729 = vrot.lane.b32.xlu1 %v2728_v43, %s3807_s20  ;;  %v3534_v56 = vld [vmem:[%s6023_s0 + $0xb7] sm:$0x4]   ;;  %s3808_s23 = smov 5   ;;  %vm1582_vm0 = vcmask 572904   ;;  %v3531_v61 = vld [vmem:[%s6023_s0 + $0x1ef] sm:$0x8]   ;;  %v1623_v4 = vpop.permute.xlu0 %1622  }
 0x10b   :  { %2750 = vrot.lane.b32.xlu0 %v2749_v47, %s3808_s23  ;;  %1563 = vst.msk [vmem:[#allocation2 + $0x28] sm:$0x3] %vm1561_vm12, %v1560_v58   ;;  %1565 = vst.msk [vmem:[#allocation2 + $0x6e] sm:$0xc] %vm1561_vm12, %v1560_v58   ;;  %v2829_v63 = vsel %vm10_vm1, %v3534_v56, %v2825_v55  ;;  %v3535_v0 = vld [vmem:[%s6023_s0 + $0x1b6] sm:$0x8]   ;;  %v2812_v1 = vsel %vm14_vm2, %v3531_v61, %v2808_v60 }
 0x10c   :  { %1584 = vst.msk [vmem:[#allocation2 + $0x8] sm:$0x3] %vm1582_vm0, %v1581_v62   ;;  %1586 = vst.msk [vmem:[#allocation2 + $0x4e] sm:$0xc] %vm1582_vm0, %v1581_v62   ;;  %s3809_s0 = smov 4   ;;  %vm1603_vm1 = vcmask 564704   ;;  %v2833_v3 = vsel %vm14_vm2, %v3535_v0, %v2829_v63  ;;  %v1644_v5 = vpop.permute.xlu1 %1643  }
 0x10d   :  { %s3810_s28 = smov 3   ;;  %vm1624_vm13 = vcmask 556504   ;;  %1605 = vst.msk [vmem:[#allocation2 + $0x30] sm:$0x3] %vm1603_vm1, %v1602_v2   ;;  %1607 = vst.msk [vmem:[#allocation2 + $0x76] sm:$0xc] %vm1603_vm1, %v1602_v2  }
 0x10e   :  { %2771 = vrot.lane.b32.xlu1 %v2770_v57, %s3809_s0  ;;  %1626 = vst.msk [vmem:[#allocation2 + $0x10] sm:$0x3] %vm1624_vm13, %v1623_v4   ;;  %1628 = vst.msk [vmem:[#allocation2 + $0x56] sm:$0xc] %vm1624_vm13, %v1623_v4   ;;  %s3811_s29 = smov 2   ;;  %vm1645_vm2 = vcmask 548304   ;;  %v1665_v6 = vpop.permute.xlu0 %1664  }
 0x10f   :  { %2792 = vrot.lane.b32.xlu0 %v2791_v59, %s3810_s28  ;;  %s3812_s30 = smov 1   ;;  %vm1666_vm14 = vcmask 540104   ;;  %1647 = vst.msk [vmem:[#allocation2 + $0x80] sm:$0x3] %vm1645_vm2, %v1644_v5   ;;  %1649 = vst.msk [vmem:[#allocation2 + $0x36] sm:$0xc] %vm1645_vm2, %v1644_v5  }
 0x110   :  { %1668 = vst.msk [vmem:[#allocation2 + $0x60] sm:$0x3] %vm1666_vm14, %v1665_v6   ;;  %1670 = vst.msk [vmem:[#allocation2 + $0x16] sm:$0xc] %vm1666_vm14, %v1665_v6   ;;  %vm1687_vm15 = vcmask 531904   ;;  %vm1708_vm7 = vcmask 523704   ;;  %v1686_v7 = vpop.permute.xlu1 %1685  }
 0x111   :  { %1689 = vst.msk [vmem:[#allocation2 + $0x40] sm:$0x3] %vm1687_vm15, %v1686_v7   ;;  %1691 = vst.msk [vmem:[#allocation2 + $0x86] sm:$0xc] %vm1687_vm15, %v1686_v7   ;;  %vm1729_vm6 = vcmask 515504   ;;  %vm1749_vm4 = vcmask 507304  }
 0x112   :  { %2813 = vrot.lane.b32.xlu1 %v2812_v1, %s3811_s29  ;;  %v1707_v8 = vpop.permute.xlu0 %1706   ;;  %vm1770_vm5 = vcmask 499104   ;;  %vm1791_vm8 = vcmask 490904   ;;  %vm1812_vm3 = vcmask 482704   ;;  %vm1833_vm9 = vcmask 474504   ;;  %s3813_s2 = smov [#allocation0]  }
 0x113   :  { %2834 = vrot.lane.b32.xlu0 %v2833_v3, %s3812_s30  ;;  %1710 = vst.msk [vmem:[#allocation2 + $0x20] sm:$0x3] %vm1708_vm7, %v1707_v8   ;;  %1712 = vst.msk [vmem:[#allocation2 + $0x66] sm:$0xc] %vm1708_vm7, %v1707_v8   ;;  %vm1854_vm10 = vcmask 466304   ;;  %vm1875_vm11 = vcmask 458104  }
 0x114   :  { %v1728_v9 = vpop.permute.xlu1 %1727   ;;  %vm1896_vm12 = vcmask 449904   ;;  %vm1917_vm0 = vcmask 441704   ;;  %vm1937_vm1 = vcmask 433504   ;;  %vm1958_vm13 = vcmask 425304   ;;  %s2971_s3 = sshll.u32 %s3813_s2, 4  ;;  %s2972_s3 = int_to_ptr.vmem [resolvable:$true] %s2971_s3 }
 0x115   :  { %1730 = vst.msk [vmem:[#allocation2] sm:$0x3] %vm1729_vm6, %v1728_v9   ;;  %1732 = vst.msk [vmem:[#allocation2 + $0x46] sm:$0xc] %vm1729_vm6, %v1728_v9   ;;  %vm1979_vm2 = vcmask 417104   ;;  %vm2000_vm14 = vcmask 408904   ;;  %p3669_p1 = scmp.lt.s32.totalorder %s2972_s3, %s2972_s3 }
 0x116   :  { %v1748_v10 = vpop.permute.xlu0 %1747   ;;  %vm2021_vm15 = vcmask 400704   ;;  %vm2042_vm7 = vcmask 392504   ;;  %vm2063_vm6 = vcmask 384304   ;;  %s3664_s4 = scalar_lea.vmem %s2972_s3, 576 }
 0x117   :  { %1751 = vst.msk [vmem:[#allocation2 + $0x28] sm:$0x3] %vm1749_vm4, %v1748_v10   ;;  %1753 = vst.msk [vmem:[#allocation2 + $0x6e] sm:$0xc] %vm1749_vm4, %v1748_v10   ;;  %vm2084_vm4 = vcmask 376104   ;;  %p3665_p0 = scmp.ne.s32.totalorder %s2972_s3, %s3664_s4  ;;  %p3670_p2 = scmp.lt.s32.totalorder %s3664_s4, %s3664_s4 }
 0x118   :  { %v1769_v11 = vpop.permute.xlu1 %1768  }
 0x119   :  { %1772 = vst.msk [vmem:[#allocation2 + $0x8] sm:$0x3] %vm1770_vm5, %v1769_v11   ;;  %1774 = vst.msk [vmem:[#allocation2 + $0x4e] sm:$0xc] %vm1770_vm5, %v1769_v11   ;;  %vm2105_vm5 = vcmask 367904   ;;  %p3671_p3 = por %p3670_p2, %p3669_p1 }
 0x11a   :  { %v1790_v12 = vpop.permute.xlu0 %1789  }
 0x11b   :  { %1793 = vst.msk [vmem:[#allocation2 + $0x30] sm:$0x3] %vm1791_vm8, %v1790_v12   ;;  %1795 = vst.msk [vmem:[#allocation2 + $0x76] sm:$0xc] %vm1791_vm8, %v1790_v12   ;;  %vm2125_vm8 = vcmask 359704   ;;  %p3672_p4 = pnand %p3671_p3, %p3665_p0 }
 0x11c   :  { %v1811_v13 = vpop.permute.xlu1 %1810  }
 0x11d   :  { %1814 = vst.msk [vmem:[#allocation2 + $0x10] sm:$0x3] %vm1812_vm3, %v1811_v13   ;;  %1816 = vst.msk [vmem:[#allocation2 + $0x56] sm:$0xc] %vm1812_vm3, %v1811_v13   ;;  %vm2146_vm3 = vcmask 351504  }
 0x11e   :  { %v1832_v14 = vpop.permute.xlu0 %1831  }
 0x11f   :  { %1835 = vst.msk [vmem:[#allocation2 + $0x80] sm:$0x3] %vm1833_vm9, %v1832_v14   ;;  %1837 = vst.msk [vmem:[#allocation2 + $0x36] sm:$0xc] %vm1833_vm9, %v1832_v14   ;;  %vm2167_vm9 = vcmask 343304  }
 0x120   :  { %v1853_v15 = vpop.permute.xlu1 %1852  }
 0x121   :  { %1856 = vst.msk [vmem:[#allocation2 + $0x60] sm:$0x3] %vm1854_vm10, %v1853_v15   ;;  %1858 = vst.msk [vmem:[#allocation2 + $0x16] sm:$0xc] %vm1854_vm10, %v1853_v15   ;;  %vm2188_vm10 = vcmask 335104  }
 0x122   :  { %v1874_v16 = vpop.permute.xlu0 %1873  }
 0x123   :  { %1877 = vst.msk [vmem:[#allocation2 + $0x40] sm:$0x3] %vm1875_vm11, %v1874_v16   ;;  %1879 = vst.msk [vmem:[#allocation2 + $0x86] sm:$0xc] %vm1875_vm11, %v1874_v16   ;;  %vm2209_vm11 = vcmask 326904  }
 0x124   :  { %v1895_v17 = vpop.permute.xlu1 %1894  }
 0x125   :  { %1898 = vst.msk [vmem:[#allocation2 + $0x20] sm:$0x3] %vm1896_vm12, %v1895_v17   ;;  %1900 = vst.msk [vmem:[#allocation2 + $0x66] sm:$0xc] %vm1896_vm12, %v1895_v17   ;;  %vm2230_vm12 = vcmask 318704  }
 0x126   :  { %v1916_v18 = vpop.permute.xlu0 %1915  }
 0x127   :  { %1918 = vst.msk [vmem:[#allocation2] sm:$0x3] %vm1917_vm0, %v1916_v18   ;;  %1920 = vst.msk [vmem:[#allocation2 + $0x46] sm:$0xc] %vm1917_vm0, %v1916_v18   ;;  %vm2251_vm0 = vcmask 310504  }
 0x128   :  { %v1936_v19 = vpop.permute.xlu1 %1935  }
 0x129   :  { %1939 = vst.msk [vmem:[#allocation2 + $0x28] sm:$0x3] %vm1937_vm1, %v1936_v19   ;;  %1941 = vst.msk [vmem:[#allocation2 + $0x6e] sm:$0xc] %vm1937_vm1, %v1936_v19   ;;  %vm2272_vm1 = vcmask 302304  }
 0x12a   :  { %v1957_v20 = vpop.permute.xlu0 %1956  }
 0x12b   :  { %1960 = vst.msk [vmem:[#allocation2 + $0x8] sm:$0x3] %vm1958_vm13, %v1957_v20   ;;  %1962 = vst.msk [vmem:[#allocation2 + $0x4e] sm:$0xc] %vm1958_vm13, %v1957_v20   ;;  %vm2293_vm13 = vcmask 294104  }
 0x12c   :  { %v1978_v21 = vpop.permute.xlu1 %1977  }
 0x12d   :  { %1981 = vst.msk [vmem:[#allocation2 + $0x30] sm:$0x3] %vm1979_vm2, %v1978_v21   ;;  %1983 = vst.msk [vmem:[#allocation2 + $0x76] sm:$0xc] %vm1979_vm2, %v1978_v21   ;;  %vm2313_vm2 = vcmask 285904  }
 0x12e   :  { %v1999_v22 = vpop.permute.xlu0 %1998  }
 0x12f   :  { %2002 = vst.msk [vmem:[#allocation2 + $0x10] sm:$0x3] %vm2000_vm14, %v1999_v22   ;;  %2004 = vst.msk [vmem:[#allocation2 + $0x56] sm:$0xc] %vm2000_vm14, %v1999_v22   ;;  %vm2334_vm14 = vcmask 277704  }
 0x130   :  { %v2020_v23 = vpop.permute.xlu1 %2019  }
 0x131   :  { %2023 = vst.msk [vmem:[#allocation2 + $0x80] sm:$0x3] %vm2021_vm15, %v2020_v23   ;;  %2025 = vst.msk [vmem:[#allocation2 + $0x36] sm:$0xc] %vm2021_vm15, %v2020_v23   ;;  %vm2355_vm15 = vcmask 269504  }
 0x132   :  { %v2041_v24 = vpop.permute.xlu0 %2040  }
 0x133   :  { %2044 = vst.msk [vmem:[#allocation2 + $0x60] sm:$0x3] %vm2042_vm7, %v2041_v24   ;;  %2046 = vst.msk [vmem:[#allocation2 + $0x16] sm:$0xc] %vm2042_vm7, %v2041_v24   ;;  %vm2376_vm7 = vcmask 261304  }
 0x134   :  { %v2062_v25 = vpop.permute.xlu1 %2061  }
 0x135   :  { %2065 = vst.msk [vmem:[#allocation2 + $0x40] sm:$0x3] %vm2063_vm6, %v2062_v25   ;;  %2067 = vst.msk [vmem:[#allocation2 + $0x86] sm:$0xc] %vm2063_vm6, %v2062_v25   ;;  %vm2397_vm6 = vcmask 253104  }
 0x136   :  { %v2083_v26 = vpop.permute.xlu0 %2082  }
 0x137   :  { %2086 = vst.msk [vmem:[#allocation2 + $0x20] sm:$0x3] %vm2084_vm4, %v2083_v26   ;;  %2088 = vst.msk [vmem:[#allocation2 + $0x66] sm:$0xc] %vm2084_vm4, %v2083_v26   ;;  %vm2418_vm4 = vcmask 244904  }
 0x138   :  { %v2104_v27 = vpop.permute.xlu1 %2103  }
 0x139   :  { %2106 = vst.msk [vmem:[#allocation2] sm:$0x3] %vm2105_vm5, %v2104_v27   ;;  %2108 = vst.msk [vmem:[#allocation2 + $0x46] sm:$0xc] %vm2105_vm5, %v2104_v27   ;;  %vm2439_vm5 = vcmask 236704  }
 0x13a   :  { %v2124_v28 = vpop.permute.xlu0 %2123  }
 0x13b   :  { %2127 = vst.msk [vmem:[#allocation2 + $0x28] sm:$0x3] %vm2125_vm8, %v2124_v28   ;;  %2129 = vst.msk [vmem:[#allocation2 + $0x6e] sm:$0xc] %vm2125_vm8, %v2124_v28   ;;  %vm2460_vm8 = vcmask 228504  }
 0x13c   :  { %v2145_v29 = vpop.permute.xlu1 %2144  }
 0x13d   :  { %2148 = vst.msk [vmem:[#allocation2 + $0x8] sm:$0x3] %vm2146_vm3, %v2145_v29   ;;  %2150 = vst.msk [vmem:[#allocation2 + $0x4e] sm:$0xc] %vm2146_vm3, %v2145_v29   ;;  %vm2481_vm3 = vcmask 220304  }
 0x13e   :  { %v2166_v30 = vpop.permute.xlu0 %2165  }
 0x13f   :  { %2169 = vst.msk [vmem:[#allocation2 + $0x30] sm:$0x3] %vm2167_vm9, %v2166_v30   ;;  %2171 = vst.msk [vmem:[#allocation2 + $0x76] sm:$0xc] %vm2167_vm9, %v2166_v30   ;;  %vm2501_vm9 = vcmask 212104  }
 0x140   :  { %v2187_v31 = vpop.permute.xlu1 %2186  }
 0x141   :  { %2190 = vst.msk [vmem:[#allocation2 + $0x10] sm:$0x3] %vm2188_vm10, %v2187_v31   ;;  %2192 = vst.msk [vmem:[#allocation2 + $0x56] sm:$0xc] %vm2188_vm10, %v2187_v31   ;;  %vm2522_vm10 = vcmask 203904  }
 0x142   :  { %v2208_v32 = vpop.permute.xlu0 %2207  }
 0x143   :  { %2211 = vst.msk [vmem:[#allocation2 + $0x80] sm:$0x3] %vm2209_vm11, %v2208_v32   ;;  %2213 = vst.msk [vmem:[#allocation2 + $0x36] sm:$0xc] %vm2209_vm11, %v2208_v32   ;;  %vm2543_vm11 = vcmask 195704  }
 0x144   :  { %v2229_v33 = vpop.permute.xlu1 %2228  }
 0x145   :  { %2232 = vst.msk [vmem:[#allocation2 + $0x60] sm:$0x3] %vm2230_vm12, %v2229_v33   ;;  %2234 = vst.msk [vmem:[#allocation2 + $0x16] sm:$0xc] %vm2230_vm12, %v2229_v33   ;;  %vm2564_vm12 = vcmask 187504  }
 0x146   :  { %v2250_v34 = vpop.permute.xlu0 %2249  }
 0x147   :  { %2253 = vst.msk [vmem:[#allocation2 + $0x40] sm:$0x3] %vm2251_vm0, %v2250_v34   ;;  %2255 = vst.msk [vmem:[#allocation2 + $0x86] sm:$0xc] %vm2251_vm0, %v2250_v34   ;;  %vm2585_vm0 = vcmask 179304  }
 0x148   :  { %v2271_v35 = vpop.permute.xlu1 %2270  }
 0x149   :  { %2274 = vst.msk [vmem:[#allocation2 + $0x20] sm:$0x3] %vm2272_vm1, %v2271_v35   ;;  %2276 = vst.msk [vmem:[#allocation2 + $0x66] sm:$0xc] %vm2272_vm1, %v2271_v35   ;;  %vm2606_vm1 = vcmask 171104  }
 0x14a   :  { %v2292_v36 = vpop.permute.xlu0 %2291  }
 0x14b   :  { %2294 = vst.msk [vmem:[#allocation2] sm:$0x3] %vm2293_vm13, %v2292_v36   ;;  %2296 = vst.msk [vmem:[#allocation2 + $0x46] sm:$0xc] %vm2293_vm13, %v2292_v36   ;;  %vm2627_vm13 = vcmask 162904  }
 0x14c   :  { %v2312_v37 = vpop.permute.xlu1 %2311  }
 0x14d   :  { %2315 = vst.msk [vmem:[#allocation2 + $0x28] sm:$0x3] %vm2313_vm2, %v2312_v37   ;;  %2317 = vst.msk [vmem:[#allocation2 + $0x6e] sm:$0xc] %vm2313_vm2, %v2312_v37   ;;  %vm2648_vm2 = vcmask 154704  }
 0x14f   :  { %v2333_v38 = vpop.permute.xlu0 %2332  }
 0x150   :  { %2336 = vst.msk [vmem:[#allocation2 + $0x8] sm:$0x3] %vm2334_vm14, %v2333_v38   ;;  %2338 = vst.msk [vmem:[#allocation2 + $0x4e] sm:$0xc] %vm2334_vm14, %v2333_v38   ;;  %vm2669_vm14 = vcmask 146504  }
 0x151   :  { %v2354_v39 = vpop.permute.xlu1 %2353  }
 0x152   :  { %2357 = vst.msk [vmem:[#allocation2 + $0x30] sm:$0x3] %vm2355_vm15, %v2354_v39   ;;  %2359 = vst.msk [vmem:[#allocation2 + $0x76] sm:$0xc] %vm2355_vm15, %v2354_v39   ;;  %vm2689_vm15 = vcmask 138304  }
 0x153   :  { %v2375_v40 = vpop.permute.xlu0 %2374  }
 0x154   :  { %2378 = vst.msk [vmem:[#allocation2 + $0x10] sm:$0x3] %vm2376_vm7, %v2375_v40   ;;  %2380 = vst.msk [vmem:[#allocation2 + $0x56] sm:$0xc] %vm2376_vm7, %v2375_v40   ;;  %vm2710_vm7 = vcmask 130104  }
 0x156   :  { %v2396_v41 = vpop.permute.xlu1 %2395  }
 0x157   :  { %2399 = vst.msk [vmem:[#allocation2 + $0x80] sm:$0x3] %vm2397_vm6, %v2396_v41   ;;  %2401 = vst.msk [vmem:[#allocation2 + $0x36] sm:$0xc] %vm2397_vm6, %v2396_v41   ;;  %vm2731_vm6 = vcmask 121904  }
 0x158   :  { %v2417_v42 = vpop.permute.xlu0 %2416  }
 0x159   :  { %2420 = vst.msk [vmem:[#allocation2 + $0x60] sm:$0x3] %vm2418_vm4, %v2417_v42   ;;  %2422 = vst.msk [vmem:[#allocation2 + $0x16] sm:$0xc] %vm2418_vm4, %v2417_v42   ;;  %vm2752_vm4 = vcmask 113704  }
 0x15a   :  { %v2438_v43 = vpop.permute.xlu1 %2437  }
 0x15b   :  { %2441 = vst.msk [vmem:[#allocation2 + $0x40] sm:$0x3] %vm2439_vm5, %v2438_v43   ;;  %2443 = vst.msk [vmem:[#allocation2 + $0x86] sm:$0xc] %vm2439_vm5, %v2438_v43   ;;  %vm2773_vm5 = vcmask 105504  }
 0x15d   :  { %v2459_v44 = vpop.permute.xlu0 %2458  }
 0x15e   :  { %2462 = vst.msk [vmem:[#allocation2 + $0x20] sm:$0x3] %vm2460_vm8, %v2459_v44   ;;  %2464 = vst.msk [vmem:[#allocation2 + $0x66] sm:$0xc] %vm2460_vm8, %v2459_v44   ;;  %vm2794_vm8 = vcmask 97304  }
 0x15f   :  { %v2480_v45 = vpop.permute.xlu1 %2479  }
 0x160   :  { %2482 = vst.msk [vmem:[#allocation2] sm:$0x3] %vm2481_vm3, %v2480_v45   ;;  %2484 = vst.msk [vmem:[#allocation2 + $0x46] sm:$0xc] %vm2481_vm3, %v2480_v45   ;;  %vm2815_vm3 = vcmask 89104  }
 0x161   :  { %v2500_v46 = vpop.permute.xlu0 %2499  }
 0x162   :  { %2503 = vst.msk [vmem:[#allocation2 + $0x28] sm:$0x3] %vm2501_vm9, %v2500_v46   ;;  %2505 = vst.msk [vmem:[#allocation2 + $0x6e] sm:$0xc] %vm2501_vm9, %v2500_v46   ;;  %vm2836_vm9 = vcmask 80904  }
 0x164   :  { %v2521_v47 = vpop.permute.xlu1 %2520  }
 0x165   :  { %2524 = vst.msk [vmem:[#allocation2 + $0x8] sm:$0x3] %vm2522_vm10, %v2521_v47   ;;  %2526 = vst.msk [vmem:[#allocation2 + $0x4e] sm:$0xc] %vm2522_vm10, %v2521_v47  }
 0x166   :  { %v2542_v48 = vpop.permute.xlu0 %2541  }
 0x167   :  { %2545 = vst.msk [vmem:[#allocation2 + $0x30] sm:$0x3] %vm2543_vm11, %v2542_v48   ;;  %2547 = vst.msk [vmem:[#allocation2 + $0x76] sm:$0xc] %vm2543_vm11, %v2542_v48  }
 0x168   :  { %v2563_v49 = vpop.permute.xlu1 %2562  }
 0x169   :  { %2566 = vst.msk [vmem:[#allocation2 + $0x10] sm:$0x3] %vm2564_vm12, %v2563_v49   ;;  %2568 = vst.msk [vmem:[#allocation2 + $0x56] sm:$0xc] %vm2564_vm12, %v2563_v49  }
 0x16b   :  { %v2584_v50 = vpop.permute.xlu0 %2583  }
 0x16c   :  { %2587 = vst.msk [vmem:[#allocation2 + $0x80] sm:$0x3] %vm2585_vm0, %v2584_v50   ;;  %2589 = vst.msk [vmem:[#allocation2 + $0x36] sm:$0xc] %vm2585_vm0, %v2584_v50  }
 0x16d   :  { %v2605_v51 = vpop.permute.xlu1 %2604  }
 0x16e   :  { %2608 = vst.msk [vmem:[#allocation2 + $0x60] sm:$0x3] %vm2606_vm1, %v2605_v51   ;;  %2610 = vst.msk [vmem:[#allocation2 + $0x16] sm:$0xc] %vm2606_vm1, %v2605_v51  }
 0x16f   :  { %v2626_v52 = vpop.permute.xlu0 %2625  }
 0x170   :  { %2629 = vst.msk [vmem:[#allocation2 + $0x40] sm:$0x3] %vm2627_vm13, %v2626_v52   ;;  %2631 = vst.msk [vmem:[#allocation2 + $0x86] sm:$0xc] %vm2627_vm13, %v2626_v52  }
 0x172   :  { %v2647_v53 = vpop.permute.xlu1 %2646  }
 0x173   :  { %2650 = vst.msk [vmem:[#allocation2 + $0x20] sm:$0x3] %vm2648_vm2, %v2647_v53   ;;  %2652 = vst.msk [vmem:[#allocation2 + $0x66] sm:$0xc] %vm2648_vm2, %v2647_v53  }
 0x174   :  { %v2668_v54 = vpop.permute.xlu0 %2667  }
 0x175   :  { %2670 = vst.msk [vmem:[#allocation2] sm:$0x3] %vm2669_vm14, %v2668_v54   ;;  %2672 = vst.msk [vmem:[#allocation2 + $0x46] sm:$0xc] %vm2669_vm14, %v2668_v54  }
 0x176   :  { %v2688_v55 = vpop.permute.xlu1 %2687  }
 0x177   :  { %2691 = vst.msk [vmem:[#allocation2 + $0x28] sm:$0x3] %vm2689_vm15, %v2688_v55   ;;  %2693 = vst.msk [vmem:[#allocation2 + $0x6e] sm:$0xc] %vm2689_vm15, %v2688_v55  }
 0x179   :  { %v2709_v56 = vpop.permute.xlu0 %2708  }
 0x17a   :  { %2712 = vst.msk [vmem:[#allocation2 + $0x8] sm:$0x3] %vm2710_vm7, %v2709_v56   ;;  %2714 = vst.msk [vmem:[#allocation2 + $0x4e] sm:$0xc] %vm2710_vm7, %v2709_v56  }
 0x17c   :  { %v2730_v57 = vpop.permute.xlu1 %2729   ;;  %v2845_v58 = vld [vmem:[#allocation2] sm:$0x3]  ;;  %v2905_v59 = vld [vmem:[#allocation2 + $0x48] sm:$0x3] }
 0x17d   :  { %2733 = vst.msk [vmem:[#allocation2 + $0x30] sm:$0x3] %vm2731_vm6, %v2730_v57   ;;  %2735 = vst.msk [vmem:[#allocation2 + $0x76] sm:$0xc] %vm2731_vm6, %v2730_v57   ;;  %v2751_v60 = vpop.permute.xlu0 %2750  }
 0x17e   :  { %2848 = vst [vmem:[#allocation0] sm:$0x3] %v2845_v58  ;;  %2910 = vst [vmem:[#allocation0 + $0x12] sm:$0x3] %v2905_v59  ;;  %v2877_v61 = vld [vmem:[#allocation2 + $0x28] sm:$0x3] }
 0x17f   :  { %2754 = vst.msk [vmem:[#allocation2 + $0x10] sm:$0x3] %vm2752_vm4, %v2751_v60   ;;  %2756 = vst.msk [vmem:[#allocation2 + $0x56] sm:$0xc] %vm2752_vm4, %v2751_v60   ;;  %v2940_v62 = vld [vmem:[#allocation2 + $0x70] sm:$0x3] }
 0x180   :  { %v2772_v63 = vpop.permute.xlu1 %2771   ;;  %2882 = vst [vmem:[#allocation0 + $0xa] sm:$0x3] %v2877_v61  ;;  %2945 = vst [vmem:[#allocation0 + $0x1c] sm:$0x3] %v2940_v62 }
 0x181   :  { %v2850_v0 = vld [vmem:[#allocation2 + $0x8] sm:$0x3]  ;;  %v2912_v1 = vld [vmem:[#allocation2 + $0x50] sm:$0x3]  ;;  %2775 = vst.msk [vmem:[#allocation2 + $0x80] sm:$0x3] %vm2773_vm5, %v2772_v63   ;;  %v2793_v2 = vpop.permute.xlu0 %2792  }
 0x182   :  { %2777 = vst.msk [vmem:[#allocation2 + $0x36] sm:$0xc] %vm2773_vm5, %v2772_v63   ;;  %2854 = vst [vmem:[#allocation0 + $0x2] sm:$0x3] %v2850_v0 }
 0x183   :  { %2917 = vst [vmem:[#allocation0 + $0x14] sm:$0x3] %v2912_v1  ;;  %2796 = vst.msk [vmem:[#allocation2 + $0x60] sm:$0x3] %vm2794_vm8, %v2793_v2  }
 0x184   :  { %2798 = vst.msk [vmem:[#allocation2 + $0x16] sm:$0xc] %vm2794_vm8, %v2793_v2   ;;  %v2884_v3 = vld [vmem:[#allocation2 + $0x30] sm:$0x3]  ;;  %v2947_v4 = vld [vmem:[#allocation2 + $0x78] sm:$0x3]  ;;  %v2814_v5 = vpop.permute.xlu1 %2813  }
 0x185   :  { %2889 = vst [vmem:[#allocation0 + $0xc] sm:$0x3] %v2884_v3  ;;  %2952 = vst [vmem:[#allocation0 + $0x1e] sm:$0x3] %v2947_v4  ;;  %v2835_v8 = vpop.permute.xlu0 %2834  }
 0x186   :  { %v2856_v6 = vld [vmem:[#allocation2 + $0x10] sm:$0x3]  ;;  %v2919_v7 = vld [vmem:[#allocation2 + $0x58] sm:$0x3]  ;;  %2817 = vst.msk [vmem:[#allocation2 + $0x40] sm:$0x3] %vm2815_vm3, %v2814_v5  }
 0x187   :  { %2819 = vst.msk [vmem:[#allocation2 + $0x86] sm:$0xc] %vm2815_vm3, %v2814_v5   ;;  %2861 = vst [vmem:[#allocation0 + $0x4] sm:$0x3] %v2856_v6 }
 0x188   :  { %2924 = vst [vmem:[#allocation0 + $0x16] sm:$0x3] %v2919_v7  ;;  %2838 = vst.msk [vmem:[#allocation2 + $0x20] sm:$0x3] %vm2836_vm9, %v2835_v8   ;;  %v2954_v10 = vld [vmem:[#allocation2 + $0x80] sm:$0x3] }
 0x189   :  { %2840 = vst.msk [vmem:[#allocation2 + $0x66] sm:$0xc] %vm2836_vm9, %v2835_v8   ;;  %v2891_v9 = vld [vmem:[#allocation2 + $0x38] sm:$0x3]  ;;  %2959 = vst [vmem:[#allocation0 + $0x20] sm:$0x3] %v2954_v10 }
 0x18a   :  { %2896 = vst [vmem:[#allocation0 + $0xe] sm:$0x3] %v2891_v9  ;;  %v2926_v12 = vld [vmem:[#allocation2 + $0x60] sm:$0x3] }
 0x18b   :  { %v2863_v11 = vld [vmem:[#allocation2 + $0x18] sm:$0x3]  ;;  %2931 = vst [vmem:[#allocation0 + $0x18] sm:$0x3] %v2926_v12 }
 0x18c   :  { %2868 = vst [vmem:[#allocation0 + $0x6] sm:$0x3] %v2863_v11 }
 0x18d   :  { %v2898_v13 = vld [vmem:[#allocation2 + $0x40] sm:$0x3] }
 0x18e   :  { %v2961_v14 = vld [vmem:[#allocation2 + $0x88] sm:$0x3]  ;;  %2903 = vst [vmem:[#allocation0 + $0x10] sm:$0x3] %v2898_v13 }
 0x18f   :  { %2966 = vst [vmem:[#allocation0 + $0x22] sm:$0x3] %v2961_v14  ;;  %v2870_v15 = vld [vmem:[#allocation2 + $0x20] sm:$0x3] }
 0x190   :  { %v2933_v16 = vld [vmem:[#allocation2 + $0x68] sm:$0x3]  ;;  %2875 = vst [vmem:[#allocation0 + $0x8] sm:$0x3] %v2870_v15 }
 0x191   :  { %2938 = vst [vmem:[#allocation0 + $0x1a] sm:$0x3] %v2933_v16 }
 0x192   :  { %3675 = shalt.err (!%p3672_p4)
}
 0x193   :  { %2974 = dma.vmem_to_hbm [thread:$0]  %s2972_s3, 576, %s6024_s1, [#allocation1]  }
 0x194   :  { %3684 = dma.done.wait [#allocation1], 576  }
 0x195   :  { %3685 = vsyncadd [#allocation1], 4294966720 }
 0x196   :  { %2976 = vsyncpa [#allocation1], 1 }

// kernel: dmsa_forward.5
= control target key start
LH: loop header
LB: loop body
LE: loop exit
PB: predicated region body
PF: predicated region fallthrough
CT: control target
= control target key end

     0   :  { %s1708_s1 = inlined_call_operand.vmem [shape: bf16[128,128], index: 1, kind: input, shape index: {}]   ;;  %s1709_s0 = inlined_call_operand.vmem [shape: bf16[512,128], index: 0, kind: input, shape index: {}]   ;;  %s1710_s2 = inlined_call_operand.vmem [shape: f32[1,128], index: 2, kind: input, shape index: {}]   ;;  %s1711_s3 = inlined_call_operand.vmem [shape: f32[512,128], index: 3, kind: output, shape index: {}]  }
   0x1   :  { %v1267_v0 = vld [vmem:[%s1708_s1 + $0x38] sm:$0xff]   ;;  %v1268_v1 = vld [vmem:[%s1708_s1 + $0x30] sm:$0xff]   ;;  %v1269_v2 = vld [vmem:[%s1708_s1 + $0x28] sm:$0xff]  }
   0x2   :  { %1171 = vmatprep.subr.bf16.mxu0 %v1267_v0  ;;  %1251 = vmatprep.subr.bf16.mxu1 %v1267_v0  ;;  %v1270_v3 = vld [vmem:[%s1708_s1 + $0x20] sm:$0xff]   ;;  %v1271_v6 = vld [vmem:[%s1708_s1 + $0x18] sm:$0xff]   ;;  %v1272_v7 = vld [vmem:[%s1708_s1 + $0x10] sm:$0xff]  }
   0x3   :  { %1172 = vmatpush3.bf16.msra.mxu0 %v1267_v0  ;;  %1259 = vmatpush3.bf16.msra.mxu1 %v1267_v0  ;;  %v1275_v4 = vld [vmem:[%s1709_s0] sm:$0xff]   ;;  %v1273_v8 = vld [vmem:[%s1708_s1 + $0x8] sm:$0xff]   ;;  %v1279_v12 = vld [vmem:[%s1709_s0 + $0x10] sm:$0xff]  }
   0x4   :  { %1173 = vmatprep.subr.bf16.mxu0 %v1268_v1  ;;  %1252 = vmatprep.subr.bf16.mxu1 %v1268_v1  ;;  %v1276_v5 = vld [vmem:[%s1709_s0 + $0x80] sm:$0xff]   ;;  %v1277_v10 = vld [vmem:[%s1709_s0 + $0x8] sm:$0xff]   ;;  %v1280_v13 = vld [vmem:[%s1709_s0 + $0x90] sm:$0xff]  }
   0x5   :  { %1187 = vmatprep.mubr.bf16.mxu0 %v1275_v4  ;;  %1219 = vmatprep.mubr.bf16.mxu1 %v1276_v5  ;;  %v1274_v9 = vld [vmem:[%s1708_s1] sm:$0xff]   ;;  %v1278_v11 = vld [vmem:[%s1709_s0 + $0x88] sm:$0xff]   ;;  %v1281_v14 = vld [vmem:[%s1709_s0 + $0x18] sm:$0xff]  }
   0x6   :  { %v1282_v15 = vld [vmem:[%s1709_s0 + $0x98] sm:$0xff]   ;;  %v1283_v16 = vld [vmem:[%s1709_s0 + $0x20] sm:$0xff]   ;;  %v1285_v18 = vld [vmem:[%s1709_s0 + $0x28] sm:$0xff]  }
   0x7   :  { %1174 = vmatpush3.bf16.msra.mxu0 %v1268_v1  ;;  %1260 = vmatpush3.bf16.msra.mxu1 %v1268_v1  ;;  %v1284_v17 = vld [vmem:[%s1709_s0 + $0xa0] sm:$0xff]   ;;  %v1286_v19 = vld [vmem:[%s1709_s0 + $0xa8] sm:$0xff]   ;;  %v1287_v20 = vld [vmem:[%s1709_s0 + $0x30] sm:$0xff]  }
   0x8   :  { %1175 = vmatprep.subr.bf16.mxu0 %v1269_v2  ;;  %1253 = vmatprep.subr.bf16.mxu1 %v1269_v2  ;;  %v1288_v21 = vld [vmem:[%s1709_s0 + $0xb0] sm:$0xff]   ;;  %v1289_v22 = vld [vmem:[%s1709_s0 + $0x38] sm:$0xff]   ;;  %v1291_v24 = vld [vmem:[%s1709_s0 + $0x40] sm:$0xff]  }
   0x9   :  { %v1290_v23 = vld [vmem:[%s1709_s0 + $0xb8] sm:$0xff]   ;;  %v1292_v25 = vld [vmem:[%s1709_s0 + $0xc0] sm:$0xff]   ;;  %v1293_v26 = vld [vmem:[%s1709_s0 + $0x48] sm:$0xff]  }
   0xa   :  { %v1294_v27 = vld [vmem:[%s1709_s0 + $0xc8] sm:$0xff]   ;;  %v1295_v28 = vld [vmem:[%s1709_s0 + $0x50] sm:$0xff]   ;;  %v1297_v30 = vld [vmem:[%s1709_s0 + $0x58] sm:$0xff]  }
   0xb   :  { %1176 = vmatpush3.bf16.msra.mxu0 %v1269_v2  ;;  %1261 = vmatpush3.bf16.msra.mxu1 %v1269_v2  ;;  %v1296_v29 = vld [vmem:[%s1709_s0 + $0xd0] sm:$0xff]   ;;  %v1298_v31 = vld [vmem:[%s1709_s0 + $0xd8] sm:$0xff]   ;;  %v1299_v32 = vld [vmem:[%s1709_s0 + $0x60] sm:$0xff]  }
   0xc   :  { %1177 = vmatprep.subr.bf16.mxu0 %v1270_v3  ;;  %1254 = vmatprep.subr.bf16.mxu1 %v1270_v3  ;;  %v1300_v33 = vld [vmem:[%s1709_s0 + $0xe0] sm:$0xff]   ;;  %v1301_v34 = vld [vmem:[%s1709_s0 + $0x68] sm:$0xff]   ;;  %v1303_v36 = vld [vmem:[%s1709_s0 + $0x70] sm:$0xff]  }
   0xd   :  { %v1302_v35 = vld [vmem:[%s1709_s0 + $0xe8] sm:$0xff]   ;;  %v1304_v37 = vld [vmem:[%s1709_s0 + $0xf0] sm:$0xff]   ;;  %v1305_v38 = vld [vmem:[%s1709_s0 + $0x78] sm:$0xff]  }
   0xe   :  { %v1306_v39 = vld [vmem:[%s1709_s0 + $0xf8] sm:$0xff]   ;;  %v1450_v40 = vld [vmem:[%s1710_s2] ss:$0 sm:$0xff] }
   0xf   :  { %1178 = vmatpush3.bf16.msra.mxu0 %v1270_v3  ;;  %1262 = vmatpush3.bf16.msra.mxu1 %v1270_v3 }
  0x10   :  { %1179 = vmatprep.subr.bf16.mxu0 %v1271_v6  ;;  %1255 = vmatprep.subr.bf16.mxu1 %v1271_v6 }
  0x13   :  { %1180 = vmatpush3.bf16.msra.mxu0 %v1271_v6  ;;  %1263 = vmatpush3.bf16.msra.mxu1 %v1271_v6 }
  0x14   :  { %1181 = vmatprep.subr.bf16.mxu0 %v1272_v7  ;;  %1256 = vmatprep.subr.bf16.mxu1 %v1272_v7 }
  0x17   :  { %1182 = vmatpush3.bf16.msra.mxu0 %v1272_v7  ;;  %1264 = vmatpush3.bf16.msra.mxu1 %v1272_v7 }
  0x18   :  { %1183 = vmatprep.subr.bf16.mxu0 %v1273_v8  ;;  %1257 = vmatprep.subr.bf16.mxu1 %v1273_v8 }
  0x1b   :  { %1184 = vmatpush3.bf16.msra.mxu0 %v1273_v8  ;;  %1265 = vmatpush3.bf16.msra.mxu1 %v1273_v8 }
  0x1c   :  { %1185 = vmatprep.subr.bf16.mxu0 %v1274_v9  ;;  %1258 = vmatprep.subr.bf16.mxu1 %v1274_v9 }
  0x1f   :  { %1186 = vmatpush3.bf16.msra.mxu0 %v1274_v9  ;;  %1266 = vmatpush3.bf16.msra.mxu1 %v1274_v9 }
  0x22   :  { %1188 = vmatmul.mubr.bf16.vlgmr.msra.gmra.mxu0 %v1277_v10  ;;  %1220 = vmatmul.mubr.bf16.vlgmr.msra.gmra.mxu1 %v1278_v11 }
  0x23   :  { %1191 = vmatprep.mubr.bf16.mxu0 %v1279_v12  ;;  %1223 = vmatprep.mubr.bf16.mxu1 %v1280_v13 }
  0x2a   :  { %1192 = vmatmul.mubr.bf16.gmra.mxu0 %v1281_v14  ;;  %1224 = vmatmul.mubr.bf16.gmra.mxu1 %v1282_v15 }
  0x2b   :  { %1195 = vmatprep.mubr.bf16.mxu0 %v1283_v16  ;;  %1227 = vmatprep.mubr.bf16.mxu1 %v1284_v17 }
  0x32   :  { %1196 = vmatmul.mubr.bf16.gmra.mxu0 %v1285_v18  ;;  %1228 = vmatmul.mubr.bf16.gmra.mxu1 %v1286_v19 }
  0x33   :  { %1199 = vmatprep.mubr.bf16.mxu0 %v1287_v20  ;;  %1231 = vmatprep.mubr.bf16.mxu1 %v1288_v21 }
  0x3a   :  { %1200 = vmatmul.mubr.bf16.gmra.mxu0 %v1289_v22  ;;  %1232 = vmatmul.mubr.bf16.gmra.mxu1 %v1290_v23 }
  0x3b   :  { %1203 = vmatprep.mubr.bf16.mxu0 %v1291_v24  ;;  %1235 = vmatprep.mubr.bf16.mxu1 %v1292_v25 }
  0x42   :  { %1204 = vmatmul.mubr.bf16.gmra.mxu0 %v1293_v26  ;;  %1236 = vmatmul.mubr.bf16.gmra.mxu1 %v1294_v27 }
  0x43   :  { %1207 = vmatprep.mubr.bf16.mxu0 %v1295_v28  ;;  %1239 = vmatprep.mubr.bf16.mxu1 %v1296_v29 }
  0x4a   :  { %1208 = vmatmul.mubr.bf16.gmra.mxu0 %v1297_v30  ;;  %1240 = vmatmul.mubr.bf16.gmra.mxu1 %v1298_v31 }
  0x4b   :  { %1211 = vmatprep.mubr.bf16.mxu0 %v1299_v32  ;;  %1243 = vmatprep.mubr.bf16.mxu1 %v1300_v33 }
  0x52   :  { %1212 = vmatmul.mubr.bf16.gmra.mxu0 %v1301_v34  ;;  %1244 = vmatmul.mubr.bf16.gmra.mxu1 %v1302_v35 }
  0x53   :  { %1215 = vmatprep.mubr.bf16.mxu0 %v1303_v36  ;;  %1247 = vmatprep.mubr.bf16.mxu1 %v1304_v37 }
  0x5a   :  { %1216 = vmatmul.mubr.bf16.gmra.mxu0 %v1305_v38  ;;  %1248 = vmatmul.mubr.bf16.gmra.mxu1 %v1306_v39 }
  0xe2   :  { %v1189_v41 = vpop.f32.mrf.mxu0  ;;  %v1221_v42 = vpop.f32.mrf.mxu1 }
  0xe3   :  { %v960_v43 = vadd.f32 %v1189_v41, %v1450_v40  ;;  %v992_v44 = vadd.f32 %v1221_v42, %v1450_v40 }
  0xe4   :  { %v501_v45 = vpop.f32.mrf.mxu0  ;;  %v629_v46 = vpop.f32.mrf.mxu1 }
  0xe5   :  { %1024 = vst [vmem:[%s1711_s3 + $0x10] sm:$0xff] %v960_v43  ;;  %1056 = vst [vmem:[%s1711_s3 + $0x110] sm:$0xff] %v992_v44  ;;  %v958_v47 = vadd.f32 %v1450_v40, %v501_v45  ;;  %v990_v48 = vadd.f32 %v1450_v40, %v629_v46 }
  0xe6   :  { %v1190_v49 = vpop.f32.mrf.mxu0  ;;  %v1222_v50 = vpop.f32.mrf.mxu1 }
  0xe7   :  { %1022 = vst [vmem:[%s1711_s3] sm:$0xff] %v958_v47  ;;  %1054 = vst [vmem:[%s1711_s3 + $0x100] sm:$0xff] %v990_v48  ;;  %v961_v51 = vadd.f32 %v1190_v49, %v1450_v40  ;;  %v993_v52 = vadd.f32 %v1222_v50, %v1450_v40 }
  0xe8   :  { %v504_v53 = vpop.f32.mrf.mxu0  ;;  %v632_v54 = vpop.f32.mrf.mxu1 }
  0xe9   :  { %1025 = vst [vmem:[%s1711_s3 + $0x18] sm:$0xff] %v961_v51  ;;  %1057 = vst [vmem:[%s1711_s3 + $0x118] sm:$0xff] %v993_v52  ;;  %v959_v55 = vadd.f32 %v1450_v40, %v504_v53  ;;  %v991_v56 = vadd.f32 %v1450_v40, %v632_v54 }
  0xea   :  { %v1193_v57 = vpop.f32.mrf.mxu0  ;;  %v1225_v58 = vpop.f32.mrf.mxu1 }
  0xeb   :  { %1023 = vst [vmem:[%s1711_s3 + $0x8] sm:$0xff] %v959_v55  ;;  %1055 = vst [vmem:[%s1711_s3 + $0x108] sm:$0xff] %v991_v56  ;;  %v964_v59 = vadd.f32 %v1193_v57, %v1450_v40  ;;  %v996_v60 = vadd.f32 %v1225_v58, %v1450_v40 }
  0xec   :  { %v517_v61 = vpop.f32.mrf.mxu0  ;;  %v645_v62 = vpop.f32.mrf.mxu1 }
  0xed   :  { %1028 = vst [vmem:[%s1711_s3 + $0x30] sm:$0xff] %v964_v59  ;;  %1060 = vst [vmem:[%s1711_s3 + $0x130] sm:$0xff] %v996_v60  ;;  %v962_v63 = vadd.f32 %v1450_v40, %v517_v61  ;;  %v994_v0 = vadd.f32 %v1450_v40, %v645_v62 }
  0xee   :  { %v1194_v1 = vpop.f32.mrf.mxu0  ;;  %v1226_v2 = vpop.f32.mrf.mxu1 }
  0xef   :  { %1026 = vst [vmem:[%s1711_s3 + $0x20] sm:$0xff] %v962_v63  ;;  %1058 = vst [vmem:[%s1711_s3 + $0x120] sm:$0xff] %v994_v0  ;;  %v965_v3 = vadd.f32 %v1194_v1, %v1450_v40  ;;  %v997_v4 = vadd.f32 %v1226_v2, %v1450_v40 }
  0xf0   :  { %v520_v5 = vpop.f32.mrf.mxu0  ;;  %v648_v6 = vpop.f32.mrf.mxu1 }
  0xf1   :  { %1029 = vst [vmem:[%s1711_s3 + $0x38] sm:$0xff] %v965_v3  ;;  %1061 = vst [vmem:[%s1711_s3 + $0x138] sm:$0xff] %v997_v4  ;;  %v963_v7 = vadd.f32 %v1450_v40, %v520_v5  ;;  %v995_v8 = vadd.f32 %v1450_v40, %v648_v6 }
  0xf2   :  { %v1197_v9 = vpop.f32.mrf.mxu0  ;;  %v1229_v10 = vpop.f32.mrf.mxu1 }
  0xf3   :  { %1027 = vst [vmem:[%s1711_s3 + $0x28] sm:$0xff] %v963_v7  ;;  %1059 = vst [vmem:[%s1711_s3 + $0x128] sm:$0xff] %v995_v8  ;;  %v968_v11 = vadd.f32 %v1197_v9, %v1450_v40  ;;  %v1000_v12 = vadd.f32 %v1229_v10, %v1450_v40 }
  0xf4   :  { %v533_v13 = vpop.f32.mrf.mxu0  ;;  %v661_v14 = vpop.f32.mrf.mxu1 }
  0xf5   :  { %1032 = vst [vmem:[%s1711_s3 + $0x50] sm:$0xff] %v968_v11  ;;  %1064 = vst [vmem:[%s1711_s3 + $0x150] sm:$0xff] %v1000_v12  ;;  %v966_v15 = vadd.f32 %v1450_v40, %v533_v13  ;;  %v998_v16 = vadd.f32 %v1450_v40, %v661_v14 }
  0xf6   :  { %v1198_v17 = vpop.f32.mrf.mxu0  ;;  %v1230_v18 = vpop.f32.mrf.mxu1 }
  0xf7   :  { %1030 = vst [vmem:[%s1711_s3 + $0x40] sm:$0xff] %v966_v15  ;;  %1062 = vst [vmem:[%s1711_s3 + $0x140] sm:$0xff] %v998_v16  ;;  %v969_v19 = vadd.f32 %v1198_v17, %v1450_v40  ;;  %v1001_v20 = vadd.f32 %v1230_v18, %v1450_v40 }
  0xf8   :  { %v536_v21 = vpop.f32.mrf.mxu0  ;;  %v664_v22 = vpop.f32.mrf.mxu1 }
  0xf9   :  { %1033 = vst [vmem:[%s1711_s3 + $0x58] sm:$0xff] %v969_v19  ;;  %1065 = vst [vmem:[%s1711_s3 + $0x158] sm:$0xff] %v1001_v20  ;;  %v967_v23 = vadd.f32 %v1450_v40, %v536_v21  ;;  %v999_v24 = vadd.f32 %v1450_v40, %v664_v22 }
  0xfa   :  { %v1201_v25 = vpop.f32.mrf.mxu0  ;;  %v1233_v26 = vpop.f32.mrf.mxu1 }
  0xfb   :  { %1031 = vst [vmem:[%s1711_s3 + $0x48] sm:$0xff] %v967_v23  ;;  %1063 = vst [vmem:[%s1711_s3 + $0x148] sm:$0xff] %v999_v24  ;;  %v972_v27 = vadd.f32 %v1201_v25, %v1450_v40  ;;  %v1004_v28 = vadd.f32 %v1233_v26, %v1450_v40 }
  0xfc   :  { %v549_v29 = vpop.f32.mrf.mxu0  ;;  %v677_v30 = vpop.f32.mrf.mxu1 }
  0xfd   :  { %1036 = vst [vmem:[%s1711_s3 + $0x70] sm:$0xff] %v972_v27  ;;  %1068 = vst [vmem:[%s1711_s3 + $0x170] sm:$0xff] %v1004_v28  ;;  %v970_v31 = vadd.f32 %v1450_v40, %v549_v29  ;;  %v1002_v32 = vadd.f32 %v1450_v40, %v677_v30 }
  0xfe   :  { %v1202_v33 = vpop.f32.mrf.mxu0  ;;  %v1234_v34 = vpop.f32.mrf.mxu1 }
  0xff   :  { %1034 = vst [vmem:[%s1711_s3 + $0x60] sm:$0xff] %v970_v31  ;;  %1066 = vst [vmem:[%s1711_s3 + $0x160] sm:$0xff] %v1002_v32  ;;  %v973_v35 = vadd.f32 %v1202_v33, %v1450_v40  ;;  %v1005_v36 = vadd.f32 %v1234_v34, %v1450_v40 }
 0x100   :  { %v552_v37 = vpop.f32.mrf.mxu0  ;;  %v680_v38 = vpop.f32.mrf.mxu1 }
 0x101   :  { %1037 = vst [vmem:[%s1711_s3 + $0x78] sm:$0xff] %v973_v35  ;;  %1069 = vst [vmem:[%s1711_s3 + $0x178] sm:$0xff] %v1005_v36  ;;  %v971_v39 = vadd.f32 %v1450_v40, %v552_v37  ;;  %v1003_v41 = vadd.f32 %v1450_v40, %v680_v38 }
 0x102   :  { %v1205_v42 = vpop.f32.mrf.mxu0  ;;  %v1237_v43 = vpop.f32.mrf.mxu1 }
 0x103   :  { %1035 = vst [vmem:[%s1711_s3 + $0x68] sm:$0xff] %v971_v39  ;;  %1067 = vst [vmem:[%s1711_s3 + $0x168] sm:$0xff] %v1003_v41  ;;  %v976_v44 = vadd.f32 %v1205_v42, %v1450_v40  ;;  %v1008_v45 = vadd.f32 %v1237_v43, %v1450_v40 }
 0x104   :  { %v565_v46 = vpop.f32.mrf.mxu0  ;;  %v693_v47 = vpop.f32.mrf.mxu1 }
 0x105   :  { %1040 = vst [vmem:[%s1711_s3 + $0x90] sm:$0xff] %v976_v44  ;;  %1072 = vst [vmem:[%s1711_s3 + $0x190] sm:$0xff] %v1008_v45  ;;  %v974_v48 = vadd.f32 %v1450_v40, %v565_v46  ;;  %v1006_v49 = vadd.f32 %v1450_v40, %v693_v47 }
 0x106   :  { %v1206_v50 = vpop.f32.mrf.mxu0  ;;  %v1238_v51 = vpop.f32.mrf.mxu1 }
 0x107   :  { %1038 = vst [vmem:[%s1711_s3 + $0x80] sm:$0xff] %v974_v48  ;;  %1070 = vst [vmem:[%s1711_s3 + $0x180] sm:$0xff] %v1006_v49  ;;  %v977_v52 = vadd.f32 %v1206_v50, %v1450_v40  ;;  %v1009_v53 = vadd.f32 %v1238_v51, %v1450_v40 }
 0x108   :  { %v568_v54 = vpop.f32.mrf.mxu0  ;;  %v696_v55 = vpop.f32.mrf.mxu1 }
 0x109   :  { %1041 = vst [vmem:[%s1711_s3 + $0x98] sm:$0xff] %v977_v52  ;;  %1073 = vst [vmem:[%s1711_s3 + $0x198] sm:$0xff] %v1009_v53  ;;  %v975_v56 = vadd.f32 %v1450_v40, %v568_v54  ;;  %v1007_v57 = vadd.f32 %v1450_v40, %v696_v55 }
 0x10a   :  { %v1209_v58 = vpop.f32.mrf.mxu0  ;;  %v1241_v59 = vpop.f32.mrf.mxu1 }
 0x10b   :  { %1039 = vst [vmem:[%s1711_s3 + $0x88] sm:$0xff] %v975_v56  ;;  %1071 = vst [vmem:[%s1711_s3 + $0x188] sm:$0xff] %v1007_v57  ;;  %v980_v60 = vadd.f32 %v1209_v58, %v1450_v40  ;;  %v1012_v61 = vadd.f32 %v1241_v59, %v1450_v40 }
 0x10c   :  { %v581_v62 = vpop.f32.mrf.mxu0  ;;  %v709_v63 = vpop.f32.mrf.mxu1 }
 0x10d   :  { %1044 = vst [vmem:[%s1711_s3 + $0xb0] sm:$0xff] %v980_v60  ;;  %1076 = vst [vmem:[%s1711_s3 + $0x1b0] sm:$0xff] %v1012_v61  ;;  %v978_v0 = vadd.f32 %v1450_v40, %v581_v62  ;;  %v1010_v1 = vadd.f32 %v1450_v40, %v709_v63 }
 0x10e   :  { %v1210_v2 = vpop.f32.mrf.mxu0  ;;  %v1242_v3 = vpop.f32.mrf.mxu1 }
 0x10f   :  { %1042 = vst [vmem:[%s1711_s3 + $0xa0] sm:$0xff] %v978_v0  ;;  %1074 = vst [vmem:[%s1711_s3 + $0x1a0] sm:$0xff] %v1010_v1  ;;  %v981_v4 = vadd.f32 %v1210_v2, %v1450_v40  ;;  %v1013_v5 = vadd.f32 %v1242_v3, %v1450_v40 }
 0x110   :  { %v584_v6 = vpop.f32.mrf.mxu0  ;;  %v712_v7 = vpop.f32.mrf.mxu1 }
 0x111   :  { %1045 = vst [vmem:[%s1711_s3 + $0xb8] sm:$0xff] %v981_v4  ;;  %1077 = vst [vmem:[%s1711_s3 + $0x1b8] sm:$0xff] %v1013_v5  ;;  %v979_v8 = vadd.f32 %v1450_v40, %v584_v6  ;;  %v1011_v9 = vadd.f32 %v1450_v40, %v712_v7 }
 0x112   :  { %v1213_v10 = vpop.f32.mrf.mxu0  ;;  %v1245_v11 = vpop.f32.mrf.mxu1 }
 0x113   :  { %1043 = vst [vmem:[%s1711_s3 + $0xa8] sm:$0xff] %v979_v8  ;;  %1075 = vst [vmem:[%s1711_s3 + $0x1a8] sm:$0xff] %v1011_v9  ;;  %v984_v12 = vadd.f32 %v1213_v10, %v1450_v40  ;;  %v1016_v13 = vadd.f32 %v1245_v11, %v1450_v40 }
 0x114   :  { %v597_v14 = vpop.f32.mrf.mxu0  ;;  %v725_v15 = vpop.f32.mrf.mxu1 }
 0x115   :  { %1048 = vst [vmem:[%s1711_s3 + $0xd0] sm:$0xff] %v984_v12  ;;  %1080 = vst [vmem:[%s1711_s3 + $0x1d0] sm:$0xff] %v1016_v13  ;;  %v982_v16 = vadd.f32 %v1450_v40, %v597_v14  ;;  %v1014_v17 = vadd.f32 %v1450_v40, %v725_v15 }
 0x116   :  { %v1214_v18 = vpop.f32.mrf.mxu0  ;;  %v1246_v19 = vpop.f32.mrf.mxu1 }
 0x117   :  { %1046 = vst [vmem:[%s1711_s3 + $0xc0] sm:$0xff] %v982_v16  ;;  %1078 = vst [vmem:[%s1711_s3 + $0x1c0] sm:$0xff] %v1014_v17  ;;  %v985_v20 = vadd.f32 %v1214_v18, %v1450_v40  ;;  %v1017_v21 = vadd.f32 %v1246_v19, %v1450_v40 }
 0x118   :  { %v600_v22 = vpop.f32.mrf.mxu0  ;;  %v728_v23 = vpop.f32.mrf.mxu1 }
 0x119   :  { %1049 = vst [vmem:[%s1711_s3 + $0xd8] sm:$0xff] %v985_v20  ;;  %1081 = vst [vmem:[%s1711_s3 + $0x1d8] sm:$0xff] %v1017_v21  ;;  %v983_v24 = vadd.f32 %v1450_v40, %v600_v22  ;;  %v1015_v25 = vadd.f32 %v1450_v40, %v728_v23 }
 0x11a   :  { %v1217_v26 = vpop.f32.mrf.mxu0  ;;  %v1249_v27 = vpop.f32.mrf.mxu1 }
 0x11b   :  { %1047 = vst [vmem:[%s1711_s3 + $0xc8] sm:$0xff] %v983_v24  ;;  %1079 = vst [vmem:[%s1711_s3 + $0x1c8] sm:$0xff] %v1015_v25  ;;  %v988_v28 = vadd.f32 %v1217_v26, %v1450_v40  ;;  %v1020_v29 = vadd.f32 %v1249_v27, %v1450_v40 }
 0x11c   :  { %v613_v30 = vpop.f32.mrf.mxu0  ;;  %v741_v31 = vpop.f32.mrf.mxu1 }
 0x11d   :  { %1052 = vst [vmem:[%s1711_s3 + $0xf0] sm:$0xff] %v988_v28  ;;  %1084 = vst [vmem:[%s1711_s3 + $0x1f0] sm:$0xff] %v1020_v29  ;;  %v986_v32 = vadd.f32 %v1450_v40, %v613_v30  ;;  %v1018_v33 = vadd.f32 %v1450_v40, %v741_v31 }
 0x11e   :  { %v1218_v34 = vpop.f32.mrf.mxu0  ;;  %v1250_v35 = vpop.f32.mrf.mxu1 }
 0x11f   :  { %1050 = vst [vmem:[%s1711_s3 + $0xe0] sm:$0xff] %v986_v32  ;;  %1082 = vst [vmem:[%s1711_s3 + $0x1e0] sm:$0xff] %v1018_v33  ;;  %v989_v36 = vadd.f32 %v1218_v34, %v1450_v40  ;;  %v1021_v37 = vadd.f32 %v1250_v35, %v1450_v40 }
 0x120   :  { %v616_v38 = vpop.f32.mrf.mxu0  ;;  %v744_v39 = vpop.f32.mrf.mxu1 }
 0x121   :  { %1053 = vst [vmem:[%s1711_s3 + $0xf8] sm:$0xff] %v989_v36  ;;  %1085 = vst [vmem:[%s1711_s3 + $0x1f8] sm:$0xff] %v1021_v37  ;;  %v987_v41 = vadd.f32 %v1450_v40, %v616_v38  ;;  %v1019_v42 = vadd.f32 %v1450_v40, %v744_v39 }
 0x123   :  { %1051 = vst [vmem:[%s1711_s3 + $0xe8] sm:$0xff] %v987_v41  ;;  %1083 = vst [vmem:[%s1711_s3 + $0x1e8] sm:$0xff] %v1019_v42 }

// kernel: dmsa_forward.8
= control target key start
LH: loop header
LB: loop body
LE: loop exit
PB: predicated region body
PF: predicated region fallthrough
CT: control target
= control target key end

     0   :  { %s999_s0 = inlined_call_operand.vmem [shape: f32[2], index: 0, kind: input, shape index: {}]   ;;  %s1000_s1 = inlined_call_operand.vmem [shape: f32[2,2,2,256], index: 1, kind: input, shape index: {}]   ;;  %s1001_s2 = inlined_call_operand.vmem [shape: f32[2,2,2,256], index: 2, kind: input, shape index: {}]   ;;  %s1002_s3 = inlined_call_operand.vmem [shape: f32[2,2,2,256], index: 3, kind: input, shape index: {}]   ;;  %s1003_s4 = inlined_call_operand.vmem [shape: f32[2,2,2,256], index: 4, kind: output, shape index: {}]  }
   0x1   :  { %s9_s17 = sshll.u32 %s999_s0, 4  ;;  %s10_s17 = int_to_ptr.vmem [resolvable:$true] %s9_s17 }
   0x2   :  { %s890_s18 = scalar_lea.vmem %s10_s17, 16  ;;  %p895_p1 = scmp.lt.s32.totalorder %s10_s17, %s10_s17 }
   0x3   :  { %p891_p0 = scmp.ne.s32.totalorder %s10_s17, %s890_s18  ;;  %p896_p2 = scmp.lt.s32.totalorder %s890_s18, %s890_s18 }
   0x5   :  { %p897_p3 = por %p896_p2, %p895_p1 }
   0x7   :  { %p898_p4 = pnand %p897_p3, %p891_p0 }
   0x9   :  { %901 = shalt.err (!%p898_p4)  }
   0xa   :  { %s912_s19 = smov [#allocation3]  }
   0xb   :  { %12 = dma.vmem_to_smem %s10_s17, 16, %s912_s19, [#allocation2] }
   0xc   :  { %906 = dma.done.wait [#allocation2], 16 }
   0xd   :  { %907 = vsyncadd [#allocation2], 4294967280 }
   0xe   :  { %14 = sfence }
   0xf   :  { %s944_s20 = smov 0  }
  0x10 LB: > { %s832_s0 = sadd.s32 4294967295, %s910_s20   ;;  %p836_p5 = scmp.ge.s32.totalorder %s910_s20, 1  ;;  %s910_s20 = sphi %s944_s20, %s20_s20  }
  0x11   : > { %p164_p6 = scmp.lt.s32.totalorder %s910_s20, 3 }
  0x13   : > { %p165_p7 = pnand %p836_p5, %p164_p6 }
  0x14   : > { %p198_p8 = scmp.lt.s32.totalorder (!%p165_p7), %s832_s0, 1  ;;  %s525_s28 = sld [smem:[#allocation3]] (!%p165_p7) }
  0x15   : > { %168 = sbr.rel (%p165_p7) target bundleno = 915 (0x393), region = 32  ;;  %s845_s29 = sld [smem:[#allocation3 + $0x1]] (!%p165_p7) }
  0x1a   : > { %v231_v0 = vlaneseq  ;;  %v913_v1 = vmov 1983009808   ;;  %s1005_s0 = smov (!%p198_p8, %s832_s0), 1  ;;  %vm248_vm0 = vcmask 1041408   ;;  %v914_v42 = vmov 269488144  }
  0x1b   : > { %v229_v2 = vunpack.c.l.s4 %v913_v1  ;;  %s952_s21 = sshll.u32 %s1005_s0, 3  ;;  %v266_v43 = vunpack.c.l.s4 %v914_v42  ;;  %vm531_vm1 = vcmask 9216   ;;  %vm563_vm2 = vcmask 15360  }
  0x1c   : > { %v232_v3 = vshrl.u32 %v231_v0, 7  ;;  %s207_s24 = scalar_lea.vmem %s1001_s2, %s952_s21  ;;  %s202_s27 = scalar_lea.vmem %s1000_s1, %s952_s21 }
  0x1d   : > { %v230_v4 = vunpack.c.0.s8 %v229_v2  ;;  %v220_v6 = vld [vmem:[%s207_s24] sm:$0xf]  ;;  %v221_v8 = vld [vmem:[%s207_s24 + $0x4] sm:$0xf]  ;;  %v267_v44 = vunpack.c.0.s8 %v266_v43  ;;  %v526_v2 = vstv %s525_s28  ;;  %s212_s6 = scalar_lea.vmem %s1002_s3, %s952_s21  ;;  %s217_s9 = scalar_lea.vmem %s1003_s4, %s952_s21 }
  0x1e   : > { %v218_v7 = vld [vmem:[%s202_s27] sm:$0xf]  ;;  %v283_v9 = vmul.f32 %v220_v6, %v220_v6  ;;  %v284_v11 = vmul.f32 %v221_v8, %v221_v8  ;;  %v219_v12 = vld [vmem:[%s202_s27 + $0x4] sm:$0xf] }
  0x1f   : > { %v958_v5 = vsub.s32 %v230_v4, %v232_v3  ;;  %v224_v10 = vmul.f32 %v218_v7, %v218_v7  ;;  %v225_v13 = vmul.f32 %v219_v12, %v219_v12  ;;  %v270_v45 = vsub.s32 %v267_v44, %v232_v3 }
  0x21   : > { %v293_v14 = vrot.slane %v283_v9, %v958_v5  ;;  %v234_v15 = vrot.slane %v224_v10, %v958_v5  ;;  %v301_v16 = vrot.slane %v284_v11, %v958_v5  ;;  %v242_v17 = vrot.slane %v225_v13, %v958_v5 }
  0x23   : > { %v294_v18 = vcombine.high %v293_v14, %v293_v14  ;;  %v307_v19 = vsel %vm248_vm0, %v293_v14, 0.0  ;;  %v235_v20 = vcombine.high %v234_v15, %v234_v15  ;;  %v249_v21 = vsel %vm248_vm0, %v234_v15, 0.0 }
  0x24   : > { %v302_v22 = vcombine.high %v301_v16, %v301_v16  ;;  %v243_v23 = vcombine.high %v242_v17, %v242_v17  ;;  %v312_v26 = vsel %vm248_vm0, %v301_v16, 0.0  ;;  %v254_v27 = vsel %vm248_vm0, %v242_v17, 0.0 }
  0x25   : > { %v308_v24 = vsel %vm248_vm0, %v294_v18, 0.0  ;;  %v250_v25 = vsel %vm248_vm0, %v235_v20, 0.0 }
  0x26   : > { %v309_v28 = vadd.f32 %v308_v24, %v307_v19  ;;  %v251_v29 = vadd.f32 %v250_v25, %v249_v21  ;;  %v313_v30 = vsel %vm248_vm0, %v302_v22, 0.0  ;;  %v255_v31 = vsel %vm248_vm0, %v243_v23, 0.0  ;;  %v846_v22 = vld.sshfl [vmem:[%s212_s6] sm:$0x33 pattern:$0x76325410] }
  0x27   : > { %v314_v32 = vadd.f32 %v313_v30, %v312_v26  ;;  %v256_v33 = vadd.f32 %v255_v31, %v254_v27  ;;  %v915_v23 = vmov 0.0   ;;  %v562_v24 = vcombine.high %v846_v22, %v846_v22  ;;  %v850_v25 = vld.sshfl [vmem:[%s212_s6 + $0x4] sm:$0x33 pattern:$0x76325410] }
  0x28   : > { %310 = vadd.xlane.f32.xlu0 %v309_v28  ;;  %252 = vadd.xlane.f32.xlu1 %v251_v29  ;;  %v650_v26 = vcombine.high %v850_v25, %v850_v25 }
  0x2c   : > { %315 = vadd.xlane.f32.xlu0 %v314_v32  ;;  %257 = vadd.xlane.f32.xlu1 %v256_v33 }
  0xb1   : > { %v311_v34 = vpop.xlane.xlu0 %310  ;;  %v253_v35 = vpop.xlane.xlu1 %252 }
  0xb2   : > { %v317_v36 = vmax.f32 %v311_v34, 1e-24  ;;  %v259_v37 = vmax.f32 %v253_v35, 1e-24 }
  0xb4   : > { %874 = vrsqrt.f32 %v317_v36 }
  0xb5   : > { %876 = vrsqrt.f32 %v259_v37  ;;  %v316_v38 = vpop.xlane.xlu0 %315  ;;  %v258_v39 = vpop.xlane.xlu1 %257 }
  0xb6   : > { %v318_v40 = vmax.f32 %v316_v38, 1e-24  ;;  %v260_v41 = vmax.f32 %v258_v39, 1e-24 }
  0xb8   : > { %878 = vrsqrt.f32 %v318_v40 }
  0xb9   : > { %880 = vrsqrt.f32 %v260_v41 }
  0xc1   : > { %v875_v46 = vpop.eup %874 }
  0xc2   : > { %v877_v47 = vpop.eup %876  ;;  %v329_v48 = vrot.slane %v875_v46, %v270_v45 }
  0xc3   : > { %v271_v49 = vrot.slane %v877_v47, %v270_v45 }
  0xc4   : > { %v339_v50 = vmul.f32 %v329_v48, %v220_v6 }
  0xc5   : > { %v879_v51 = vpop.eup %878  ;;  %v281_v52 = vmul.f32 %v271_v49, %v218_v7  ;;  %v528_v7 = vstv %s845_s29 }
  0xc6   : > { %v881_v53 = vpop.eup %880  ;;  %v359_v54 = vrot.slane %v339_v50, %v958_v5  ;;  %v336_v55 = vrot.slane %v879_v51, %v270_v45 }
  0xc7   : > { %v348_v56 = vrot.slane %v281_v52, %v958_v5  ;;  %v278_v57 = vrot.slane %v881_v53, %v270_v45 }
  0xc8   : > { %v360_v58 = vcombine.high %v359_v54, %v359_v54  ;;  %v340_v59 = vmul.f32 %v336_v55, %v221_v8 }
  0xc9   : > { %v349_v60 = vcombine.high %v348_v56, %v348_v56  ;;  %v282_v61 = vmul.f32 %v278_v57, %v219_v12 }
  0xca   : > { %393 = vmatprep.subr.mxu0 %v360_v58  ;;  %v451_v62 = vrot.slane %v340_v59, %v958_v5 }
  0xcb   : > { %394 = vmatpush1.xpose.msra.mxu0 %v359_v54  ;;  %427 = vmatprep.mubr.f32.mxu0 %v349_v60  ;;  %v440_v63 = vrot.slane %v282_v61, %v958_v5 }
  0xcc   : > { %v452_v0 = vcombine.high %v451_v62, %v451_v62  ;;  %847 = vmatprep.subr.msk.mxu0 %vm248_vm0, %v562_v24 }
  0xcd   : > { %v441_v1 = vcombine.high %v440_v63, %v440_v63 }
  0xce   : > { %428 = vmatmul.mubr.f32.vlgmr.msra.gmra.mxu0 %v348_v56  ;;  %485 = vmatprep.subr.mxu1 %v452_v0 }
  0xcf   : > { %486 = vmatpush1.xpose.msra.mxu1 %v451_v62  ;;  %519 = vmatprep.mubr.f32.mxu1 %v441_v1 }
  0xd0   : > { %635 = vmatprep.mubr.f32.mxu0 %v915_v23  ;;  %848 = vmatpush1.msk.msra.mxu0 %vm248_vm0, %v846_v22 }
  0xd1   : > { %851 = vmatprep.subr.msk.mxu1 %vm248_vm0, %v650_v26 }
  0xd2   : > { %520 = vmatmul.mubr.f32.vlgmr.msra.gmra.mxu1 %v440_v63 }
  0xd3   : > { %722 = vmatprep.mubr.f32.mxu1 %v915_v23  ;;  %852 = vmatpush1.msk.msra.mxu1 %vm248_vm0, %v850_v25 }
 0x18e   : > { %v429_v3 = vpop.f32.mrf.mxu0 }
 0x18f   : > { %v529_v4 = vmul.f32 %v526_v2, %v429_v3 }
 0x190   : > { %v431_v6 = vpop.f32.mrf.mxu0 }
 0x191   : > { %v532_v8 = vsel %vm531_vm1, %v529_v4, -inf }
 0x192   : > { %533 = vmax.xlane.f32.xlu0 %v532_v8  ;;  %v521_v9 = vpop.f32.mrf.mxu1 }
 0x193   : > { %v530_v5 = vmul.f32 %v528_v7, %v521_v9 }
 0x194   : > { %v523_v10 = vpop.f32.mrf.mxu1 }
 0x195   : > { %v535_v11 = vsel %vm531_vm1, %v530_v5, -inf }
 0x196   : > { %536 = vmax.xlane.f32.xlu1 %v535_v11 }
 0x21b   : > { %v534_v12 = vpop.xlane.xlu0 %533 }
 0x21c   : > { %v538_v13 = vsub.f32 %v529_v4, %v534_v12 }
 0x21e   : > { %v540_v14 = vmul.f32 1.442695, %v538_v13 }
 0x21f   : > { %v537_v15 = vpop.xlane.xlu1 %536 }
 0x220   : > { %882 = vpow2.f32 %v540_v14  ;;  %v539_v16 = vsub.f32 %v530_v5, %v537_v15 }
 0x222   : > { %v542_v17 = vmul.f32 1.442695, %v539_v16 }
 0x224   : > { %884 = vpow2.f32 %v542_v17 }
 0x22d   : > { %v883_v18 = vpop.eup %882 }
 0x22e   : > { %v544_v19 = vsel %vm531_vm1, %v883_v18, 0.0 }
 0x22f   : > { %545 = vadd.xlane.f32.xlu0 %v544_v19 }
 0x231   : > { %v885_v20 = vpop.eup %884 }
 0x232   : > { %v547_v21 = vsel %vm531_vm1, %v885_v20, 0.0 }
 0x233   : > { %548 = vadd.xlane.f32.xlu1 %v547_v21 }
 0x2b8   : > { %v546_v27 = vpop.xlane.xlu0 %545 }
 0x2b9   : > { %886 = vrcp.f32 %v546_v27 }
 0x2bc   : > { %v549_v28 = vpop.xlane.xlu1 %548 }
 0x2bd   : > { %888 = vrcp.f32 %v549_v28 }
 0x2c6   : > { %v887_v29 = vpop.eup %886 }
 0x2c7   : > { %v552_v30 = vmul.f32 %v887_v29, %v883_v18 }
 0x2c9   : > { %849 = vmatmul.mubr.msk.f32.vlgmr.msra.gmra.mxu0 %vm563_vm2, %v552_v30 }
 0x2ca   : > { %v889_v31 = vpop.eup %888 }
 0x2cb   : > { %v553_v32 = vmul.f32 %v889_v31, %v885_v20 }
 0x2cd   : > { %853 = vmatmul.mubr.msk.f32.vlgmr.msra.gmra.mxu1 %vm563_vm2, %v553_v32 }
 0x389   : > { %v637_v33 = vpop.f32.mrf.mxu0 }
 0x38b   : > { %v639_v34 = vpop.f32.mrf.mxu0 }
 0x38c   : > { %v733_v35 = vcombine.low %v637_v33, %v639_v34 }
 0x38d   : > { %v724_v36 = vpop.f32.mrf.mxu1 }
 0x38e   : > { %854 = vst.sshfl [vmem:[%s217_s9] sm:$0x33 pattern:$0x76325410] %v733_v35 }
 0x38f   : > { %v726_v37 = vpop.f32.mrf.mxu1 }
 0x390   : > { %v741_v38 = vcombine.low %v724_v36, %v726_v37 }
 0x392   : > { %855 = vst.sshfl [vmem:[%s217_s9 + $0x4] sm:$0x33 pattern:$0x76325410] %v741_v38 }
 0x393 PF: > { %s20_s20 = sadd.s32 1, %s910_s20  }
 0x394   : > { %p17_p9 = scmp.ge.s32.totalorder %s20_s20, 4  }
 0x396   :  { %19 = sbr.rel (!%p17_p9) target bundleno = 16 (0x10), region = 68 }

</bundles_post_ra>
